<compile_context>
chip_gen: v6e
topology: v6e:2x2x1
jax: 0.10.0
libtpu: 0.0.40
codegen_flags: <defaults>
</compile_context>

<pallas_src>
import math

import jax
import jax.numpy as jnp
from jax.experimental import pallas as pl
from jax.experimental.pallas import tpu as pltpu

TN = 128  # node rows per grid step (keeps the online-softmax live set in vregs)

_BN_SCALE = 1.0 / math.sqrt(1.0 + 1e-5)  # eval-mode BatchNorm1d, default stats


def _prelu(x, a):
    return jnp.where(x >= 0.0, x, a * x)


# ----------------------------------------------------------------------------
# Fused kernel
# ----------------------------------------------------------------------------

def _make_fused_kernel(num_hops, alpha):
    K = num_hops

    def kernel(*refs):
        feats = refs[:K]              # K x (TN, F*D)  flattened per-hop subset feats
        aggw = refs[K:2 * K]          # K x (1,  F*D)  WeightedAggregator weights
        (label_ref, wa_ref, wb_ref, attb_ref,
         w0e_ref, gc_ref, w2_ref, a_ii_ref,
         lw0_ref, lb0_ref, lw1_ref, lb1_ref, a_lab_ref,
         out_ref) = refs[2 * K:]

        wa_t = wa_ref[...]            # (1, F*D) lr_att "history" half, tiled over F
        wb_t = wb_ref[...]            # (1, F*D) lr_att "current hop" half, tiled over F
        b_att = attb_ref[...]         # (1, 1)

        # Recurrent GAMLP hop attention as an online softmax, entirely in the
        # lane-dense flattened domain:
        #   prod_k            = feats_k * aggw_k          (WeightedAggregator, unfolded)
        #   h_k . wb          = sum_lanes(prod_k * wb_t)
        #   history_k . wa    = sum_lanes(acc * wa_t) / l
        #   s_k               = relu(history_k.wa + h_k.wb + b)
        #   acc = sum_j prod_j * exp(s_j - m),  l = sum_j exp(s_j - m)
        # history at step k (softmax over scores 0..k-1, weighted hop sum) == acc / l.
        acc = None
        m = None
        l = None
        for k in range(K):
            prod = feats[k][...] * aggw[k][...]                     # (TN, F*D)  VPU
            sb = jnp.sum(prod * wb_t, axis=-1, keepdims=True)       # (TN, 1)    XLU
            if k == 0:
                sa = jnp.sum(prod * wa_t, axis=-1, keepdims=True)
            else:
                sa = jnp.sum(acc * wa_t, axis=-1, keepdims=True) \
                     * pl.reciprocal(l, approx=True)
            s = jnp.maximum(sa + sb + b_att, 0.0)                   # act == 'relu'
            if k == 0:
                m = s
                l = jnp.ones_like(s)
                acc = prod
            else:
                m_new = jnp.maximum(m, s)
                r = jnp.exp(m - m_new)
                e = jnp.exp(s - m_new)
                l = l * r + e
                acc = acc * r + prod * e
                m = m_new
        inv_l = pl.reciprocal(l, approx=True)

        # lr_output = FeedForwardNetII(nfeat, hidden, nclass, n_layers_2=3):
        #   Dense -> PReLU -> GraphConvolution((1-a)x + a*h0) -> PReLU -> Dense
        # Dense's eval-mode BatchNorm is folded into w0e / w2; w0e is additionally
        # tiled over F so it reduces the flattened hop groups inside one MXU matmul.
        a_ii = a_ii_ref[...]
        x = jnp.dot(acc, w0e_ref[...], preferred_element_type=jnp.float32) * inv_l
        h0 = x
        x = _prelu(x, a_ii)
        x = jnp.dot((1.0 - alpha) * x + alpha * h0, gc_ref[...],
                    preferred_element_type=jnp.float32)
        x = _prelu(x, a_ii)
        x = jnp.dot(x, w2_ref[...], preferred_element_type=jnp.float32)

        # label_fc = FeedForwardNet(nclass, hidden, nclass, n_layers_3=2)
        a_lab = a_lab_ref[...]
        y = jnp.dot(label_ref[...], lw0_ref[...],
                    preferred_element_type=jnp.float32) + lb0_ref[...]
        y = _prelu(y, a_lab)
        y = jnp.dot(y, lw1_ref[...],
                    preferred_element_type=jnp.float32) + lb1_ref[...]

        out_ref[...] = x + y

    return kernel


# ----------------------------------------------------------------------------
# Wrapper: pad N to a tile multiple, single fused pallas_call, slice back
# ----------------------------------------------------------------------------

def nars_r_gamlp_rlu_forward(params, feats_list, label_emb, *, alpha):
    K = len(feats_list)
    N, F, D = feats_list[0].shape
    FD = F * D
    H = params["out_gc_w"].shape[0]
    C = params["lab_w1"].shape[1]

    n_tiles = (N + TN - 1) // TN
    Np = n_tiles * TN
    pad = Np - N

    feats_flat = [f.reshape(N, FD) for f in feats_list]   # free row-major reshape
    if pad:
        feats_flat = [jnp.pad(f, ((0, pad), (0, 0))) for f in feats_flat]
        label_emb = jnp.pad(label_emb, ((0, pad), (0, 0)))

    def row_spec(r, c):
        return pl.BlockSpec((r, c), lambda i: (0, 0))      # weight-resident blocks

    feat_spec = pl.BlockSpec((TN, FD), lambda i: (i, 0))

    in_specs = (
        [feat_spec] * K
        + [row_spec(1, FD)] * K                            # per-hop aggregator rows
        + [pl.BlockSpec((TN, C), lambda i: (i, 0)),        # label_emb
           row_spec(1, FD),                                # lr_att wa (tiled)
           row_spec(1, FD),                                # lr_att wb (tiled)
           row_spec(1, 1),                                 # lr_att bias
           row_spec(FD, H),                                # Dense0 weight (tiled, BN-folded)
           row_spec(H, H),                                 # GraphConvolution weight
           row_spec(H, C),                                 # Dense2 weight (BN-folded)
           row_spec(1, 1),                                 # PReLU alpha (lr_output)
           row_spec(C, H),                                 # label_fc lin0 W
           row_spec(1, H),                                 # label_fc lin0 b
           row_spec(H, C),                                 # label_fc lin1 W
           row_spec(1, C),                                 # label_fc lin1 b
           row_spec(1, 1)]                                 # PReLU alpha (label_fc)
    )

    out = pl.pallas_call(
        _make_fused_kernel(K, alpha),
        out_shape=jax.ShapeDtypeStruct((Np, C), jnp.float32),
        grid=(n_tiles,),
        in_specs=in_specs,
        out_specs=pl.BlockSpec((TN, C), lambda i: (i, 0)),
        compiler_params=pltpu.CompilerParams(
            dimension_semantics=("parallel",)),
    )(*feats_flat,
      *params["agg_w"],
      label_emb,
      params["att_wa_t"], params["att_wb_t"], params["att_b"],
      params["out_w0_exp"], params["out_gc_w"], params["out_w2"],
      params["prelu_ii"],
      params["lab_w0"], params["lab_b0"], params["lab_w1"], params["lab_b1"],
      params["prelu_lab"])

    return out[:N] if pad else out


# ----------------------------------------------------------------------------
# Deterministic parameter construction (matches the module's __init__ shapes;
# BN scale folding and F-tiling of weights done here, once, not per forward)
# ----------------------------------------------------------------------------

def _xavier(key, shape, gain):
    fan_in, fan_out = shape
    a = gain * math.sqrt(6.0 / (fan_in + fan_out))
    return jax.random.uniform(key, shape, jnp.float32, -a, a)


def _gamlp_uniform(key, shape):
    stdv = 1.0 / math.sqrt(shape[1])
    return jax.random.uniform(key, shape, jnp.float32, -stdv, stdv)


def make_params(key, *, nfeat, hidden, nclass, num_hops, num_feats):
    gain = math.sqrt(2.0)  # calculate_gain('relu')
    keys = jax.random.split(key, num_hops + 8)
    D, F, FD = nfeat, num_feats, num_feats * nfeat
    p = {}
    # WeightedAggregator: (num_feats, nfeat) xavier weight per hop, flattened
    # row-major so it lines up with feats.reshape(N, F*D).
    p["agg_w"] = [_xavier(keys[k], (F, D), 1.0).reshape(1, FD)
                  for k in range(num_hops)]
    # lr_att = nn.Linear(2*nfeat, 1): split into history/current halves and tile
    # each half F times so it contracts against the flattened hop features.
    att_w = _xavier(keys[num_hops], (2 * D, 1), gain)
    p["att_wa_t"] = jnp.tile(att_w[:D].reshape(1, D), (1, F))
    p["att_wb_t"] = jnp.tile(att_w[D:].reshape(1, D), (1, F))
    p["att_b"] = jnp.zeros((1, 1), jnp.float32)
    # lr_output = FeedForwardNetII(nfeat, hidden, nclass, n_layers_2=3):
    #   Dense(nfeat,hidden) -> GraphConvolution(hidden,hidden,alpha) -> Dense(hidden,nclass)
    # Dense's 'bn' bias in eval mode (default stats) folds to a 1/sqrt(1+eps) scale.
    w0 = _gamlp_uniform(keys[num_hops + 1], (D, hidden)) * _BN_SCALE
    p["out_w0_exp"] = jnp.tile(w0, (F, 1))                       # (F*D, hidden)
    p["out_gc_w"] = _gamlp_uniform(keys[num_hops + 2], (hidden, hidden))
    p["out_w2"] = _gamlp_uniform(keys[num_hops + 3], (hidden, nclass)) * _BN_SCALE
    p["prelu_ii"] = jnp.full((1, 1), 0.25, jnp.float32)
    # label_fc = FeedForwardNet(nclass, hidden, nclass, n_layers_3=2)
    p["lab_w0"] = _xavier(keys[num_hops + 4], (nclass, hidden), gain)
    p["lab_b0"] = jnp.zeros((1, hidden), jnp.float32)
    p["lab_w1"] = _xavier(keys[num_hops + 5], (hidden, nclass), gain)
    p["lab_b1"] = jnp.zeros((1, nclass), jnp.float32)
    p["prelu_lab"] = jnp.full((1, 1), 0.25, jnp.float32)
    return p


if __name__ == "__main__":
    # N deliberately NOT a multiple of the 128-row tile to exercise the padding path.
    N, NFEAT, HIDDEN, NCLASS = 300, 32, 32, 16
    NUM_HOPS, NUM_FEATS, ALPHA = 3, 4, 0.5

    key = jax.random.PRNGKey(0)
    kp, kf, kl = jax.random.split(key, 3)
    params = make_params(kp, nfeat=NFEAT, hidden=HIDDEN, nclass=NCLASS,
                         num_hops=NUM_HOPS, num_feats=NUM_FEATS)

    fkeys = jax.random.split(kf, NUM_HOPS)
    feats_list = [jax.random.normal(fkeys[k], (N, NUM_FEATS, NFEAT), jnp.float32)
                  for k in range(NUM_HOPS)]
    label_emb = jax.random.normal(kl, (N, NCLASS), jnp.float32)

    out = nars_r_gamlp_rlu_forward(params, feats_list, label_emb, alpha=ALPHA)
    out = jax.block_until_ready(out)
    assert out.shape == (N, NCLASS) and out.dtype == jnp.float32
    assert bool(jnp.all(jnp.isfinite(out)))
    print("KERNEL_OK")
</pallas_src>

<mosaic_0001>
module attributes {stable_mosaic.version = 11 : i64} {
  func.func @kernel(%arg0: i32, %arg1: memref<128x128xf32, #tpu.memory_space<vmem>>, %arg2: memref<128x128xf32, #tpu.memory_space<vmem>>, %arg3: memref<128x128xf32, #tpu.memory_space<vmem>>, %arg4: memref<1x128xf32, #tpu.memory_space<vmem>>, %arg5: memref<1x128xf32, #tpu.memory_space<vmem>>, %arg6: memref<1x128xf32, #tpu.memory_space<vmem>>, %arg7: memref<128x16xf32, #tpu.memory_space<vmem>>, %arg8: memref<1x128xf32, #tpu.memory_space<vmem>>, %arg9: memref<1x128xf32, #tpu.memory_space<vmem>>, %arg10: memref<1x1xf32, #tpu.memory_space<vmem>>, %arg11: memref<128x32xf32, #tpu.memory_space<vmem>>, %arg12: memref<32x32xf32, #tpu.memory_space<vmem>>, %arg13: memref<32x16xf32, #tpu.memory_space<vmem>>, %arg14: memref<1x1xf32, #tpu.memory_space<vmem>>, %arg15: memref<16x32xf32, #tpu.memory_space<vmem>>, %arg16: memref<1x32xf32, #tpu.memory_space<vmem>>, %arg17: memref<32x16xf32, #tpu.memory_space<vmem>>, %arg18: memref<1x16xf32, #tpu.memory_space<vmem>>, %arg19: memref<1x1xf32, #tpu.memory_space<vmem>>, %arg20: memref<128x16xf32, #tpu.memory_space<vmem>>) attributes {dimension_semantics = [#tpu.dimension_semantics<parallel>], iteration_bounds = array<i64: 3>, scalar_prefetch = 0 : i64, scratch_operands = 0 : i64, tpu.core_type = #tpu.core_type<tc>, window_params = [{transform_indices = @transform_0, window_bounds = array<i64: 128, 128>}, {transform_indices = @transform_1, window_bounds = array<i64: 128, 128>}, {transform_indices = @transform_2, window_bounds = array<i64: 128, 128>}, {pipeline_mode = #tpu.pipeline_mode<synchronous>, transform_indices = @transform_3, window_bounds = array<i64: 1, 128>}, {pipeline_mode = #tpu.pipeline_mode<synchronous>, transform_indices = @transform_4, window_bounds = array<i64: 1, 128>}, {pipeline_mode = #tpu.pipeline_mode<synchronous>, transform_indices = @transform_5, window_bounds = array<i64: 1, 128>}, {transform_indices = @transform_6, window_bounds = array<i64: 128, 16>}, {pipeline_mode = #tpu.pipeline_mode<synchronous>, transform_indices = @transform_7, window_bounds = array<i64: 1, 128>}, {pipeline_mode = #tpu.pipeline_mode<synchronous>, transform_indices = @transform_8, window_bounds = array<i64: 1, 128>}, {pipeline_mode = #tpu.pipeline_mode<synchronous>, transform_indices = @transform_9, window_bounds = array<i64: 1, 1>}, {pipeline_mode = #tpu.pipeline_mode<synchronous>, transform_indices = @transform_10, window_bounds = array<i64: 128, 32>}, {pipeline_mode = #tpu.pipeline_mode<synchronous>, transform_indices = @transform_11, window_bounds = array<i64: 32, 32>}, {pipeline_mode = #tpu.pipeline_mode<synchronous>, transform_indices = @transform_12, window_bounds = array<i64: 32, 16>}, {pipeline_mode = #tpu.pipeline_mode<synchronous>, transform_indices = @transform_13, window_bounds = array<i64: 1, 1>}, {pipeline_mode = #tpu.pipeline_mode<synchronous>, transform_indices = @transform_14, window_bounds = array<i64: 16, 32>}, {pipeline_mode = #tpu.pipeline_mode<synchronous>, transform_indices = @transform_15, window_bounds = array<i64: 1, 32>}, {pipeline_mode = #tpu.pipeline_mode<synchronous>, transform_indices = @transform_16, window_bounds = array<i64: 32, 16>}, {pipeline_mode = #tpu.pipeline_mode<synchronous>, transform_indices = @transform_17, window_bounds = array<i64: 1, 16>}, {pipeline_mode = #tpu.pipeline_mode<synchronous>, transform_indices = @transform_18, window_bounds = array<i64: 1, 1>}, {transform_indices = @transform_19, window_bounds = array<i64: 128, 16>}]} {
    %c0 = arith.constant 0 : index
    %c0_0 = arith.constant 0 : index
    %0 = vector.load %arg8[%c0, %c0_0] : memref<1x128xf32, #tpu.memory_space<vmem>>, vector<1x128xf32>
    %c0_1 = arith.constant 0 : index
    %c0_2 = arith.constant 0 : index
    %1 = vector.load %arg9[%c0_1, %c0_2] : memref<1x128xf32, #tpu.memory_space<vmem>>, vector<1x128xf32>
    %c0_3 = arith.constant 0 : index
    %c0_4 = arith.constant 0 : index
    %2 = vector.load %arg10[%c0_3, %c0_4] : memref<1x1xf32, #tpu.memory_space<vmem>>, vector<1x1xf32>
    %c0_5 = arith.constant 0 : index
    %c0_6 = arith.constant 0 : index
    %3 = vector.load %arg1[%c0_5, %c0_6] : memref<128x128xf32, #tpu.memory_space<vmem>>, vector<128x128xf32>
    %c0_7 = arith.constant 0 : index
    %c0_8 = arith.constant 0 : index
    %4 = vector.load %arg4[%c0_7, %c0_8] : memref<1x128xf32, #tpu.memory_space<vmem>>, vector<1x128xf32>
    %5 = vector.broadcast %4 : vector<1x128xf32> to vector<128x128xf32>
    %6 = arith.mulf %3, %5 : vector<128x128xf32>
    %7 = vector.broadcast %1 : vector<1x128xf32> to vector<128x128xf32>
    %8 = arith.mulf %6, %7 : vector<128x128xf32>
    %cst = arith.constant dense<0.000000e+00> : vector<128xf32>
    %9 = vector.multi_reduction <add>, %8, %cst [1] : vector<128x128xf32> to vector<128xf32>
    %10 = vector.shape_cast %9 : vector<128xf32> to vector<128x1xf32>
    %11 = vector.broadcast %0 : vector<1x128xf32> to vector<128x128xf32>
    %12 = arith.mulf %6, %11 : vector<128x128xf32>
    %cst_9 = arith.constant dense<0.000000e+00> : vector<128xf32>
    %13 = vector.multi_reduction <add>, %12, %cst_9 [1] : vector<128x128xf32> to vector<128xf32>
    %14 = vector.shape_cast %13 : vector<128xf32> to vector<128x1xf32>
    %15 = arith.addf %14, %10 : vector<128x1xf32>
    %16 = vector.broadcast %2 : vector<1x1xf32> to vector<128x1xf32>
    %17 = arith.addf %15, %16 : vector<128x1xf32>
    %cst_10 = arith.constant 0.000000e+00 : f32
    %18 = vector.broadcast %cst_10 : f32 to vector<128x1xf32>
    %19 = arith.maximumf %17, %18 : vector<128x1xf32>
    %cst_11 = arith.constant 1.000000e+00 : f32
    %20 = vector.broadcast %cst_11 : f32 to vector<128x1xf32>
    %c0_12 = arith.constant 0 : index
    %c0_13 = arith.constant 0 : index
    %21 = vector.load %arg2[%c0_12, %c0_13] : memref<128x128xf32, #tpu.memory_space<vmem>>, vector<128x128xf32>
    %c0_14 = arith.constant 0 : index
    %c0_15 = arith.constant 0 : index
    %22 = vector.load %arg5[%c0_14, %c0_15] : memref<1x128xf32, #tpu.memory_space<vmem>>, vector<1x128xf32>
    %23 = vector.broadcast %22 : vector<1x128xf32> to vector<128x128xf32>
    %24 = arith.mulf %21, %23 : vector<128x128xf32>
    %25 = vector.broadcast %1 : vector<1x128xf32> to vector<128x128xf32>
    %26 = arith.mulf %24, %25 : vector<128x128xf32>
    %cst_16 = arith.constant dense<0.000000e+00> : vector<128xf32>
    %27 = vector.multi_reduction <add>, %26, %cst_16 [1] : vector<128x128xf32> to vector<128xf32>
    %28 = vector.shape_cast %27 : vector<128xf32> to vector<128x1xf32>
    %29 = vector.broadcast %0 : vector<1x128xf32> to vector<128x128xf32>
    %30 = arith.mulf %6, %29 : vector<128x128xf32>
    %cst_17 = arith.constant dense<0.000000e+00> : vector<128xf32>
    %31 = vector.multi_reduction <add>, %30, %cst_17 [1] : vector<128x128xf32> to vector<128xf32>
    %32 = vector.shape_cast %31 : vector<128xf32> to vector<128x1xf32>
    %33 = tpu.reciprocal %20 {approx = true} : vector<128x1xf32> -> vector<128x1xf32>
    %34 = arith.mulf %32, %33 : vector<128x1xf32>
    %35 = arith.addf %34, %28 : vector<128x1xf32>
    %36 = vector.broadcast %2 : vector<1x1xf32> to vector<128x1xf32>
    %37 = arith.addf %35, %36 : vector<128x1xf32>
    %cst_18 = arith.constant 0.000000e+00 : f32
    %38 = vector.broadcast %cst_18 : f32 to vector<128x1xf32>
    %39 = arith.maximumf %37, %38 : vector<128x1xf32>
    %40 = arith.maximumf %19, %39 : vector<128x1xf32>
    %41 = arith.subf %19, %40 : vector<128x1xf32>
    %42 = math.exp %41 : vector<128x1xf32>
    %43 = arith.subf %39, %40 : vector<128x1xf32>
    %44 = math.exp %43 : vector<128x1xf32>
    %45 = arith.mulf %20, %42 : vector<128x1xf32>
    %46 = arith.addf %45, %44 : vector<128x1xf32>
    %47 = vector.broadcast %42 : vector<128x1xf32> to vector<128x128xf32>
    %48 = arith.mulf %6, %47 : vector<128x128xf32>
    %49 = vector.broadcast %44 : vector<128x1xf32> to vector<128x128xf32>
    %50 = arith.mulf %24, %49 : vector<128x128xf32>
    %51 = arith.addf %48, %50 : vector<128x128xf32>
    %c0_19 = arith.constant 0 : index
    %c0_20 = arith.constant 0 : index
    %52 = vector.load %arg3[%c0_19, %c0_20] : memref<128x128xf32, #tpu.memory_space<vmem>>, vector<128x128xf32>
    %c0_21 = arith.constant 0 : index
    %c0_22 = arith.constant 0 : index
    %53 = vector.load %arg6[%c0_21, %c0_22] : memref<1x128xf32, #tpu.memory_space<vmem>>, vector<1x128xf32>
    %54 = vector.broadcast %53 : vector<1x128xf32> to vector<128x128xf32>
    %55 = arith.mulf %52, %54 : vector<128x128xf32>
    %56 = vector.broadcast %1 : vector<1x128xf32> to vector<128x128xf32>
    %57 = arith.mulf %55, %56 : vector<128x128xf32>
    %cst_23 = arith.constant dense<0.000000e+00> : vector<128xf32>
    %58 = vector.multi_reduction <add>, %57, %cst_23 [1] : vector<128x128xf32> to vector<128xf32>
    %59 = vector.shape_cast %58 : vector<128xf32> to vector<128x1xf32>
    %60 = vector.broadcast %0 : vector<1x128xf32> to vector<128x128xf32>
    %61 = arith.mulf %51, %60 : vector<128x128xf32>
    %cst_24 = arith.constant dense<0.000000e+00> : vector<128xf32>
    %62 = vector.multi_reduction <add>, %61, %cst_24 [1] : vector<128x128xf32> to vector<128xf32>
    %63 = vector.shape_cast %62 : vector<128xf32> to vector<128x1xf32>
    %64 = tpu.reciprocal %46 {approx = true} : vector<128x1xf32> -> vector<128x1xf32>
    %65 = arith.mulf %63, %64 : vector<128x1xf32>
    %66 = arith.addf %65, %59 : vector<128x1xf32>
    %67 = vector.broadcast %2 : vector<1x1xf32> to vector<128x1xf32>
    %68 = arith.addf %66, %67 : vector<128x1xf32>
    %cst_25 = arith.constant 0.000000e+00 : f32
    %69 = vector.broadcast %cst_25 : f32 to vector<128x1xf32>
    %70 = arith.maximumf %68, %69 : vector<128x1xf32>
    %71 = arith.maximumf %40, %70 : vector<128x1xf32>
    %72 = arith.subf %40, %71 : vector<128x1xf32>
    %73 = math.exp %72 : vector<128x1xf32>
    %74 = arith.subf %70, %71 : vector<128x1xf32>
    %75 = math.exp %74 : vector<128x1xf32>
    %76 = arith.mulf %46, %73 : vector<128x1xf32>
    %77 = arith.addf %76, %75 : vector<128x1xf32>
    %78 = vector.broadcast %73 : vector<128x1xf32> to vector<128x128xf32>
    %79 = arith.mulf %51, %78 : vector<128x128xf32>
    %80 = vector.broadcast %75 : vector<128x1xf32> to vector<128x128xf32>
    %81 = arith.mulf %55, %80 : vector<128x128xf32>
    %82 = arith.addf %79, %81 : vector<128x128xf32>
    %83 = tpu.reciprocal %77 {approx = true} : vector<128x1xf32> -> vector<128x1xf32>
    %c0_26 = arith.constant 0 : index
    %c0_27 = arith.constant 0 : index
    %84 = vector.load %arg14[%c0_26, %c0_27] : memref<1x1xf32, #tpu.memory_space<vmem>>, vector<1x1xf32>
    %c0_28 = arith.constant 0 : index
    %c0_29 = arith.constant 0 : index
    %85 = vector.load %arg11[%c0_28, %c0_29] : memref<128x32xf32, #tpu.memory_space<vmem>>, vector<128x32xf32>
    %cst_30 = arith.constant dense<0.000000e+00> : vector<128x32xf32>
    %86 = tpu.matmul %82, %85, %cst_30 {dimension_numbers = #tpu.dot_dimension_numbers<[1], [0], [0], [1], [0, 0, 1, 1], [], []>} : vector<128x128xf32>, vector<128x32xf32>, vector<128x32xf32> -> vector<128x32xf32>
    %87 = vector.broadcast %83 : vector<128x1xf32> to vector<128x32xf32>
    %88 = arith.mulf %86, %87 : vector<128x32xf32>
    %cst_31 = arith.constant 0.000000e+00 : f32
    %89 = vector.broadcast %cst_31 : f32 to vector<128x32xf32>
    %90 = arith.cmpf oge, %88, %89 : vector<128x32xf32>
    %91 = vector.broadcast %84 : vector<1x1xf32> to vector<128x32xf32>
    %92 = arith.mulf %91, %88 : vector<128x32xf32>
    %93 = arith.select %90, %88, %92 : vector<128x32xi1>, vector<128x32xf32>
    %cst_32 = arith.constant 5.000000e-01 : f32
    %94 = vector.broadcast %cst_32 : f32 to vector<128x32xf32>
    %95 = arith.mulf %94, %93 : vector<128x32xf32>
    %cst_33 = arith.constant 5.000000e-01 : f32
    %96 = vector.broadcast %cst_33 : f32 to vector<128x32xf32>
    %97 = arith.mulf %96, %88 : vector<128x32xf32>
    %98 = arith.addf %95, %97 : vector<128x32xf32>
    %c0_34 = arith.constant 0 : index
    %c0_35 = arith.constant 0 : index
    %99 = vector.load %arg12[%c0_34, %c0_35] : memref<32x32xf32, #tpu.memory_space<vmem>>, vector<32x32xf32>
    %cst_36 = arith.constant dense<0.000000e+00> : vector<128x32xf32>
    %100 = tpu.matmul %98, %99, %cst_36 {dimension_numbers = #tpu.dot_dimension_numbers<[1], [0], [0], [1], [0, 0, 1, 1], [], []>} : vector<128x32xf32>, vector<32x32xf32>, vector<128x32xf32> -> vector<128x32xf32>
    %cst_37 = arith.constant 0.000000e+00 : f32
    %101 = vector.broadcast %cst_37 : f32 to vector<128x32xf32>
    %102 = arith.cmpf oge, %100, %101 : vector<128x32xf32>
    %103 = vector.broadcast %84 : vector<1x1xf32> to vector<128x32xf32>
    %104 = arith.mulf %103, %100 : vector<128x32xf32>
    %105 = arith.select %102, %100, %104 : vector<128x32xi1>, vector<128x32xf32>
    %c0_38 = arith.constant 0 : index
    %c0_39 = arith.constant 0 : index
    %106 = vector.load %arg13[%c0_38, %c0_39] : memref<32x16xf32, #tpu.memory_space<vmem>>, vector<32x16xf32>
    %cst_40 = arith.constant dense<0.000000e+00> : vector<128x16xf32>
    %107 = tpu.matmul %105, %106, %cst_40 {dimension_numbers = #tpu.dot_dimension_numbers<[1], [0], [0], [1], [0, 0, 1, 1], [], []>} : vector<128x32xf32>, vector<32x16xf32>, vector<128x16xf32> -> vector<128x16xf32>
    %c0_41 = arith.constant 0 : index
    %c0_42 = arith.constant 0 : index
    %108 = vector.load %arg19[%c0_41, %c0_42] : memref<1x1xf32, #tpu.memory_space<vmem>>, vector<1x1xf32>
    %c0_43 = arith.constant 0 : index
    %c0_44 = arith.constant 0 : index
    %109 = vector.load %arg7[%c0_43, %c0_44] : memref<128x16xf32, #tpu.memory_space<vmem>>, vector<128x16xf32>
    %c0_45 = arith.constant 0 : index
    %c0_46 = arith.constant 0 : index
    %110 = vector.load %arg15[%c0_45, %c0_46] : memref<16x32xf32, #tpu.memory_space<vmem>>, vector<16x32xf32>
    %cst_47 = arith.constant dense<0.000000e+00> : vector<128x32xf32>
    %111 = tpu.matmul %109, %110, %cst_47 {dimension_numbers = #tpu.dot_dimension_numbers<[1], [0], [0], [1], [0, 0, 1, 1], [], []>} : vector<128x16xf32>, vector<16x32xf32>, vector<128x32xf32> -> vector<128x32xf32>
    %c0_48 = arith.constant 0 : index
    %c0_49 = arith.constant 0 : index
    %112 = vector.load %arg16[%c0_48, %c0_49] : memref<1x32xf32, #tpu.memory_space<vmem>>, vector<1x32xf32>
    %113 = vector.broadcast %112 : vector<1x32xf32> to vector<128x32xf32>
    %114 = arith.addf %111, %113 : vector<128x32xf32>
    %cst_50 = arith.constant 0.000000e+00 : f32
    %115 = vector.broadcast %cst_50 : f32 to vector<128x32xf32>
    %116 = arith.cmpf oge, %114, %115 : vector<128x32xf32>
    %117 = vector.broadcast %108 : vector<1x1xf32> to vector<128x32xf32>
    %118 = arith.mulf %117, %114 : vector<128x32xf32>
    %119 = arith.select %116, %114, %118 : vector<128x32xi1>, vector<128x32xf32>
    %c0_51 = arith.constant 0 : index
    %c0_52 = arith.constant 0 : index
    %120 = vector.load %arg17[%c0_51, %c0_52] : memref<32x16xf32, #tpu.memory_space<vmem>>, vector<32x16xf32>
    %cst_53 = arith.constant dense<0.000000e+00> : vector<128x16xf32>
    %121 = tpu.matmul %119, %120, %cst_53 {dimension_numbers = #tpu.dot_dimension_numbers<[1], [0], [0], [1], [0, 0, 1, 1], [], []>} : vector<128x32xf32>, vector<32x16xf32>, vector<128x16xf32> -> vector<128x16xf32>
    %c0_54 = arith.constant 0 : index
    %c0_55 = arith.constant 0 : index
    %122 = vector.load %arg18[%c0_54, %c0_55] : memref<1x16xf32, #tpu.memory_space<vmem>>, vector<1x16xf32>
    %123 = vector.broadcast %122 : vector<1x16xf32> to vector<128x16xf32>
    %124 = arith.addf %121, %123 : vector<128x16xf32>
    %125 = arith.addf %107, %124 : vector<128x16xf32>
    %c0_56 = arith.constant 0 : index
    %c0_57 = arith.constant 0 : index
    %126 = vector.load %arg20[%c0_56, %c0_57] : memref<128x16xf32, #tpu.memory_space<vmem>>, vector<128x16xf32>
    tpu.vector_store %arg20[%c0_56, %c0_57], %125 {strides = array<i32>} : memref<128x16xf32, #tpu.memory_space<vmem>>, vector<128x16xf32>,
    return
  }
  func.func @transform_0(%arg0: i32) -> (i32, i32) {
    %c0_i32 = arith.constant 0 : i32
    %c0_i32_0 = arith.constant 0 : i32
    return %arg0, %c0_i32 : i32, i32
  }
  func.func @transform_1(%arg0: i32) -> (i32, i32) {
    %c0_i32 = arith.constant 0 : i32
    %c0_i32_0 = arith.constant 0 : i32
    return %arg0, %c0_i32 : i32, i32
  }
  func.func @transform_2(%arg0: i32) -> (i32, i32) {
    %c0_i32 = arith.constant 0 : i32
    %c0_i32_0 = arith.constant 0 : i32
    return %arg0, %c0_i32 : i32, i32
  }
  func.func @transform_3(%arg0: i32) -> (i32, i32) {
    %c0_i32 = arith.constant 0 : i32
    %c0_i32_0 = arith.constant 0 : i32
    %c0_i32_1 = arith.constant 0 : i32
    return %c0_i32, %c0_i32_0 : i32, i32
  }
  func.func @transform_4(%arg0: i32) -> (i32, i32) {
    %c0_i32 = arith.constant 0 : i32
    %c0_i32_0 = arith.constant 0 : i32
    %c0_i32_1 = arith.constant 0 : i32
    return %c0_i32, %c0_i32_0 : i32, i32
  }
  func.func @transform_5(%arg0: i32) -> (i32, i32) {
    %c0_i32 = arith.constant 0 : i32
    %c0_i32_0 = arith.constant 0 : i32
    %c0_i32_1 = arith.constant 0 : i32
    return %c0_i32, %c0_i32_0 : i32, i32
  }
  func.func @transform_6(%arg0: i32) -> (i32, i32) {
    %c0_i32 = arith.constant 0 : i32
    %c0_i32_0 = arith.constant 0 : i32
    return %arg0, %c0_i32 : i32, i32
  }
  func.func @transform_7(%arg0: i32) -> (i32, i32) {
    %c0_i32 = arith.constant 0 : i32
    %c0_i32_0 = arith.constant 0 : i32
    %c0_i32_1 = arith.constant 0 : i32
    return %c0_i32, %c0_i32_0 : i32, i32
  }
  func.func @transform_8(%arg0: i32) -> (i32, i32) {
    %c0_i32 = arith.constant 0 : i32
    %c0_i32_0 = arith.constant 0 : i32
    %c0_i32_1 = arith.constant 0 : i32
    return %c0_i32, %c0_i32_0 : i32, i32
  }
  func.func @transform_9(%arg0: i32) -> (i32, i32) {
    %c0_i32 = arith.constant 0 : i32
    %c0_i32_0 = arith.constant 0 : i32
    %c0_i32_1 = arith.constant 0 : i32
    return %c0_i32, %c0_i32_0 : i32, i32
  }
  func.func @transform_10(%arg0: i32) -> (i32, i32) {
    %c0_i32 = arith.constant 0 : i32
    %c0_i32_0 = arith.constant 0 : i32
    %c0_i32_1 = arith.constant 0 : i32
    return %c0_i32, %c0_i32_0 : i32, i32
  }
  func.func @transform_11(%arg0: i32) -> (i32, i32) {
    %c0_i32 = arith.constant 0 : i32
    %c0_i32_0 = arith.constant 0 : i32
    %c0_i32_1 = arith.constant 0 : i32
    return %c0_i32, %c0_i32_0 : i32, i32
  }
  func.func @transform_12(%arg0: i32) -> (i32, i32) {
    %c0_i32 = arith.constant 0 : i32
    %c0_i32_0 = arith.constant 0 : i32
    %c0_i32_1 = arith.constant 0 : i32
    return %c0_i32, %c0_i32_0 : i32, i32
  }
  func.func @transform_13(%arg0: i32) -> (i32, i32) {
    %c0_i32 = arith.constant 0 : i32
    %c0_i32_0 = arith.constant 0 : i32
    %c0_i32_1 = arith.constant 0 : i32
    return %c0_i32, %c0_i32_0 : i32, i32
  }
  func.func @transform_14(%arg0: i32) -> (i32, i32) {
    %c0_i32 = arith.constant 0 : i32
    %c0_i32_0 = arith.constant 0 : i32
    %c0_i32_1 = arith.constant 0 : i32
    return %c0_i32, %c0_i32_0 : i32, i32
  }
  func.func @transform_15(%arg0: i32) -> (i32, i32) {
    %c0_i32 = arith.constant 0 : i32
    %c0_i32_0 = arith.constant 0 : i32
    %c0_i32_1 = arith.constant 0 : i32
    return %c0_i32, %c0_i32_0 : i32, i32
  }
  func.func @transform_16(%arg0: i32) -> (i32, i32) {
    %c0_i32 = arith.constant 0 : i32
    %c0_i32_0 = arith.constant 0 : i32
    %c0_i32_1 = arith.constant 0 : i32
    return %c0_i32, %c0_i32_0 : i32, i32
  }
  func.func @transform_17(%arg0: i32) -> (i32, i32) {
    %c0_i32 = arith.constant 0 : i32
    %c0_i32_0 = arith.constant 0 : i32
    %c0_i32_1 = arith.constant 0 : i32
    return %c0_i32, %c0_i32_0 : i32, i32
  }
  func.func @transform_18(%arg0: i32) -> (i32, i32) {
    %c0_i32 = arith.constant 0 : i32
    %c0_i32_0 = arith.constant 0 : i32
    %c0_i32_1 = arith.constant 0 : i32
    return %c0_i32, %c0_i32_0 : i32, i32
  }
  func.func @transform_19(%arg0: i32) -> (i32, i32) {
    %c0_i32 = arith.constant 0 : i32
    %c0_i32_0 = arith.constant 0 : i32
    return %arg0, %c0_i32 : i32, i32
  }
}

</mosaic_0001>

<bundles_post_ra>
// kernel: tpu_custom_call.1
= control target key start
LH: loop header
LB: loop body
LE: loop exit
PB: predicated region body
PF: predicated region fallthrough
CT: control target
= control target key end

     0   :  { %s5594_s0 = inlined_call_operand.vmem [shape: f32[384,128], index: 0, kind: input, shape index: {}]   ;;  %s5595_s1 = inlined_call_operand.hbm [shape: f32[384,128], index: 1, kind: input, shape index: {}]   ;;  %s5596_s2 = inlined_call_operand.hbm [shape: f32[384,128], index: 2, kind: input, shape index: {}]   ;;  %s5597_s3 = inlined_call_operand.vmem [shape: f32[1,128], index: 3, kind: input, shape index: {}]   ;;  %s5598_s4 = inlined_call_operand.vmem [shape: f32[1,128], index: 4, kind: input, shape index: {}]   ;;  %s5599_s5 = inlined_call_operand.vmem [shape: f32[1,128], index: 5, kind: input, shape index: {}]   ;;  %s5600_s6 = inlined_call_operand.vmem [shape: f32[384,16], index: 6, kind: input, shape index: {}]   ;;  %s5601_s7 = inlined_call_operand.vmem [shape: f32[1,128], index: 7, kind: input, shape index: {}]   ;;  %s5602_s8 = inlined_call_operand.vmem [shape: f32[1,128], index: 8, kind: input, shape index: {}]   ;;  %s5603_s9 = inlined_call_operand.<no memory space> [shape: f32[1,1], index: 9, kind: input, shape index: {}]   ;;  %s5604_s10 = inlined_call_operand.vmem [shape: f32[128,32], index: 10, kind: input, shape index: {}]   ;;  %s5605_s11 = inlined_call_operand.vmem [shape: f32[32,32], index: 11, kind: input, shape index: {}]   ;;  %s5606_s12 = inlined_call_operand.vmem [shape: f32[32,16], index: 12, kind: input, shape index: {}]   ;;  %s5607_s14 = inlined_call_operand.vmem [shape: f32[16,32], index: 14, kind: input, shape index: {}]   ;;  %s5608_s15 = inlined_call_operand.vmem [shape: f32[1,32], index: 15, kind: input, shape index: {}]   ;;  %s5609_s16 = inlined_call_operand.vmem [shape: f32[32,16], index: 16, kind: input, shape index: {}]   ;;  %s5610_s17 = inlined_call_operand.vmem [shape: f32[1,16], index: 17, kind: input, shape index: {}]   ;;  %s5611_s19 = inlined_call_operand.vmem [shape: f32[384,16], index: 19, kind: output, shape index: {}]   ;;  %s5612_s13 = inlined_call_operand.<no memory space> [shape: f32[1,1], index: 13, kind: input, shape index: {}]   ;;  %s5613_s18 = inlined_call_operand.<no memory space> [shape: f32[1,1], index: 18, kind: input, shape index: {}]  }
   0x1   :  { %5684 = sst [smem:[#allocation57_spill]] %s5594_s0  ;;  %v24_v0 = vstv %s5603_s9  ;;  %v26_v1 = vstv %s5612_s13  ;;  %v28_v2 = vstv %s5613_s18 }
   0x2   :  { %5685 = sst [smem:[#allocation58_spill]] %s5595_s1  ;;  %25 = vst [vmem:[#allocation2] sm:$0x1] %v24_v0  ;;  %27 = vst [vmem:[#allocation3] sm:$0x1] %v26_v1 }
   0x3   :  { %5686 = sst [smem:[#allocation59_spill]] %s5596_s2  ;;  %29 = vst [vmem:[#allocation4] sm:$0x1] %v28_v2 }
   0x4   :  { %5687 = sst [smem:[#allocation60_spill]] %s5597_s3 }
   0x5   :  { %5688 = sst [smem:[#allocation61_spill]] %s5611_s19 }
   0x6   :  { %30 = vsyncpa [#allocation6], 0 }
   0x7   :  { %32 = vsyncpa [#allocation6 + $0x1], 0 }
   0x8   :  { %33 = vsyncpa [#allocation8], 0 }
   0x9   :  { %35 = vsyncpa [#allocation8 + $0x1], 0  ;;  %s4257_s2 = smov 0   ;;  %s4259_s23 = smov 0  }
   0xa   :  { %s4261_s9 = smov 0   ;;  %s4263_s24 = smov 0  }
   0xb LB: > { %5689 = sst [smem:[#allocation11_spill]] %s4137_s9  ;;  %s5616_s13 = sadd.s32 4294967295, %s4141_s24   ;;  %s4141_s24 = sphi %s4263_s24, %s5793_s24   ;;  %s4137_s9 = sphi %s4261_s9, %s5795_s9   ;;  %s4133_s23 = sphi %s4259_s23, %s5797_s23   ;;  %s4129_s2 = sphi %s4257_s2, %s5796_s2  }
   0xc   : > { %s4277_s18 = sadd.s32 1, %s4141_s24   ;;  %s74_s3 = sadd.s32 1, %s4137_s9 }
   0xd   : > { %5690 = sst [smem:[#allocation12_spill]] %s4277_s18  ;;  %s71_s25 = ssub.s32 %s4141_s24, %s4277_s18 }
   0xe   : > { %p72_p0 = scmp.eq.s32.totalorder %s71_s25, 0  ;;  %p81_p1 = scmp.ne.s32.totalorder %s4137_s9, %s4133_s23 }
   0xf   : > { %p82_p2 = scmp.eq.s32.totalorder %s4141_s24, 0  ;;  %p87_p3 = scmp.ne.s32.totalorder %s4133_s23, %s4129_s2 }
  0x10   : > { %s4287_s26 = scalar_select %p72_p0, %s4137_s9, %s74_s3  }
  0x11   : > { %p83_p4 = por %p82_p2, %p81_p1  ;;  %p88_p5 = scmp.eq.s32.totalorder %s5616_s13, 0 }
  0x12   : > { %5691 = sst [smem:[#allocation13_spill]] %s4287_s26  ;;  %p3814_p6 = scmp.lt.s32.totalorder %s4141_s24, 3 }
  0x13   : > { %p4292_p7 = por %p88_p5, %p87_p3  ;;  %s4297_s28 = sand.u32 1, %s4137_s9  }
  0x14   : > { %s5617_s29 = sshll.u32 %s4297_s28, 7  ;;  %s5618_s0 = sshll.u32 %s4141_s24, 11 }
  0x15   : > { %s5692_s27 = scalar_select %p4292_p7, 1, 0 }
  0x16   : > { %s5693_s21 = sld [smem:[#allocation58_spill]]  ;;  %s562_s22 = scalar_lea.vmem [#allocation5], %s5617_s29 }
  0x17   : > { %s569_s2 = sshll.u32 %s562_s22, 4  ;;  %p4312_p8 = pnand %p3814_p6, %p83_p4  ;;  %s4310_s2 = int_to_ptr.vmem [resolvable:$true] %s569_s2 }
  0x19   : > { %p4049_p11 = pneg %p4312_p8 }
  0x1c   : > { %s4306_s1 = scalar_lea.hbm %s5693_s21, %s5618_s0  ;;  %s4052_s22 = scalar_lea.hbm %s5693_s21, 6144 }
  0x1d   : > { %s4047_s13 = scalar_lea.hbm %s4306_s1, 2048  ;;  %p4053_p0 = scmp.lt.s32.totalorder %s4306_s1, %s5693_s21 }
  0x1e   : > { %p4048_p10 = scmp.ne.s32.totalorder %s4306_s1, %s4047_s13  ;;  %p4054_p1 = scmp.lt.s32.totalorder %s4052_s22, %s4047_s13 }
  0x20   : > { %p4050_p12 = pnand %p4049_p11, %p4048_p10  ;;  %p4055_p2 = por %p4054_p1, %p4053_p0 }
  0x22   : > { %p4051_p13 = pneg %p4050_p12 }
  0x24   : > { %p4056_p3 = pnand %p4055_p2, %p4051_p13 }
  0x26   : > { %4059 = shalt.err (!%p4056_p3)
}
  0x27   : > { %s4060_s3 = scalar_lea.vmem %s4310_s2, 2048  ;;  %s4143_s30 = smov [#allocation5]  }
  0x28   : > { %p4061_p4 = scmp.ne.s32.totalorder %s4310_s2, %s4060_s3  ;;  %s4065_s20 = sshll.u32 %s4143_s30, 4  ;;  %s4066_s20 = int_to_ptr.vmem [resolvable:$false] %s4065_s20 }
  0x29   : > { %s4067_s26 = scalar_lea.vmem %s4066_s20, 4096  ;;  %p4068_p10 = scmp.lt.s32.totalorder %s4310_s2, %s4066_s20 }
  0x2a   : > { %p4063_p5 = pnand %p4061_p4, %p4049_p11  ;;  %p4069_p12 = scmp.lt.s32.totalorder %s4067_s26, %s4060_s3 }
  0x2c   : > { %p4064_p6 = pneg %p4063_p5  ;;  %p4070_p9 = por %p4069_p12, %p4068_p10 }
  0x2e   : > { %p4071_p0 = pnand %p4070_p9, %p4064_p6 }
  0x30   : > { %4074 = shalt.err (!%p4071_p0)
}
  0x31   : > { %s5623_s13 = smov 128   ;;  %s4145_s29 = smov 8  }
  0x32   : > { %s5695_s26 = scalar_lea.sflag [#allocation6], %s4297_s28  ;;  %p607_p9 = scmp.lt.s32.totalorder %s4141_s24, 4 }
  0x33   : > { %3810 = dma.hbm_to_vmem [thread:$0]  (!%p4312_p8), %s4306_s1, 2048, %s4310_s2, %s5695_s26, %s5623_s13, %s5623_s13, %s4145_s29  }
  0x34   : > { %s5696_s0 = sshll.u32 %s4141_s24, 11  ;;  %s5697_s30 = sld [smem:[#allocation59_spill]] }
  0x35   : > { %p5698_p13 = scmp.ge.s32.totalorder %s4141_s24, 1  ;;  %s5700_s9 = sshll.u32 %s4297_s28, 7 }
  0x36   : > { %s583_s18 = scalar_lea.vmem [#allocation7], %s5700_s9  ;;  %s580_s1 = scalar_lea.sflag [#allocation8], %s4297_s28 }
  0x37   : > { %p4357_p1 = pnand %p5698_p13, %p607_p9  ;;  %s590_s19 = sshll.u32 %s583_s18, 4  ;;  %s4363_s19 = int_to_ptr.vmem [resolvable:$true] %s590_s19 }
  0x3a   : > { %s4353_s20 = scalar_lea.hbm %s5697_s30, %s5696_s0  ;;  %s4080_s3 = scalar_lea.hbm %s5697_s30, 6144 }
  0x3b   : > { %s4075_s2 = scalar_lea.hbm %s4353_s20, 2048  ;;  %p4081_p5 = scmp.lt.s32.totalorder %s4353_s20, %s5697_s30 }
  0x3c   : > { %p4076_p2 = scmp.ne.s32.totalorder %s4353_s20, %s4075_s2  ;;  %p4082_p6 = scmp.lt.s32.totalorder %s4080_s3, %s4075_s2 }
  0x3e   : > { %p4078_p3 = pnand %p4076_p2, %p4049_p11  ;;  %p4083_p10 = por %p4082_p6, %p4081_p5 }
  0x40   : > { %p4079_p4 = pneg %p4078_p3 }
  0x42   : > { %p4084_p12 = pnand %p4083_p10, %p4079_p4 }
  0x44   : > { %4087 = shalt.err (!%p4084_p12)
}
  0x45   : > { %s4088_s9 = scalar_lea.vmem %s4363_s19, 2048  ;;  %s4146_s18 = smov [#allocation7]  }
  0x46   : > { %p4089_p0 = scmp.ne.s32.totalorder %s4363_s19, %s4088_s9  ;;  %s4093_s28 = sshll.u32 %s4146_s18, 4  ;;  %s4094_s28 = int_to_ptr.vmem [resolvable:$false] %s4093_s28 }
  0x47   : > { %s4095_s26 = scalar_lea.vmem %s4094_s28, 4096  ;;  %p4096_p2 = scmp.lt.s32.totalorder %s4363_s19, %s4094_s28 }
  0x48   : > { %p4091_p9 = pnand %p4089_p0, %p4049_p11  ;;  %p4097_p3 = scmp.lt.s32.totalorder %s4095_s26, %s4088_s9 }
  0x4a   : > { %p4092_p13 = pneg %p4091_p9  ;;  %p4098_p7 = por %p4097_p3, %p4096_p2 }
  0x4c   : > { %p4099_p5 = pnand %p4098_p7, %p4092_p13 }
  0x4e   : > { %4102 = shalt.err (!%p4099_p5)
}
  0x4f   : > { %s5701_s13 = smov 128   ;;  %611 = sbr.rel (%p4357_p1) target bundleno = 1427 (0x593), region = 96 }
  0x50   : > { %3813 = dma.hbm_to_vmem [thread:$0]  (!%p4312_p8), %s4353_s20, 2048, %s4363_s19, %s580_s1, %s5701_s13, %s5701_s13, %s4145_s29  }
  0x54   : > { %s613_s2 = sand.u32 1, %s4133_s23   ;;  %p5702_p7 = scmp.ne.s32.totalorder %s5692_s27, 0 }
  0x55   : > { %s3419_s0 = sshll.u32 %s613_s2, 7  ;;  %s614_s3 = scalar_lea.sflag [#allocation6], %s613_s2 }
  0x56   : > { %s4394_s22 = scalar_lea.vmem [#allocation5], %s3419_s0 }
  0x57   : > { %4120 = dma.done.wait (%p5702_p7), %s614_s3, 2048  }
  0x58   : > { %4122 = vsyncadd (%p5702_p7), %s614_s3, 4294965248  ;;  %s623_s25 = scalar_lea.sflag [#allocation8], %s613_s2  ;;  %s4400_s9 = scalar_lea.vmem [#allocation7], %s3419_s0 }
  0x59   : > { %4124 = dma.done.wait (%p5702_p7), %s623_s25, 2048  }
  0x5a   : > { %4126 = vsyncadd (%p5702_p7), %s623_s25, 4294965248  ;;  %s5703_s19 = sadd.s32 4294967295, %s4141_s24   ;;  %s5704_s18 = sld [smem:[#allocation57_spill]]  ;;  %v4419_v3 = vld [vmem:[%s5602_s8] ss:$0 sm:$0xff]  ;;  %v920_v4 = vld [vmem:[%s4394_s22] sm:$0xff] }
  0x5b   : > { %s3421_s21 = sshll.u32 %s5703_s19, 4  ;;  %v4425_v5 = vld [vmem:[%s5598_s4] ss:$0 sm:$0xff]  ;;  %s5705_s3 = sld [smem:[#allocation60_spill]]  ;;  %v921_v12 = vld [vmem:[%s4394_s22 + $0x8] sm:$0xff]  ;;  %v922_v24 = vld [vmem:[%s4394_s22 + $0x10] sm:$0xff] }
  0x5c   : > { %p697_p8 = scmp.lt.s32.totalorder %s3421_s21, 47  ;;  %v4428_v6 = vmul.f32 %v4425_v5, %v920_v4  ;;  %v4449_v14 = vld [vmem:[%s5601_s7] ss:$0 sm:$0xff]  ;;  %v4456_v17 = vmul.f32 %v4425_v5, %v921_v12  ;;  %v4480_v30 = vmul.f32 %v4425_v5, %v922_v24  ;;  %v924_v46 = vld [vmem:[%s4394_s22 + $0x20] sm:$0xff]  ;;  %v925_v51 = vld [vmem:[%s4394_s22 + $0x28] sm:$0xff]  ;;  %vm2358_vm2 = vcmask 261120  }
  0x5d   : > { %v923_v31 = vld [vmem:[%s4394_s22 + $0x18] sm:$0xff]  ;;  %v4522_v50 = vmul.f32 %v4425_v5, %v924_v46  ;;  %v4528_v53 = vmul.f32 %v4425_v5, %v925_v51  ;;  %v926_v60 = vld [vmem:[%s4394_s22 + $0x30] sm:$0xff]  ;;  %s5792_s2 = sld [smem:[#allocation61_spill]] }
  0x5e   : > { %s5799_s21 = smov (!%p697_p8, %s3421_s21), 47  ;;  %v959_v13 = vmul.f32 %v4419_v3, %v4428_v6  ;;  %v960_v20 = vmul.f32 %v4419_v3, %v4456_v17  ;;  %v4492_v35 = vmul.f32 %v4425_v5, %v923_v31  ;;  %v961_v38 = vmul.f32 %v4419_v3, %v4480_v30  ;;  %v927_v1 = vld [vmem:[%s4394_s22 + $0x38] sm:$0xff] }
  0x5f   : > { %s4408_s29 = sshll.u32 %s5799_s21, 3  ;;  %v963_v54 = vmul.f32 %v4419_v3, %v4522_v50  ;;  %v964_v56 = vmul.f32 %v4419_v3, %v4528_v53  ;;  %v4550_v0 = vmul.f32 %v4425_v5, %v926_v60  ;;  %v4556_v4 = vmul.f32 %v4425_v5, %v927_v1  ;;  %v933_v60 = vld [vmem:[%s4394_s22 + $0x68] sm:$0xff] }
  0x60   : > { %s4414_s28 = scalar_lea.vmem %s5704_s18, %s4408_s29  ;;  %975 = vadd.xlane.f32.xlu1 %v959_v13  ;;  %v962_v42 = vmul.f32 %v4419_v3, %v4492_v35  ;;  %s5335_s18 = scalar_lea.vmem %s5600_s6, %s4408_s29 }
  0x61   : > { %v719_v7 = vld [vmem:[%s4414_s28] sm:$0xff]  ;;  %v720_v9 = vld [vmem:[%s4414_s28 + $0x8] sm:$0xff]  ;;  %v721_v19 = vld [vmem:[%s4414_s28 + $0x10] sm:$0xff]  ;;  %v966_v12 = vmul.f32 %v4419_v3, %v4556_v4 }
  0x62   : > { %v4434_v8 = vld [vmem:[%s5705_s3] ss:$0 sm:$0xff]  ;;  %v722_v23 = vld [vmem:[%s4414_s28 + $0x18] sm:$0xff]  ;;  %v732_v28 = vld [vmem:[%s4414_s28 + $0x68] sm:$0xff] }
  0x63   : > { %v4438_v10 = vmul.f32 %v4434_v8, %v719_v7  ;;  %v4441_v11 = vmul.f32 %v4434_v8, %v720_v9  ;;  %v4464_v21 = vmul.f32 %v4434_v8, %v721_v19  ;;  %v4473_v26 = vmul.f32 %v4434_v8, %v722_v23  ;;  %v731_v27 = vld [vmem:[%s4414_s28 + $0x60] sm:$0xff]  ;;  %v733_v36 = vld [vmem:[%s4414_s28 + $0x70] sm:$0xff]  ;;  %v734_v37 = vld [vmem:[%s4414_s28 + $0x78] sm:$0xff]  ;;  %s5530_s0 = scalar_lea.vmem %s5792_s2, %s4408_s29 }
  0x64   : > { %v4484_v32 = vmul.f32 %v4434_v8, %v731_v27  ;;  %v4487_v33 = vmul.f32 %v4434_v8, %v732_v28  ;;  %v723_v39 = vld [vmem:[%s4414_s28 + $0x20] sm:$0xff]  ;;  %v4500_v40 = vmul.f32 %v4434_v8, %v733_v36  ;;  %v4503_v41 = vmul.f32 %v4434_v8, %v734_v37  ;;  %v724_v45 = vld [vmem:[%s4414_s28 + $0x28] sm:$0xff]  ;;  %v725_v55 = vld [vmem:[%s4414_s28 + $0x30] sm:$0xff] }
  0x65   : > { %v764_v15 = vmul.f32 %v4419_v3, %v4438_v10  ;;  %v765_v16 = vmul.f32 %v4419_v3, %v4441_v11  ;;  %v818_v18 = vmul.f32 %v4449_v14, %v4438_v10  ;;  %v819_v22 = vmul.f32 %v4449_v14, %v4441_v11  ;;  %v726_v59 = vld [vmem:[%s4414_s28 + $0x38] sm:$0xff]  ;;  %v727_v9 = vld [vmem:[%s4414_s28 + $0x40] sm:$0xff]  ;;  %v729_v31 = vld [vmem:[%s4414_s28 + $0x50] sm:$0xff] }
  0x66   : > { %v820_v25 = vmul.f32 %v4449_v14, %v4464_v21  ;;  %v766_v29 = vmul.f32 %v4419_v3, %v4464_v21  ;;  %v767_v34 = vmul.f32 %v4419_v3, %v4473_v26  ;;  %v4508_v43 = vmul.f32 %v4434_v8, %v723_v39  ;;  %v928_v19 = vld [vmem:[%s4394_s22 + $0x40] sm:$0xff]  ;;  %v930_v39 = vld [vmem:[%s4394_s22 + $0x50] sm:$0xff] }
  0x67   : > { %780 = vadd.xlane.f32.xlu0 %v764_v15  ;;  %782 = vadd.xlane.f32.xlu1 %v765_v16  ;;  %v821_v44 = vmul.f32 %v4449_v14, %v4473_v26  ;;  %v4517_v48 = vmul.f32 %v4434_v8, %v724_v45  ;;  %v4536_v57 = vmul.f32 %v4434_v8, %v725_v55  ;;  %v728_v16 = vld [vmem:[%s4414_s28 + $0x48] sm:$0xff] }
  0x68   : > { %v822_v47 = vmul.f32 %v4449_v14, %v4508_v43  ;;  %v768_v49 = vmul.f32 %v4419_v3, %v4508_v43  ;;  %v4545_v62 = vmul.f32 %v4434_v8, %v726_v59  ;;  %v965_v7 = vmul.f32 %v4419_v3, %v4550_v0  ;;  %v932_v55 = vld [vmem:[%s4394_s22 + $0x60] sm:$0xff] }
  0x69   : > { %v769_v52 = vmul.f32 %v4419_v3, %v4517_v48  ;;  %v823_v58 = vmul.f32 %v4449_v14, %v4517_v48  ;;  %v824_v61 = vmul.f32 %v4449_v14, %v4536_v57  ;;  %v770_v63 = vmul.f32 %v4419_v3, %v4536_v57 }
  0x6a   : > { %v771_v2 = vmul.f32 %v4419_v3, %v4545_v62  ;;  %v4564_v13 = vmul.f32 %v4434_v8, %v727_v9  ;;  %v825_v15 = vmul.f32 %v4449_v14, %v4545_v62  ;;  %v4578_v24 = vmul.f32 %v4425_v5, %v928_v19  ;;  %v934_v9 = vld [vmem:[%s4394_s22 + $0x70] sm:$0xff] }
  0x6b   : > { %834 = vadd.xlane.f32.xlu0 %v818_v18  ;;  %977 = vadd.xlane.f32.xlu1 %v960_v20  ;;  %v4147_v18 = vmov 0   ;;  %v4592_v36 = vmul.f32 %v4434_v8, %v729_v31  ;;  %v4606_v46 = vmul.f32 %v4425_v5, %v930_v39  ;;  %v4626_v59 = vmul.f32 %v4425_v5, %v932_v55 }
  0x6c   : > { %3851 = vset.pattern.permute.xlu1 %v4147_v18  ;;  %3850 = vset.pattern.permute.xlu0 %v4147_v18  ;;  %v826_v20 = vmul.f32 %v4449_v14, %v4564_v13  ;;  %v772_v23 = vmul.f32 %v4419_v3, %v4564_v13  ;;  %v935_v18 = vld [vmem:[%s4394_s22 + $0x78] sm:$0xff]  ;;  %v779_v19 = vmul.f32 %v4419_v3, %v4503_v41 }
  0x6d   : > { %v774_v45 = vmul.f32 %v4419_v3, %v4592_v36  ;;  %v971_v1 = vmul.f32 %v4419_v3, %v4626_v59 }
  0x6f   : > { %836 = vadd.xlane.f32.xlu0 %v819_v22  ;;  %838 = vadd.xlane.f32.xlu1 %v820_v25  ;;  %v4573_v22 = vmul.f32 %v4434_v8, %v728_v16  ;;  %v929_v25 = vld [vmem:[%s4394_s22 + $0x48] sm:$0xff]  ;;  %v4646_v16 = vmul.f32 %v4425_v5, %v934_v9 }
  0x70   : > { %v4584_v28 = vmul.f32 %v4425_v5, %v929_v25 }
  0x71   : > { %v773_v27 = vmul.f32 %v4419_v3, %v4573_v22  ;;  %v827_v37 = vmul.f32 %v4449_v14, %v4573_v22 }
  0x73   : > { %784 = vadd.xlane.f32.xlu0 %v766_v29  ;;  %786 = vadd.xlane.f32.xlu1 %v767_v34  ;;  %v967_v29 = vmul.f32 %v4419_v3, %v4578_v24  ;;  %v968_v34 = vmul.f32 %v4419_v3, %v4584_v28 }
  0x77   : > { %979 = vadd.xlane.f32.xlu0 %v961_v38  ;;  %981 = vadd.xlane.f32.xlu1 %v962_v42  ;;  %v730_v38 = vld [vmem:[%s4414_s28 + $0x58] sm:$0xff]  ;;  %v828_v42 = vmul.f32 %v4449_v14, %v4592_v36 }
  0x7b   : > { %840 = vadd.xlane.f32.xlu0 %v821_v44  ;;  %842 = vadd.xlane.f32.xlu1 %v822_v47  ;;  %v4601_v44 = vmul.f32 %v4434_v8, %v730_v38  ;;  %v931_v47 = vld [vmem:[%s4394_s22 + $0x58] sm:$0xff]  ;;  %v969_v8 = vmul.f32 %v4419_v3, %v4606_v46 }
  0x7c   : > { %v4612_v51 = vmul.f32 %v4425_v5, %v931_v47 }
  0x7f   : > { %788 = vadd.xlane.f32.xlu0 %v768_v49  ;;  %790 = vadd.xlane.f32.xlu1 %v769_v52  ;;  %v775_v49 = vmul.f32 %v4419_v3, %v4601_v44  ;;  %v970_v52 = vmul.f32 %v4419_v3, %v4612_v51 }
  0x83   : > { %983 = vadd.xlane.f32.xlu0 %v963_v54  ;;  %985 = vadd.xlane.f32.xlu1 %v964_v56  ;;  %v829_v54 = vmul.f32 %v4449_v14, %v4601_v44  ;;  %v830_v56 = vmul.f32 %v4449_v14, %v4484_v32 }
  0x87   : > { %844 = vadd.xlane.f32.xlu0 %v823_v58  ;;  %846 = vadd.xlane.f32.xlu1 %v824_v61  ;;  %v776_v58 = vmul.f32 %v4419_v3, %v4484_v32  ;;  %v777_v61 = vmul.f32 %v4419_v3, %v4487_v33 }
  0x8b   : > { %792 = vadd.xlane.f32.xlu0 %v770_v63  ;;  %794 = vadd.xlane.f32.xlu1 %v771_v2  ;;  %v4632_v63 = vmul.f32 %v4425_v5, %v933_v60 }
  0x8d   : > { %v972_v2 = vmul.f32 %v4419_v3, %v4632_v63 }
  0x8f   : > { %987 = vadd.xlane.f32.xlu0 %v965_v7  ;;  %989 = vadd.xlane.f32.xlu1 %v966_v12  ;;  %v831_v7 = vmul.f32 %v4449_v14, %v4487_v33  ;;  %v832_v12 = vmul.f32 %v4449_v14, %v4500_v40 }
  0x93   : > { %848 = vadd.xlane.f32.xlu0 %v825_v15  ;;  %850 = vadd.xlane.f32.xlu1 %v826_v20  ;;  %v778_v15 = vmul.f32 %v4419_v3, %v4500_v40  ;;  %v4652_v20 = vmul.f32 %v4425_v5, %v935_v18 }
  0x95   : > { %v974_v25 = vmul.f32 %v4419_v3, %v4652_v20 }
  0x97   : > { %796 = vadd.xlane.f32.xlu0 %v772_v23  ;;  %798 = vadd.xlane.f32.xlu1 %v773_v27  ;;  %v973_v23 = vmul.f32 %v4419_v3, %v4646_v16  ;;  %v833_v27 = vmul.f32 %v4449_v14, %v4503_v41 }
  0x9b   : > { %991 = vadd.xlane.f32.xlu0 %v967_v29  ;;  %993 = vadd.xlane.f32.xlu1 %v968_v34 }
  0x9f   : > { %852 = vadd.xlane.f32.xlu0 %v827_v37  ;;  %854 = vadd.xlane.f32.xlu1 %v828_v42  ;;  %v4660_v37 = vld [vmem:[#allocation2] ss:$0 sm:$0xff] }
  0xa3   : > { %800 = vadd.xlane.f32.xlu0 %v774_v45  ;;  %802 = vadd.xlane.f32.xlu1 %v775_v49 }
  0xa7   : > { %995 = vadd.xlane.f32.xlu0 %v969_v8  ;;  %997 = vadd.xlane.f32.xlu1 %v970_v52 }
  0xab   : > { %856 = vadd.xlane.f32.xlu0 %v829_v54  ;;  %858 = vadd.xlane.f32.xlu1 %v830_v56 }
  0xaf   : > { %804 = vadd.xlane.f32.xlu0 %v776_v58  ;;  %806 = vadd.xlane.f32.xlu1 %v777_v61 }
  0xb3   : > { %999 = vadd.xlane.f32.xlu0 %v971_v1  ;;  %1001 = vadd.xlane.f32.xlu1 %v972_v2 }
  0xb7   : > { %860 = vadd.xlane.f32.xlu0 %v831_v7  ;;  %862 = vadd.xlane.f32.xlu1 %v832_v12 }
  0xbb   : > { %808 = vadd.xlane.f32.xlu0 %v778_v15  ;;  %810 = vadd.xlane.f32.xlu1 %v779_v19 }
  0xbf   : > { %1003 = vadd.xlane.f32.xlu0 %v973_v23  ;;  %1005 = vadd.xlane.f32.xlu1 %v974_v25 }
  0xc3   : > { %864 = vadd.xlane.f32.xlu0 %v833_v27 }
  0xe9   : > { %v976_v29 = vpop.xlane.xlu1 %975 }
  0xf0   : > { %v781_v31 = vpop.xlane.xlu0 %780  ;;  %v783_v34 = vpop.xlane.xlu1 %782 }
  0xf4   : > { %v835_v5 = vpop.xlane.xlu0 %834  ;;  %v978_v47 = vpop.xlane.xlu1 %977 }
  0xf5   : > { %v866_v38 = vadd.f32 %v835_v5, %v781_v31  ;;  %v1024_v39 = vadd.f32 %v976_v29, %v835_v5 }
  0xf7   : > { %v888_v42 = vadd.f32 %v4660_v37, %v866_v38  ;;  %v1040_v45 = vadd.f32 %v4660_v37, %v1024_v39 }
  0xf8   : > { %v837_v49 = vpop.xlane.xlu0 %836  ;;  %v839_v60 = vpop.xlane.xlu1 %838 }
  0xf9   : > { %v904_v8 = vmax.f32 %v888_v42, 0.0  ;;  %v1056_v52 = vmax.f32 %v1040_v45, 0.0  ;;  %v867_v54 = vadd.f32 %v837_v49, %v783_v34  ;;  %v1025_v14 = vadd.f32 %v978_v47, %v837_v49 }
  0xfb   : > { %v4664_v55 = vmax.f32 %v904_v8, %v1056_v52  ;;  %v889_v56 = vadd.f32 %v4660_v37, %v867_v54  ;;  %v1041_v58 = vadd.f32 %v4660_v37, %v1025_v14 }
  0xfc   : > { %v785_v61 = vpop.xlane.xlu0 %784  ;;  %v787_v23 = vpop.xlane.xlu1 %786 }
  0xfd   : > { %5706 = vst [vmem:[#allocation14_spill] sm:$0xff] %v4664_v55  ;;  %v1088_v1 = vsub.f32 %v904_v8, %v4664_v55  ;;  %v1136_v2 = vsub.f32 %v1056_v52, %v4664_v55  ;;  %v905_v7 = vmax.f32 %v889_v56, 0.0  ;;  %v1057_v9 = vmax.f32 %v1041_v58, 0.0 }
  0xfe   : > { %v868_v12 = vadd.f32 %v839_v60, %v785_v61 }
  0xff   : > { %v1104_v15 = vmul.f32 1.442695, %v1088_v1  ;;  %v1152_v18 = vmul.f32 1.442695, %v1136_v2  ;;  %v4670_v19 = vmax.f32 %v905_v7, %v1057_v9 }
 0x100   : > { %v890_v25 = vadd.f32 %v4660_v37, %v868_v12  ;;  %v980_v27 = vpop.xlane.xlu0 %979  ;;  %v982_v42 = vpop.xlane.xlu1 %981 }
 0x101   : > { %5707 = vst [vmem:[#allocation15_spill] sm:$0xff] %v4670_v19  ;;  %3852 = vpow2.f32 %v1104_v15  ;;  %v1089_v29 = vsub.f32 %v905_v7, %v4670_v19  ;;  %v1137_v31 = vsub.f32 %v1057_v9, %v4670_v19  ;;  %v1026_v34 = vadd.f32 %v980_v27, %v839_v60 }
 0x102   : > { %3854 = vpow2.f32 %v1152_v18  ;;  %v906_v45 = vmax.f32 %v890_v25, 0.0 }
 0x103   : > { %v1106_v5 = vmul.f32 1.442695, %v1089_v29  ;;  %v1154_v38 = vmul.f32 1.442695, %v1137_v31  ;;  %v1042_v39 = vadd.f32 %v4660_v37, %v1026_v34 }
 0x104   : > { %v841_v47 = vpop.xlane.xlu0 %840  ;;  %v843_v58 = vpop.xlane.xlu1 %842 }
 0x105   : > { %3856 = vpow2.f32 %v1106_v5  ;;  %v1058_v49 = vmax.f32 %v1042_v39, 0.0  ;;  %v869_v8 = vadd.f32 %v841_v47, %v787_v23  ;;  %v1027_v52 = vadd.f32 %v982_v42, %v841_v47 }
 0x106   : > { %3858 = vpow2.f32 %v1154_v38 }
 0x107   : > { %v4676_v54 = vmax.f32 %v906_v45, %v1058_v49  ;;  %v891_v14 = vadd.f32 %v4660_v37, %v869_v8  ;;  %v1043_v56 = vadd.f32 %v4660_v37, %v1027_v52 }
 0x108   : > { %v789_v60 = vpop.xlane.xlu0 %788  ;;  %v791_v23 = vpop.xlane.xlu1 %790 }
 0x109   : > { %5708 = vst [vmem:[#allocation16_spill] sm:$0xff] %v4676_v54  ;;  %v1090_v61 = vsub.f32 %v906_v45, %v4676_v54  ;;  %v1138_v1 = vsub.f32 %v1058_v49, %v4676_v54  ;;  %v907_v2 = vmax.f32 %v891_v14, 0.0  ;;  %v1059_v7 = vmax.f32 %v1043_v56, 0.0 }
 0x10a   : > { %v870_v9 = vadd.f32 %v843_v58, %v789_v60 }
 0x10b   : > { %v1108_v12 = vmul.f32 1.442695, %v1090_v61  ;;  %v1156_v15 = vmul.f32 1.442695, %v1138_v1  ;;  %v4682_v18 = vmax.f32 %v907_v2, %v1059_v7 }
 0x10c   : > { %v892_v25 = vadd.f32 %v4660_v37, %v870_v9  ;;  %v984_v27 = vpop.xlane.xlu0 %983  ;;  %v986_v47 = vpop.xlane.xlu1 %985 }
 0x10d   : > { %5709 = vst [vmem:[#allocation17_spill] sm:$0xff] %v4682_v18  ;;  %3860 = vpow2.f32 %v1108_v12  ;;  %v1091_v29 = vsub.f32 %v907_v2, %v4682_v18  ;;  %v1139_v31 = vsub.f32 %v1059_v7, %v4682_v18  ;;  %v1028_v34 = vadd.f32 %v984_v27, %v843_v58 }
 0x10e   : > { %v3853_v5 = vpop.eup %3852  ;;  %3862 = vpow2.f32 %v1156_v15  ;;  %v908_v49 = vmax.f32 %v892_v25, 0.0 }
 0x10f   : > { %v3855_v38 = vpop.eup %3854  ;;  %v1110_v39 = vmul.f32 1.442695, %v1091_v29  ;;  %v1158_v42 = vmul.f32 1.442695, %v1139_v31  ;;  %v1044_v45 = vadd.f32 %v4660_v37, %v1028_v34  ;;  %1202 = vperm.xlu0 %3850, %v3853_v5  }
 0x110   : > { %1298 = vperm.xlu1 %3851, %v3855_v38   ;;  %v845_v8 = vpop.xlane.xlu0 %844  ;;  %v4688_v52 = vadd.f32 %v3855_v38, %v3853_v5  ;;  %v847_v9 = vpop.xlane.xlu1 %846 }
 0x111   : > { %3864 = vpow2.f32 %v1110_v39  ;;  %v1060_v14 = vmax.f32 %v1044_v45, 0.0  ;;  %v871_v56 = vadd.f32 %v845_v8, %v791_v23  ;;  %v1029_v60 = vadd.f32 %v986_v47, %v845_v8 }
 0x112   : > { %v3857_v61 = vpop.eup %3856  ;;  %3866 = vpow2.f32 %v1158_v42 }
 0x113   : > { %v3859_v58 = vpop.eup %3858  ;;  %v4690_v1 = vmax.f32 %v908_v49, %v1060_v14  ;;  %v893_v2 = vadd.f32 %v4660_v37, %v871_v56  ;;  %v1045_v7 = vadd.f32 %v4660_v37, %v1029_v60 }
 0x114   : > { %1207 = vperm.xlu1 %3851, %v3857_v61   ;;  %v793_v12 = vpop.xlane.xlu0 %792  ;;  %v4694_v15 = vadd.f32 %v3859_v58, %v3857_v61  ;;  %v795_v39 = vpop.xlane.xlu1 %794 }
 0x115   : > { %5710 = vst [vmem:[#allocation18_spill] sm:$0xff] %v4690_v1  ;;  %v1092_v25 = vsub.f32 %v908_v49, %v4690_v1  ;;  %v1140_v27 = vsub.f32 %v1060_v14, %v4690_v1  ;;  %v909_v23 = vmax.f32 %v893_v2, 0.0  ;;  %v1061_v29 = vmax.f32 %v1045_v7, 0.0 }
 0x116   : > { %v872_v31 = vadd.f32 %v847_v9, %v793_v12 }
 0x117   : > { %v1112_v34 = vmul.f32 1.442695, %v1092_v25  ;;  %v1160_v5 = vmul.f32 1.442695, %v1140_v27  ;;  %v4698_v38 = vmax.f32 %v909_v23, %v1061_v29 }
 0x118   : > { %v894_v42 = vadd.f32 %v4660_v37, %v872_v31  ;;  %1303 = vperm.xlu1 %3851, %v3859_v58   ;;  %v988_v45 = vpop.xlane.xlu0 %987  ;;  %v990_v7 = vpop.xlane.xlu1 %989 }
 0x119   : > { %5711 = vst [vmem:[#allocation19_spill] sm:$0xff] %v4698_v38  ;;  %3868 = vpow2.f32 %v1112_v34  ;;  %v1093_v47 = vsub.f32 %v909_v23, %v4698_v38  ;;  %v1141_v8 = vsub.f32 %v1061_v29, %v4698_v38  ;;  %v1030_v49 = vadd.f32 %v988_v45, %v847_v9 }
 0x11a   : > { %v3861_v56 = vpop.eup %3860  ;;  %3870 = vpow2.f32 %v1160_v5  ;;  %v910_v12 = vmax.f32 %v894_v42, 0.0 }
 0x11b   : > { %v3863_v14 = vpop.eup %3862  ;;  %v1114_v60 = vmul.f32 1.442695, %v1093_v47  ;;  %v1162_v61 = vmul.f32 1.442695, %v1141_v8  ;;  %v1046_v2 = vadd.f32 %v4660_v37, %v1030_v49 }
 0x11c   : > { %1212 = vperm.xlu1 %3851, %v3861_v56   ;;  %v849_v25 = vpop.xlane.xlu0 %848  ;;  %v4704_v27 = vadd.f32 %v3863_v14, %v3861_v56  ;;  %v851_v47 = vpop.xlane.xlu1 %850 }
 0x11d   : > { %3872 = vpow2.f32 %v1114_v60  ;;  %v1062_v58 = vmax.f32 %v1046_v2, 0.0  ;;  %v873_v31 = vadd.f32 %v849_v25, %v795_v39  ;;  %v1031_v23 = vadd.f32 %v990_v7, %v849_v25 }
 0x11e   : > { %v3865_v34 = vpop.eup %3864  ;;  %3874 = vpow2.f32 %v1162_v61 }
 0x11f   : > { %v3867_v9 = vpop.eup %3866  ;;  %v4706_v29 = vmax.f32 %v910_v12, %v1062_v58  ;;  %v895_v5 = vadd.f32 %v4660_v37, %v873_v31  ;;  %v1047_v45 = vadd.f32 %v4660_v37, %v1031_v23 }
 0x120   : > { %1308 = vperm.xlu1 %3851, %v3863_v14   ;;  %v797_v42 = vpop.xlane.xlu0 %796  ;;  %v4710_v8 = vadd.f32 %v3867_v9, %v3865_v34  ;;  %v799_v38 = vpop.xlane.xlu1 %798 }
 0x121   : > { %5712 = vst [vmem:[#allocation20_spill] sm:$0xff] %v4706_v29  ;;  %v1094_v49 = vsub.f32 %v910_v12, %v4706_v29  ;;  %v1142_v56 = vsub.f32 %v1062_v58, %v4706_v29  ;;  %v911_v39 = vmax.f32 %v895_v5, 0.0  ;;  %v1063_v60 = vmax.f32 %v1047_v45, 0.0 }
 0x122   : > { %v874_v2 = vadd.f32 %v851_v47, %v797_v42 }
 0x123   : > { %v1116_v61 = vmul.f32 1.442695, %v1094_v49  ;;  %v1164_v7 = vmul.f32 1.442695, %v1142_v56  ;;  %v4714_v25 = vmax.f32 %v911_v39, %v1063_v60 }
 0x124   : > { %v896_v31 = vadd.f32 %v4660_v37, %v874_v2  ;;  %1217 = vperm.xlu1 %3851, %v3865_v34   ;;  %v992_v23 = vpop.xlane.xlu0 %991  ;;  %v994_v49 = vpop.xlane.xlu1 %993 }
 0x125   : > { %5713 = vst [vmem:[#allocation21_spill] sm:$0xff] %v4714_v25  ;;  %3876 = vpow2.f32 %v1116_v61  ;;  %v1095_v14 = vsub.f32 %v911_v39, %v4714_v25  ;;  %v1143_v1 = vsub.f32 %v1063_v60, %v4714_v25  ;;  %v1032_v12 = vadd.f32 %v992_v23, %v851_v47 }
 0x126   : > { %v3869_v18 = vpop.eup %3868  ;;  %3878 = vpow2.f32 %v1164_v7  ;;  %v912_v56 = vmax.f32 %v896_v31, 0.0 }
 0x127   : > { %v3871_v58 = vpop.eup %3870  ;;  %v1118_v5 = vmul.f32 1.442695, %v1095_v14  ;;  %v1166_v45 = vmul.f32 1.442695, %v1143_v1  ;;  %v1048_v42 = vadd.f32 %v4660_v37, %v1032_v12 }
 0x128   : > { %1313 = vperm.xlu1 %3851, %v3867_v9   ;;  %1318 = vperm.xlu0 %3850, %v3871_v58   ;;  %v853_v2 = vpop.xlane.xlu0 %852  ;;  %v4720_v34 = vadd.f32 %v3871_v58, %v3869_v18  ;;  %v855_v14 = vpop.xlane.xlu1 %854 }
 0x129   : > { %3880 = vpow2.f32 %v1118_v5  ;;  %v1064_v61 = vmax.f32 %v1048_v42, 0.0  ;;  %v875_v39 = vadd.f32 %v853_v2, %v799_v38  ;;  %v1033_v29 = vadd.f32 %v994_v49, %v853_v2 }
 0x12a   : > { %v3873_v60 = vpop.eup %3872  ;;  %3882 = vpow2.f32 %v1166_v45 }
 0x12b   : > { %v3875_v47 = vpop.eup %3874  ;;  %v4722_v7 = vmax.f32 %v912_v56, %v1064_v61  ;;  %v897_v1 = vadd.f32 %v4660_v37, %v875_v39  ;;  %v1049_v23 = vadd.f32 %v4660_v37, %v1033_v29 }
 0x12c   : > { %1222 = vperm.xlu1 %3851, %v3869_v18   ;;  %1323 = vperm.xlu0 %3850, %v3875_v47   ;;  %v801_v9 = vpop.xlane.xlu0 %800  ;;  %v4726_v31 = vadd.f32 %v3875_v47, %v3873_v60  ;;  %v803_v39 = vpop.xlane.xlu1 %802 }
 0x12d   : > { %5714 = vst [vmem:[#allocation22_spill] sm:$0xff] %v4722_v7  ;;  %v1096_v12 = vsub.f32 %v912_v56, %v4722_v7  ;;  %v1144_v38 = vsub.f32 %v1064_v61, %v4722_v7  ;;  %v913_v58 = vmax.f32 %v897_v1, 0.0  ;;  %v1065_v5 = vmax.f32 %v1049_v23, 0.0 }
 0x12e   : > { %v876_v45 = vadd.f32 %v855_v14, %v801_v9 }
 0x12f   : > { %v1120_v42 = vmul.f32 1.442695, %v1096_v12  ;;  %v1168_v49 = vmul.f32 1.442695, %v1144_v38  ;;  %v4730_v2 = vmax.f32 %v913_v58, %v1065_v5 }
 0x130   : > { %v898_v29 = vadd.f32 %v4660_v37, %v876_v45  ;;  %1227 = vperm.xlu1 %3851, %v3873_v60   ;;  %v996_v18 = vpop.xlane.xlu0 %995  ;;  %v998_v12 = vpop.xlane.xlu1 %997 }
 0x131   : > { %5715 = vst [vmem:[#allocation23_spill] sm:$0xff] %v4730_v2  ;;  %3884 = vpow2.f32 %v1120_v42  ;;  %v1097_v47 = vsub.f32 %v913_v58, %v4730_v2  ;;  %v1145_v25 = vsub.f32 %v1065_v5, %v4730_v2  ;;  %v1034_v56 = vadd.f32 %v996_v18, %v855_v14 }
 0x132   : > { %v3877_v54 = vpop.eup %3876  ;;  %3886 = vpow2.f32 %v1168_v49  ;;  %v914_v38 = vmax.f32 %v898_v29, 0.0 }
 0x133   : > { %v3879_v61 = vpop.eup %3878  ;;  %v1122_v1 = vmul.f32 1.442695, %v1097_v47  ;;  %v1170_v23 = vmul.f32 1.442695, %v1145_v25  ;;  %v1050_v9 = vadd.f32 %v4660_v37, %v1034_v56 }
 0x134   : > { %1328 = vperm.xlu0 %3850, %v3879_v61   ;;  %1232 = vperm.xlu1 %3851, %v3877_v54   ;;  %v857_v45 = vpop.xlane.xlu0 %856  ;;  %v4736_v60 = vadd.f32 %v3879_v61, %v3877_v54  ;;  %v859_v47 = vpop.xlane.xlu1 %858 }
 0x135   : > { %3888 = vpow2.f32 %v1122_v1  ;;  %v1066_v42 = vmax.f32 %v1050_v9, 0.0  ;;  %v877_v58 = vadd.f32 %v857_v45, %v803_v39  ;;  %v1035_v7 = vadd.f32 %v998_v12, %v857_v45 }
 0x136   : > { %v3881_v5 = vpop.eup %3880  ;;  %3890 = vpow2.f32 %v1170_v23 }
 0x137   : > { %v3883_v14 = vpop.eup %3882  ;;  %v4738_v49 = vmax.f32 %v914_v38, %v1066_v42  ;;  %v899_v25 = vadd.f32 %v4660_v37, %v877_v58  ;;  %v1051_v18 = vadd.f32 %v4660_v37, %v1035_v7 }
 0x138   : > { %1333 = vperm.xlu0 %3850, %v3883_v14   ;;  %1237 = vperm.xlu1 %3851, %v3881_v5   ;;  %v805_v29 = vpop.xlane.xlu0 %804  ;;  %v4742_v56 = vadd.f32 %v3883_v14, %v3881_v5  ;;  %v807_v58 = vpop.xlane.xlu1 %806 }
 0x139   : > { %5716 = vst [vmem:[#allocation24_spill] sm:$0xff] %v4738_v49  ;;  %v1098_v54 = vsub.f32 %v914_v38, %v4738_v49  ;;  %v1146_v39 = vsub.f32 %v1066_v42, %v4738_v49  ;;  %v915_v61 = vmax.f32 %v899_v25, 0.0  ;;  %v1067_v1 = vmax.f32 %v1051_v18, 0.0 }
 0x13a   : > { %v878_v23 = vadd.f32 %v859_v47, %v805_v29 }
 0x13b   : > { %v1124_v9 = vmul.f32 1.442695, %v1098_v54  ;;  %v1172_v12 = vmul.f32 1.442695, %v1146_v39  ;;  %v4746_v45 = vmax.f32 %v915_v61, %v1067_v1 }
 0x13c   : > { %v900_v7 = vadd.f32 %v4660_v37, %v878_v23  ;;  %v1000_v2 = vpop.xlane.xlu0 %999  ;;  %v1002_v54 = vpop.xlane.xlu1 %1001 }
 0x13d   : > { %5717 = vst [vmem:[#allocation25_spill] sm:$0xff] %v4746_v45  ;;  %3892 = vpow2.f32 %v1124_v9  ;;  %v1099_v55 = vsub.f32 %v915_v61, %v4746_v45  ;;  %v1147_v5 = vsub.f32 %v1067_v1, %v4746_v45  ;;  %v1036_v14 = vadd.f32 %v1000_v2, %v859_v47 }
 0x13e   : > { %v3885_v38 = vpop.eup %3884  ;;  %3894 = vpow2.f32 %v1172_v12  ;;  %v916_v39 = vmax.f32 %v900_v7, 0.0 }
 0x13f   : > { %v3887_v42 = vpop.eup %3886  ;;  %v1126_v25 = vmul.f32 1.442695, %v1099_v55  ;;  %v1174_v18 = vmul.f32 1.442695, %v1147_v5  ;;  %v1052_v29 = vadd.f32 %v4660_v37, %v1036_v14  ;;  %1242 = vperm.xlu1 %3851, %v3885_v38  }
 0x140   : > { %1338 = vperm.xlu0 %3850, %v3887_v42   ;;  %v861_v49 = vpop.xlane.xlu0 %860  ;;  %v4752_v23 = vadd.f32 %v3887_v42, %v3885_v38  ;;  %v863_v5 = vpop.xlane.xlu1 %862 }
 0x141   : > { %3896 = vpow2.f32 %v1126_v25  ;;  %v1068_v9 = vmax.f32 %v1052_v29, 0.0  ;;  %v879_v61 = vadd.f32 %v861_v49, %v807_v58  ;;  %v1037_v19 = vadd.f32 %v1002_v54, %v861_v49 }
 0x142   : > { %5718 = vst [vmem:[#allocation26_spill] sm:$0xff] %v4752_v23  ;;  %v3889_v1 = vpop.eup %3888  ;;  %3898 = vpow2.f32 %v1174_v18 }
 0x143   : > { %v3891_v2 = vpop.eup %3890  ;;  %v4754_v47 = vmax.f32 %v916_v39, %v1068_v9  ;;  %v901_v55 = vadd.f32 %v4660_v37, %v879_v61  ;;  %v1053_v12 = vadd.f32 %v4660_v37, %v1037_v19  ;;  %1247 = vperm.xlu1 %3851, %v3889_v1  }
 0x144   : > { %1343 = vperm.xlu0 %3850, %v3891_v2   ;;  %v809_v7 = vpop.xlane.xlu0 %808  ;;  %v4758_v14 = vadd.f32 %v3891_v2, %v3889_v1  ;;  %v811_v61 = vpop.xlane.xlu1 %810 }
 0x145   : > { %5719 = vst [vmem:[#allocation27_spill] sm:$0xff] %v4754_v47  ;;  %v1100_v38 = vsub.f32 %v916_v39, %v4754_v47  ;;  %v1148_v58 = vsub.f32 %v1068_v9, %v4754_v47  ;;  %v917_v49 = vmax.f32 %v901_v55, 0.0  ;;  %v1069_v42 = vmax.f32 %v1053_v12, 0.0 }
 0x146   : > { %5720 = vst [vmem:[#allocation28_spill] sm:$0xff] %v4758_v14  ;;  %v880_v25 = vadd.f32 %v863_v5, %v809_v7 }
 0x147   : > { %v1128_v18 = vmul.f32 1.442695, %v1100_v38  ;;  %v1176_v29 = vmul.f32 1.442695, %v1148_v58  ;;  %v4762_v54 = vmax.f32 %v917_v49, %v1069_v42 }
 0x148   : > { %v902_v19 = vadd.f32 %v4660_v37, %v880_v25  ;;  %v1004_v45 = vpop.xlane.xlu0 %1003  ;;  %v1006_v38 = vpop.xlane.xlu1 %1005 }
 0x149   : > { %5721 = vst [vmem:[#allocation29_spill] sm:$0xff] %v4762_v54  ;;  %3900 = vpow2.f32 %v1128_v18  ;;  %v1101_v23 = vsub.f32 %v917_v49, %v4762_v54  ;;  %v1149_v1 = vsub.f32 %v1069_v42, %v4762_v54  ;;  %v1038_v2 = vadd.f32 %v1004_v45, %v863_v5 }
 0x14a   : > { %v3893_v39 = vpop.eup %3892  ;;  %3902 = vpow2.f32 %v1176_v29  ;;  %v918_v58 = vmax.f32 %v902_v19, 0.0 }
 0x14b   : > { %v3895_v9 = vpop.eup %3894  ;;  %v1130_v55 = vmul.f32 1.442695, %v1101_v23  ;;  %v1178_v12 = vmul.f32 1.442695, %v1149_v1  ;;  %v1054_v7 = vadd.f32 %v4660_v37, %v1038_v2  ;;  %1252 = vperm.xlu1 %3851, %v3893_v39  }
 0x14c   : > { %1348 = vperm.xlu0 %3850, %v3895_v9   ;;  %v865_v47 = vpop.xlane.xlu0 %864  ;;  %v4768_v25 = vadd.f32 %v3895_v9, %v3893_v39 }
 0x14d   : > { %3904 = vpow2.f32 %v1130_v55  ;;  %v1070_v18 = vmax.f32 %v1054_v7, 0.0  ;;  %v881_v49 = vadd.f32 %v865_v47, %v811_v61  ;;  %v1039_v14 = vadd.f32 %v1006_v38, %v865_v47 }
 0x14e   : > { %v3897_v42 = vpop.eup %3896  ;;  %3906 = vpow2.f32 %v1178_v12 }
 0x14f   : > { %v3899_v45 = vpop.eup %3898  ;;  %v4770_v5 = vmax.f32 %v918_v58, %v1070_v18  ;;  %v903_v23 = vadd.f32 %v4660_v37, %v881_v49  ;;  %v1055_v29 = vadd.f32 %v4660_v37, %v1039_v14  ;;  %1257 = vperm.xlu1 %3851, %v3897_v42  }
 0x150   : > { %1353 = vperm.xlu0 %3850, %v3899_v45   ;;  %v4774_v19 = vadd.f32 %v3899_v45, %v3897_v42 }
 0x151   : > { %5722 = vst [vmem:[#allocation30_spill] sm:$0xff] %v4770_v5  ;;  %v1102_v1 = vsub.f32 %v918_v58, %v4770_v5  ;;  %v1150_v2 = vsub.f32 %v1070_v18, %v4770_v5  ;;  %v919_v39 = vmax.f32 %v903_v23, 0.0  ;;  %v1071_v61 = vmax.f32 %v1055_v29, 0.0 }
 0x153   : > { %v1132_v47 = vmul.f32 1.442695, %v1102_v1  ;;  %v1180_v9 = vmul.f32 1.442695, %v1150_v2  ;;  %v4778_v55 = vmax.f32 %v919_v39, %v1071_v61 }
 0x155   : > { %5723 = vst [vmem:[#allocation31_spill] sm:$0xff] %v4778_v55  ;;  %3908 = vpow2.f32 %v1132_v47  ;;  %v1103_v12 = vsub.f32 %v919_v39, %v4778_v55  ;;  %v1151_v7 = vsub.f32 %v1071_v61, %v4778_v55  ;;  %v1408_v47 = vld [vmem:[%s4400_s9] sm:$0xff] }
 0x156   : > { %v3901_v37 = vpop.eup %3900  ;;  %3910 = vpow2.f32 %v1180_v9  ;;  %v4794_v9 = vld [vmem:[%s5599_s5] ss:$0 sm:$0xff] }
 0x157   : > { %v3903_v14 = vpop.eup %3902  ;;  %v1134_v38 = vmul.f32 1.442695, %v1103_v12  ;;  %v1182_v49 = vmul.f32 1.442695, %v1151_v7  ;;  %1262 = vperm.xlu1 %3851, %v3901_v37   ;;  %v4797_v12 = vmul.f32 %v4794_v9, %v1408_v47  ;;  %v1410_v7 = vld [vmem:[%s4400_s9 + $0x10] sm:$0xff] }
 0x158   : > { %1358 = vperm.xlu0 %3850, %v3903_v14   ;;  %v4782_v58 = vadd.f32 %v3903_v14, %v3901_v37  ;;  %v1409_v37 = vld [vmem:[%s4400_s9 + $0x8] sm:$0xff]  ;;  %v1414_v47 = vld [vmem:[%s4400_s9 + $0x30] sm:$0xff] }
 0x159   : > { %3912 = vpow2.f32 %v1134_v38  ;;  %5726 = vst [vmem:[#allocation34_spill] sm:$0xff] %v4797_v12  ;;  %v1447_v14 = vmul.f32 %v4419_v3, %v4797_v12  ;;  %v4804_v38 = vmul.f32 %v4794_v9, %v1410_v7  ;;  %v1413_v7 = vld [vmem:[%s4400_s9 + $0x28] sm:$0xff]  ;;  %v1415_v12 = vld [vmem:[%s4400_s9 + $0x38] sm:$0xff] }
 0x15a   : > { %v3905_v18 = vpop.eup %3904  ;;  %3914 = vpow2.f32 %v1182_v49  ;;  %v4807_v49 = vmul.f32 %v4794_v9, %v1409_v37 }
 0x15b   : > { %v3907_v42 = vpop.eup %3906  ;;  %1267 = vperm.xlu1 %3851, %v3905_v18   ;;  %5727 = vst [vmem:[#allocation35_spill] sm:$0xff] %v4804_v38  ;;  %3916 = vrcp.f32 %v4694_v15 }
 0x15c   : > { %1363 = vperm.xlu0 %3850, %v3907_v42   ;;  %v4784_v45 = vadd.f32 %v3907_v42, %v3905_v18  ;;  %5728 = vst [vmem:[#allocation36_spill] sm:$0xff] %v4807_v49  ;;  %v1412_v18 = vld [vmem:[%s4400_s9 + $0x20] sm:$0xff]  ;;  %v1411_v42 = vld [vmem:[%s4400_s9 + $0x18] sm:$0xff]  ;;  %3918 = vrcp.f32 %v4688_v52 }
 0x15d   : > { %3920 = vrcp.f32 %v4704_v27 }
 0x15e   : > { %3922 = vrcp.f32 %v4710_v8 }
 0x15f   : > { %3924 = vrcp.f32 %v4720_v34 }
 0x160   : > { %3926 = vrcp.f32 %v4726_v31 }
 0x161   : > { %3928 = vrcp.f32 %v4736_v60 }
 0x162   : > { %v3909_v23 = vpop.eup %3908  ;;  %3930 = vrcp.f32 %v4742_v56 }
 0x163   : > { %v3911_v29 = vpop.eup %3910  ;;  %1272 = vperm.xlu1 %3851, %v3909_v23  }
 0x164   : > { %1368 = vperm.xlu0 %3850, %v3911_v29   ;;  %v4786_v1 = vadd.f32 %v3911_v29, %v3909_v23  ;;  %v4812_v23 = vmul.f32 %v4794_v9, %v1412_v18  ;;  %v4817_v29 = vld [vmem:[%s5602_s8] ss:$0 sm:$0xff] }
 0x165   : > { %v1449_v3 = vmul.f32 %v4817_v29, %v4804_v38  ;;  %v4833_v38 = vmul.f32 %v4794_v9, %v1414_v47  ;;  %v4848_v47 = vmul.f32 %v4794_v9, %v1415_v12  ;;  %v1420_v12 = vld [vmem:[%s4400_s9 + $0x60] sm:$0xff] }
 0x166   : > { %5724 = vst [vmem:[#allocation32_spill] sm:$0xff] %v4786_v1  ;;  %v3913_v2 = vpop.eup %3912  ;;  %5729 = vst [vmem:[#allocation37_spill] sm:$0xff] %v4812_v23  ;;  %v1451_v37 = vmul.f32 %v4817_v29, %v4812_v23  ;;  %v4865_v54 = vmul.f32 %v4794_v9, %v1420_v12 }
 0x167   : > { %v3915_v39 = vpop.eup %3914  ;;  %1277 = vperm.xlu1 %3851, %v3913_v2   ;;  %5731 = vst [vmem:[#allocation39_spill] sm:$0xff] %v4833_v38  ;;  %5734 = vst [vmem:[#allocation42_spill] sm:$0xff] %v4848_v47 }
 0x168   : > { %1373 = vperm.xlu0 %3850, %v3915_v39   ;;  %v4788_v61 = vadd.f32 %v3915_v39, %v3913_v2  ;;  %v1448_v2 = vmul.f32 %v4817_v29, %v4807_v49  ;;  %v4824_v39 = vmul.f32 %v4794_v9, %v1411_v42  ;;  %v4836_v49 = vmul.f32 %v4794_v9, %v1413_v7  ;;  %v1416_v42 = vld [vmem:[%s4400_s9 + $0x40] sm:$0xff]  ;;  %v1418_v7 = vld [vmem:[%s4400_s9 + $0x50] sm:$0xff] }
 0x169   : > { %v4841_v55 = vmul.f32 %v4794_v9, %v1416_v42  ;;  %5737 = vst [vmem:[#allocation45_spill] sm:$0xff] %v4865_v54  ;;  %v1459_v12 = vmul.f32 %v4817_v29, %v4865_v54 }
 0x16a   : > { %5725 = vst [vmem:[#allocation33_spill] sm:$0xff] %v4788_v61  ;;  %5730 = vst [vmem:[#allocation38_spill] sm:$0xff] %v4824_v39  ;;  %v1450_v18 = vmul.f32 %v4817_v29, %v4824_v39  ;;  %v1417_v39 = vld [vmem:[%s4400_s9 + $0x48] sm:$0xff] }
 0x16b   : > { %5732 = vst [vmem:[#allocation40_spill] sm:$0xff] %v4836_v49  ;;  %5733 = vst [vmem:[#allocation41_spill] sm:$0xff] %v4841_v55  ;;  %v1455_v42 = vmul.f32 %v4817_v29, %v4841_v55  ;;  %v1421_v55 = vld [vmem:[%s4400_s9 + $0x68] sm:$0xff] }
 0x187   : > { %1463 = vadd.xlane.f32.xlu0 %v1447_v14 }
 0x18b   : > { %v1299_v14 = vpop.permute.xlu1 %1298  ;;  %1467 = vadd.xlane.f32.xlu0 %v1449_v3  ;;  %1465 = vadd.xlane.f32.xlu1 %v1448_v2  ;;  %v1453_v3 = vmul.f32 %v4817_v29, %v4833_v38  ;;  %v1452_v2 = vmul.f32 %v4817_v29, %v4836_v49  ;;  %v4860_v38 = vmul.f32 %v4794_v9, %v1417_v39  ;;  %v1419_v49 = vld [vmem:[%s4400_s9 + $0x58] sm:$0xff] }
 0x18d   : > { %5736 = vst [vmem:[#allocation44_spill] sm:$0xff] %v4860_v38 }
 0x18f   : > { %v1208_v23 = vpop.permute.xlu1 %1207  ;;  %1471 = vadd.xlane.f32.xlu0 %v1451_v37  ;;  %1469 = vadd.xlane.f32.xlu1 %v1450_v18  ;;  %v1454_v37 = vmul.f32 %v4817_v29, %v4848_v47  ;;  %v4857_v18 = vmul.f32 %v4794_v9, %v1418_v7  ;;  %v4872_v7 = vmul.f32 %v4794_v9, %v1419_v49  ;;  %v1203_v47 = vpop.permute.xlu0 %1202 }
 0x190   : > { %v1281_v1 = vmul.f32 %v1208_v23, %v4441_v11  ;;  %v1376_v49 = vmul.f32 %v1299_v14, %v4428_v6  ;;  %v4897_v6 = vld [vmem:[%s5601_s7] ss:$0 sm:$0xff] }
 0x191   : > { %5735 = vst [vmem:[#allocation43_spill] sm:$0xff] %v4857_v18  ;;  %5738 = vst [vmem:[#allocation46_spill] sm:$0xff] %v4872_v7 }
 0x193   : > { %v1304_v5 = vpop.permute.xlu1 %1303  ;;  %1475 = vadd.xlane.f32.xlu0 %v1453_v3  ;;  %1473 = vadd.xlane.f32.xlu1 %v1452_v2  ;;  %v1457_v3 = vmul.f32 %v4817_v29, %v4857_v18  ;;  %v1456_v2 = vmul.f32 %v4817_v29, %v4860_v38  ;;  %v4882_v18 = vmul.f32 %v4794_v9, %v1421_v55 }
 0x194   : > { %v1377_v39 = vmul.f32 %v1304_v5, %v4456_v17  ;;  %v1280_v38 = vmul.f32 %v1203_v47, %v4438_v10 }
 0x195   : > { %5739 = vst [vmem:[#allocation47_spill] sm:$0xff] %v4882_v18  ;;  %v1460_v23 = vmul.f32 %v4817_v29, %v4882_v18 }
 0x196   : > { %v4887_v5 = vadd.f32 %v1377_v39, %v1281_v1 }
 0x197   : > { %v1213_v61 = vpop.permute.xlu1 %1212  ;;  %1479 = vadd.xlane.f32.xlu0 %v1455_v42  ;;  %1477 = vadd.xlane.f32.xlu1 %v1454_v37  ;;  %v1458_v37 = vmul.f32 %v4817_v29, %v4872_v7 }
 0x198   : > { %v1282_v54 = vmul.f32 %v1213_v61, %v4464_v21  ;;  %v1496_v10 = vmul.f32 %v4897_v6, %v4887_v5 }
 0x19b   : > { %v1309_v42 = vpop.permute.xlu1 %1308  ;;  %1483 = vadd.xlane.f32.xlu0 %v1457_v3  ;;  %1481 = vadd.xlane.f32.xlu1 %v1456_v2  ;;  %v4892_v3 = vadd.f32 %v1376_v49, %v1280_v38 }
 0x19c   : > { %v1378_v17 = vmul.f32 %v1309_v42, %v4480_v30 }
 0x19d   : > { %v1495_v14 = vmul.f32 %v4897_v6, %v4892_v3 }
 0x19e   : > { %v4901_v30 = vadd.f32 %v1378_v17, %v1282_v54 }
 0x19f   : > { %v1218_v11 = vpop.permute.xlu1 %1217  ;;  %1487 = vadd.xlane.f32.xlu0 %v1459_v12  ;;  %1485 = vadd.xlane.f32.xlu1 %v1458_v37 }
 0x1a0   : > { %v1283_v1 = vmul.f32 %v1218_v11, %v4473_v26  ;;  %v1497_v38 = vmul.f32 %v4897_v6, %v4901_v30 }
 0x1a3   : > { %v1314_v55 = vpop.permute.xlu1 %1313  ;;  %1513 = vadd.xlane.f32.xlu0 %v1496_v10  ;;  %v1319_v21 = vpop.permute.xlu0 %1318  ;;  %1489 = vadd.xlane.f32.xlu1 %v1460_v23 }
 0x1a4   : > { %v1379_v61 = vmul.f32 %v1314_v55, %v4492_v35  ;;  %v1380_v54 = vmul.f32 %v1319_v21, %v4522_v50 }
 0x1a6   : > { %v4909_v47 = vadd.f32 %v1379_v61, %v1283_v1 }
 0x1a7   : > { %v1223_v2 = vpop.permute.xlu1 %1222  ;;  %1515 = vadd.xlane.f32.xlu0 %v1497_v38  ;;  %1511 = vadd.xlane.f32.xlu1 %v1495_v14  ;;  %v1324_v12 = vpop.permute.xlu0 %1323 }
 0x1a8   : > { %v1284_v39 = vmul.f32 %v1223_v2, %v4508_v43  ;;  %v1498_v26 = vmul.f32 %v4897_v6, %v4909_v47  ;;  %v1381_v37 = vmul.f32 %v1324_v12, %v4528_v53 }
 0x1aa   : > { %v4915_v35 = vadd.f32 %v1380_v54, %v1284_v39 }
 0x1ab   : > { %v1228_v42 = vpop.permute.xlu1 %1227  ;;  %1517 = vadd.xlane.f32.xlu1 %v1498_v26 }
 0x1ac   : > { %v1285_v49 = vmul.f32 %v1228_v42, %v4517_v48  ;;  %v1499_v17 = vmul.f32 %v4897_v6, %v4915_v35 }
 0x1ae   : > { %v4921_v11 = vadd.f32 %v1381_v37, %v1285_v49  ;;  %1519 = vadd.xlane.f32.xlu0 %v1499_v17 }
 0x1af   : > { %v1233_v50 = vpop.permute.xlu1 %1232  ;;  %v1329_v43 = vpop.permute.xlu0 %1328 }
 0x1b0   : > { %v1286_v23 = vmul.f32 %v1233_v50, %v4536_v57  ;;  %v1382_v10 = vmul.f32 %v1329_v43, %v4550_v0  ;;  %v1500_v55 = vmul.f32 %v4897_v6, %v4921_v11 }
 0x1b2   : > { %1521 = vadd.xlane.f32.xlu1 %v1500_v55  ;;  %v4927_v21 = vadd.f32 %v1382_v10, %v1286_v23 }
 0x1b3   : > { %v1238_v53 = vpop.permute.xlu1 %1237  ;;  %v1334_v48 = vpop.permute.xlu0 %1333 }
 0x1b4   : > { %v1287_v1 = vmul.f32 %v1238_v53, %v4545_v62  ;;  %v1383_v61 = vmul.f32 %v1334_v48, %v4556_v4  ;;  %v1501_v38 = vmul.f32 %v4897_v6, %v4927_v21 }
 0x1b6   : > { %v4933_v14 = vadd.f32 %v1383_v61, %v1287_v1  ;;  %1523 = vadd.xlane.f32.xlu0 %v1501_v38 }
 0x1b8   : > { %v1502_v57 = vmul.f32 %v4897_v6, %v4933_v14 }
 0x1ba   : > { %1525 = vadd.xlane.f32.xlu1 %v1502_v57  ;;  %v1243_v0 = vpop.permute.xlu1 %1242 }
 0x1bb   : > { %v1288_v2 = vmul.f32 %v1243_v0, %v4564_v13  ;;  %v1339_v54 = vpop.permute.xlu0 %1338 }
 0x1bc   : > { %v1384_v39 = vmul.f32 %v1339_v54, %v4578_v24 }
 0x1be   : > { %v4939_v12 = vadd.f32 %v1384_v39, %v1288_v2  ;;  %v1248_v62 = vpop.permute.xlu1 %1247 }
 0x1bf   : > { %v1289_v4 = vmul.f32 %v1248_v62, %v4573_v22  ;;  %v1344_v26 = vpop.permute.xlu0 %1343 }
 0x1c0   : > { %v1385_v42 = vmul.f32 %v1344_v26, %v4584_v28  ;;  %v1503_v37 = vmul.f32 %v4897_v6, %v4939_v12  ;;  %v1422_v26 = vld [vmem:[%s4400_s9 + $0x70] sm:$0xff] }
 0x1c2   : > { %v4945_v49 = vadd.f32 %v1385_v42, %v1289_v4  ;;  %1527 = vadd.xlane.f32.xlu0 %v1503_v37  ;;  %v4979_v37 = vmul.f32 %v4794_v9, %v1422_v26 }
 0x1c4   : > { %5740 = vst [vmem:[#allocation48_spill] sm:$0xff] %v4945_v49  ;;  %v1504_v13 = vmul.f32 %v4897_v6, %v4945_v49  ;;  %5746 = vst [vmem:[#allocation54_spill] sm:$0xff] %v4979_v37 }
 0x1c6   : > { %1529 = vadd.xlane.f32.xlu1 %v1504_v13  ;;  %v1253_v17 = vpop.permute.xlu1 %1252 }
 0x1c7   : > { %v1290_v24 = vmul.f32 %v1253_v17, %v4592_v36  ;;  %v1349_v50 = vpop.permute.xlu0 %1348 }
 0x1c8   : > { %v1386_v43 = vmul.f32 %v1349_v50, %v4606_v46 }
 0x1ca   : > { %v4951_v22 = vadd.f32 %v1386_v43, %v1290_v24  ;;  %v1258_v23 = vpop.permute.xlu1 %1257  ;;  %v1423_v24 = vld [vmem:[%s4400_s9 + $0x78] sm:$0xff] }
 0x1cb   : > { %v1291_v28 = vmul.f32 %v1258_v23, %v4601_v44  ;;  %v1354_v10 = vpop.permute.xlu0 %1353  ;;  %v4991_v23 = vmul.f32 %v4794_v9, %v1423_v24 }
 0x1cc   : > { %5741 = vst [vmem:[#allocation49_spill] sm:$0xff] %v4951_v22  ;;  %v1387_v55 = vmul.f32 %v1354_v10, %v4612_v51  ;;  %v1505_v53 = vmul.f32 %v4897_v6, %v4951_v22 }
 0x1cd   : > { %5748 = vst [vmem:[#allocation56_spill] sm:$0xff] %v4991_v23 }
 0x1ce   : > { %v4957_v48 = vadd.f32 %v1387_v55, %v1291_v28  ;;  %1531 = vadd.xlane.f32.xlu0 %v1505_v53 }
 0x1d0   : > { %5742 = vst [vmem:[#allocation50_spill] sm:$0xff] %v4957_v48  ;;  %v1506_v36 = vmul.f32 %v4897_v6, %v4957_v48 }
 0x1d2   : > { %1533 = vadd.xlane.f32.xlu1 %v1506_v36  ;;  %v1263_v1 = vpop.permute.xlu1 %1262 }
 0x1d3   : > { %v1292_v46 = vmul.f32 %v1263_v1, %v4484_v32  ;;  %v1359_v61 = vpop.permute.xlu0 %1358 }
 0x1d4   : > { %v1388_v44 = vmul.f32 %v1359_v61, %v4626_v59 }
 0x1d6   : > { %v4963_v38 = vadd.f32 %v1388_v44, %v1292_v46  ;;  %v1268_v51 = vpop.permute.xlu1 %1267 }
 0x1d7   : > { %v1293_v57 = vmul.f32 %v1268_v51, %v4487_v33  ;;  %v1364_v0 = vpop.permute.xlu0 %1363 }
 0x1d8   : > { %5743 = vst [vmem:[#allocation51_spill] sm:$0xff] %v4963_v38  ;;  %v1389_v2 = vmul.f32 %v1364_v0, %v4632_v63  ;;  %v1507_v54 = vmul.f32 %v4897_v6, %v4963_v38 }
 0x1da   : > { %v4969_v39 = vadd.f32 %v1389_v2, %v1293_v57  ;;  %1535 = vadd.xlane.f32.xlu0 %v1507_v54  ;;  %v3917_v57 = vpop.eup %3916 }
 0x1dc   : > { %5744 = vst [vmem:[#allocation52_spill] sm:$0xff] %v4969_v39  ;;  %v1508_v32 = vmul.f32 %v4897_v6, %v4969_v39 }
 0x1de   : > { %1537 = vadd.xlane.f32.xlu1 %v1508_v32  ;;  %v1273_v59 = vpop.permute.xlu1 %1272  ;;  %v3919_v32 = vpop.eup %3918 }
 0x1df   : > { %v1294_v62 = vmul.f32 %v1273_v59, %v4500_v40  ;;  %v1369_v4 = vpop.permute.xlu0 %1368 }
 0x1e0   : > { %v1390_v33 = vmul.f32 %v1369_v4, %v4646_v16  ;;  %v1461_v16 = vmul.f32 %v4817_v29, %v4979_v37  ;;  %v5752_v37 = vld [vmem:[#allocation26_spill] sm:$0xff] }
 0x1e1   : > { %3932 = vrcp.f32 %v5752_v37 }
 0x1e2   : > { %v4976_v42 = vadd.f32 %v1390_v33, %v1294_v62  ;;  %v1278_v63 = vpop.permute.xlu1 %1277  ;;  %v3921_v62 = vpop.eup %3920  ;;  %v2007_v33 = vld [vmem:[%s5604_s10 + $0x78] sm:$0xff] }
 0x1e3   : > { %v1295_v13 = vmul.f32 %v1278_v63, %v4503_v41  ;;  %v1374_v17 = vpop.permute.xlu0 %1373  ;;  %v1462_v41 = vmul.f32 %v4817_v29, %v4991_v23  ;;  %v5024_v63 = vld [vmem:[#allocation2] ss:$0 sm:$0xff]  ;;  %3615 = vmatprep.subr.mxu0 %v2007_v33 }
 0x1e4   : > { %5745 = vst [vmem:[#allocation53_spill] sm:$0xff] %v4976_v42  ;;  %v1391_v50 = vmul.f32 %v1374_v17, %v4652_v20  ;;  %v1509_v43 = vmul.f32 %v4897_v6, %v4976_v42  ;;  %3616 = vmatpush3.msra.mxu0 %v2007_v33 }
 0x1e6   : > { %v4986_v40 = vadd.f32 %v1391_v50, %v1295_v13  ;;  %1539 = vadd.xlane.f32.xlu0 %v1509_v43 }
 0x1e8   : > { %5747 = vst [vmem:[#allocation55_spill] sm:$0xff] %v4986_v40  ;;  %v1510_v28 = vmul.f32 %v4897_v6, %v4986_v40 }
 0x1ea   : > { %1491 = vadd.xlane.f32.xlu0 %v1461_v16  ;;  %1541 = vadd.xlane.f32.xlu1 %v1510_v28  ;;  %v3923_v16 = vpop.eup %3922 }
 0x1ee   : > { %1493 = vadd.xlane.f32.xlu1 %v1462_v41 }
 0x210   : > { %v1464_v20 = vpop.xlane.xlu0 %1463 }
 0x214   : > { %v1468_v10 = vpop.xlane.xlu0 %1467  ;;  %v1466_v55 = vpop.xlane.xlu1 %1465 }
 0x218   : > { %v1472_v53 = vpop.xlane.xlu0 %1471  ;;  %v1470_v36 = vpop.xlane.xlu1 %1469 }
 0x21c   : > { %v4997_v1 = vpop.xlane.xlu0 %1475  ;;  %v4999_v46 = vpop.xlane.xlu1 %1473 }
 0x220   : > { %v5002_v9 = vpop.xlane.xlu0 %1479  ;;  %v5004_v6 = vpop.xlane.xlu1 %1477 }
 0x224   : > { %v5008_v29 = vpop.xlane.xlu0 %1483  ;;  %v5010_v61 = vpop.xlane.xlu1 %1481 }
 0x228   : > { %v5013_v44 = vpop.xlane.xlu0 %1487  ;;  %v5015_v51 = vpop.xlane.xlu1 %1485 }
 0x22c   : > { %v1514_v0 = vpop.xlane.xlu0 %1513  ;;  %v5018_v2 = vpop.xlane.xlu1 %1489 }
 0x22d   : > { %v1560_v54 = vmul.f32 %v3917_v57, %v1514_v0  ;;  %v2005_v57 = vld [vmem:[%s5604_s10 + $0x68] sm:$0xff] }
 0x22f   : > { %v1576_v59 = vadd.f32 %v1560_v54, %v1466_v55  ;;  %v2006_v55 = vld [vmem:[%s5604_s10 + $0x70] sm:$0xff] }
 0x230   : > { %v1516_v4 = vpop.xlane.xlu0 %1515  ;;  %v1512_v26 = vpop.xlane.xlu1 %1511  ;;  %3617 = vmatprep.subr.mxu0 %v2006_v55 }
 0x231   : > { %v1592_v13 = vadd.f32 %v5024_v63, %v1576_v59  ;;  %v1561_v17 = vmul.f32 %v3921_v62, %v1516_v4  ;;  %v1559_v24 = vmul.f32 %v3919_v32, %v1512_v26  ;;  %3618 = vmatpush3.msra.mxu0 %v2006_v55  ;;  %v5749_v62 = vld [vmem:[#allocation15_spill] sm:$0xff] }
 0x232   : > { %3619 = vmatprep.subr.mxu0 %v2005_v57 }
 0x233   : > { %v1577_v50 = vadd.f32 %v1561_v17, %v1468_v10  ;;  %v1575_v43 = vadd.f32 %v1559_v24, %v1464_v20  ;;  %v1608_v28 = vmax.f32 %v1592_v13, 0.0  ;;  %v3925_v20 = vpop.eup %3924  ;;  %3620 = vmatpush3.msra.mxu0 %v2005_v57  ;;  %v2004_v17 = vld [vmem:[%s5604_s10 + $0x60] sm:$0xff]  ;;  %v2003_v24 = vld [vmem:[%s5604_s10 + $0x58] sm:$0xff] }
 0x234   : > { %v1518_v41 = vpop.xlane.xlu1 %1517  ;;  %3621 = vmatprep.subr.mxu0 %v2004_v17 }
 0x235   : > { %v1593_v0 = vadd.f32 %v5024_v63, %v1577_v50  ;;  %v1591_v54 = vadd.f32 %v5024_v63, %v1575_v43  ;;  %v1562_v32 = vmul.f32 %v3923_v16, %v1518_v41  ;;  %v1624_v4 = vmax.f32 %v5749_v62, %v1608_v28  ;;  %v5750_v50 = vld [vmem:[#allocation14_spill] sm:$0xff]  ;;  %3622 = vmatpush3.msra.mxu0 %v2004_v17 }
 0x236   : > { %3623 = vmatprep.subr.mxu0 %v2003_v24 }
 0x237   : > { %v1607_v10 = vmax.f32 %v1591_v54, 0.0  ;;  %v1520_v59 = vpop.xlane.xlu0 %1519  ;;  %v1609_v26 = vmax.f32 %v1593_v0, 0.0  ;;  %v1578_v33 = vadd.f32 %v1562_v32, %v1470_v36  ;;  %v2002_v36 = vld [vmem:[%s5604_s10 + $0x50] sm:$0xff]  ;;  %v3927_v0 = vpop.eup %3926  ;;  %v1688_v54 = vsub.f32 %v1608_v28, %v1624_v4  ;;  %3624 = vmatpush3.msra.mxu0 %v2003_v24  ;;  %v2000_v28 = vld [vmem:[%s5604_s10 + $0x40] sm:$0xff] }
 0x238   : > { %v1563_v13 = vmul.f32 %v3925_v20, %v1520_v59  ;;  %v5751_v32 = vld [vmem:[#allocation16_spill] sm:$0xff]  ;;  %3625 = vmatprep.subr.mxu0 %v2002_v36 }
 0x239   : > { %v1623_v43 = vmax.f32 %v5750_v50, %v1607_v10  ;;  %v1594_v16 = vadd.f32 %v5024_v63, %v1578_v33  ;;  %v1625_v20 = vmax.f32 %v5751_v32, %v1609_v26  ;;  %3626 = vmatpush3.msra.mxu0 %v2002_v36 }
 0x23a   : > { %v1579_v41 = vadd.f32 %v1563_v13, %v1472_v53  ;;  %v2001_v53 = vld [vmem:[%s5604_s10 + $0x48] sm:$0xff] }
 0x23b   : > { %v1639_v55 = vsub.f32 %v5750_v50, %v1623_v43  ;;  %v1522_v57 = vpop.xlane.xlu1 %1521  ;;  %v1687_v59 = vsub.f32 %v1607_v10, %v1623_v43  ;;  %v1610_v13 = vmax.f32 %v1594_v16, 0.0  ;;  %v1640_v50 = vsub.f32 %v5749_v62, %v1624_v4  ;;  %3627 = vmatprep.subr.mxu0 %v2001_v53  ;;  %v3929_v43 = vpop.eup %3928  ;;  %v1999_v62 = vld [vmem:[%s5604_s10 + $0x38] sm:$0xff] }
 0x23c   : > { %v1595_v23 = vadd.f32 %v5024_v63, %v1579_v41  ;;  %v1564_v17 = vmul.f32 %v3927_v0, %v1522_v57  ;;  %v1705_v41 = vmul.f32 1.442695, %v1688_v54  ;;  %3628 = vmatpush3.msra.mxu0 %v2001_v53  ;;  %v5753_v4 = vld [vmem:[#allocation17_spill] sm:$0xff] }
 0x23d   : > { %v1655_v33 = vmul.f32 1.442695, %v1639_v55  ;;  %v1703_v40 = vmul.f32 1.442695, %v1687_v59  ;;  %v1689_v55 = vsub.f32 %v1609_v26, %v1625_v20  ;;  %v1626_v36 = vmax.f32 %v5753_v4, %v1610_v13  ;;  %3629 = vmatprep.subr.mxu0 %v2000_v28  ;;  %v3931_v26 = vpop.eup %3930 }
 0x23e   : > { %v1580_v10 = vadd.f32 %v1564_v17, %v4999_v46  ;;  %v1611_v16 = vmax.f32 %v1595_v23, 0.0  ;;  %v1657_v59 = vmul.f32 1.442695, %v1640_v50  ;;  %v1641_v46 = vsub.f32 %v5751_v32, %v1625_v20  ;;  %3630 = vmatpush3.msra.mxu0 %v2000_v28  ;;  %v1998_v23 = vld [vmem:[%s5604_s10 + $0x30] sm:$0xff]  ;;  %v5755_v17 = vld [vmem:[#allocation18_spill] sm:$0xff] }
 0x23f   : > { %v1524_v24 = vpop.xlane.xlu0 %1523  ;;  %3934 = vpow2.f32 %v1655_v33  ;;  %v5754_v33 = vld [vmem:[#allocation28_spill] sm:$0xff]  ;;  %3631 = vmatprep.subr.mxu0 %v1999_v62  ;;  %v1707_v32 = vmul.f32 1.442695, %v1689_v55  ;;  %v1690_v20 = vsub.f32 %v1610_v13, %v1626_v36  ;;  %v1642_v28 = vsub.f32 %v5753_v4, %v1626_v36  ;;  %v3933_v36 = vpop.eup %3932 }
 0x240   : > { %v1596_v57 = vadd.f32 %v5024_v63, %v1580_v10  ;;  %v1565_v0 = vmul.f32 %v3929_v43, %v1524_v24  ;;  %3936 = vpow2.f32 %v1703_v40  ;;  %v1627_v10 = vmax.f32 %v5755_v17, %v1611_v16  ;;  %3632 = vmatpush3.msra.mxu0 %v1999_v62  ;;  %v1997_v40 = vld [vmem:[%s5604_s10 + $0x28] sm:$0xff]  ;;  %v1996_v62 = vld [vmem:[%s5604_s10 + $0x20] sm:$0xff] }
 0x241   : > { %3938 = vrcp.f32 %v5754_v33  ;;  %3633 = vmatprep.subr.mxu0 %v1998_v23  ;;  %v1709_v13 = vmul.f32 1.442695, %v1690_v20 }
 0x242   : > { %v1581_v54 = vadd.f32 %v1565_v0, %v4997_v1  ;;  %v1612_v24 = vmax.f32 %v1596_v57, 0.0  ;;  %3940 = vpow2.f32 %v1705_v41  ;;  %v1659_v1 = vmul.f32 1.442695, %v1641_v46  ;;  %3634 = vmatpush3.msra.mxu0 %v1998_v23 }
 0x243   : > { %v1526_v53 = vpop.xlane.xlu1 %1525  ;;  %3942 = vpow2.f32 %v1657_v59  ;;  %3635 = vmatprep.subr.mxu0 %v1997_v40  ;;  %v1691_v57 = vsub.f32 %v1611_v16, %v1627_v10  ;;  %v1643_v4 = vsub.f32 %v5755_v17, %v1627_v10  ;;  %v1995_v16 = vld [vmem:[%s5604_s10 + $0x18] sm:$0xff] }
 0x244   : > { %v1566_v43 = vmul.f32 %v3931_v26, %v1526_v53  ;;  %v1597_v50 = vadd.f32 %v5024_v63, %v1581_v54  ;;  %v5756_v26 = vld [vmem:[#allocation19_spill] sm:$0xff]  ;;  %3944 = vrcp.f32 %v4768_v25  ;;  %3636 = vmatpush3.msra.mxu0 %v1997_v40  ;;  %v5757_v40 = vld [vmem:[#allocation20_spill] sm:$0xff] }
 0x245   : > { %v1628_v41 = vmax.f32 %v5756_v26, %v1612_v24  ;;  %3946 = vpow2.f32 %v1707_v32  ;;  %3637 = vmatprep.subr.mxu0 %v1996_v62  ;;  %v1711_v23 = vmul.f32 1.442695, %v1691_v57  ;;  %v1663_v20 = vmul.f32 1.442695, %v1643_v4  ;;  %v1992_v4 = vld [vmem:[%s5604_s10] sm:$0xff] }
 0x246   : > { %v1582_v0 = vadd.f32 %v1566_v43, %v5004_v6  ;;  %v1613_v55 = vmax.f32 %v1597_v50, 0.0  ;;  %3948 = vpow2.f32 %v1659_v1  ;;  %v1661_v6 = vmul.f32 1.442695, %v1642_v28  ;;  %3638 = vmatpush3.msra.mxu0 %v1996_v62  ;;  %v1994_v43 = vld [vmem:[%s5604_s10 + $0x10] sm:$0xff]  ;;  %v1993_v62 = vld [vmem:[%s5604_s10 + $0x8] sm:$0xff] }
 0x247   : > { %v1692_v54 = vsub.f32 %v1612_v24, %v1628_v41  ;;  %3950 = vrcp.f32 %v4774_v19  ;;  %3639 = vmatprep.subr.mxu0 %v1995_v16  ;;  %v1644_v50 = vsub.f32 %v5756_v26, %v1628_v41  ;;  %v5758_v41 = vld [vmem:[#allocation21_spill] sm:$0xff] }
 0x248   : > { %v1598_v59 = vadd.f32 %v5024_v63, %v1582_v0  ;;  %3952 = vpow2.f32 %v1709_v13  ;;  %v1629_v17 = vmax.f32 %v5757_v40, %v1613_v55  ;;  %3640 = vmatpush3.msra.mxu0 %v1995_v16 }
 0x249   : > { %3954 = vpow2.f32 %v1661_v6  ;;  %3641 = vmatprep.subr.mxu0 %v1994_v43  ;;  %v1713_v13 = vmul.f32 1.442695, %v1692_v54 }
 0x24a   : > { %v1614_v10 = vmax.f32 %v1598_v59, 0.0  ;;  %3642 = vmatpush3.msra.mxu0 %v1994_v43  ;;  %3956 = vpow2.f32 %v1711_v23  ;;  %v1645_v16 = vsub.f32 %v5757_v40, %v1629_v17 }
 0x24b   : > { %v1528_v46 = vpop.xlane.xlu0 %1527  ;;  %3643 = vmatprep.subr.mxu0 %v1993_v62  ;;  %3958 = vpow2.f32 %v1663_v20 }
 0x24c   : > { %v1567_v53 = vmul.f32 %v3933_v36, %v1528_v46  ;;  %v3935_v32 = vpop.eup %3934  ;;  %v1630_v6 = vmax.f32 %v5758_v41, %v1614_v10  ;;  %3644 = vmatpush3.msra.mxu0 %v1993_v62  ;;  %v1665_v46 = vmul.f32 1.442695, %v1644_v50  ;;  %3960 = vpow2.f32 %v1713_v13 }
 0x24d   : > { %v3937_v1 = vpop.eup %3936  ;;  %v1735_v28 = vmul.f32 %v3935_v32, %v4688_v52  ;;  %1769 = vperm.xlu0 %3850, %v3935_v32   ;;  %3645 = vmatprep.subr.mxu0 %v1992_v4 }
 0x24e   : > { %v1583_v24 = vadd.f32 %v1567_v53, %v5002_v9  ;;  %v3939_v57 = vpop.eup %3938  ;;  %1865 = vperm.xlu1 %3851, %v3937_v1   ;;  %v1693_v9 = vsub.f32 %v1613_v55, %v1629_v17  ;;  %3646 = vmatpush3.msra.mxu0 %v1992_v4  ;;  %v5759_v53 = vld [vmem:[#allocation22_spill] sm:$0xff]  ;;  %v1694_v20 = vsub.f32 %v1614_v10, %v1630_v6  ;;  %3962 = vpow2.f32 %v1665_v46 }
 0x24f   : > { %v1530_v0 = vpop.xlane.xlu1 %1529  ;;  %v5101_v26 = vadd.f32 %v3937_v1, %v1735_v28  ;;  %v5107_v36 = vpop.eup %3940  ;;  %v1667_v17 = vmul.f32 1.442695, %v1645_v16  ;;  %v1646_v1 = vsub.f32 %v5758_v41, %v1630_v6  ;;  %3964 = vrcp.f32 %v4782_v58 }
 0x250   : > { %v1599_v59 = vadd.f32 %v5024_v63, %v1583_v24  ;;  %v1568_v52 = vmul.f32 %v3939_v57, %v1530_v0  ;;  %v5110_v54 = vpop.eup %3942  ;;  %v1715_v24 = vmul.f32 1.442695, %v1693_v9  ;;  %3966 = vrcp.f32 %v4784_v45  ;;  %v5760_v9 = vld [vmem:[#allocation23_spill] sm:$0xff] }
 0x251   : > { %1870 = vperm.xlu0 %3850, %v5107_v36   ;;  %v3945_v32 = vpop.eup %3944  ;;  %v1717_v13 = vmul.f32 1.442695, %v1694_v20 }
 0x252   : > { %v1615_v23 = vmax.f32 %v1599_v59, 0.0  ;;  %v1584_v55 = vadd.f32 %v1568_v52, %v5010_v61  ;;  %1774 = vperm.xlu1 %3851, %v5110_v54   ;;  %v5117_v40 = vpop.eup %3946  ;;  %3968 = vpow2.f32 %v1715_v24  ;;  %v1669_v52 = vmul.f32 1.442695, %v1646_v1  ;;  %v5761_v1 = vld [vmem:[#allocation24_spill] sm:$0xff] }
 0x253   : > { %v5120_v61 = vpop.eup %3948  ;;  %3970 = vpow2.f32 %v1667_v17 }
 0x254   : > { %v1631_v43 = vmax.f32 %v5759_v53, %v1615_v23  ;;  %v1600_v50 = vadd.f32 %v5024_v63, %v1584_v55  ;;  %v3951_v57 = vpop.eup %3950  ;;  %3972 = vpow2.f32 %v1717_v13 }
 0x255   : > { %1875 = vperm.xlu0 %3850, %v5117_v40   ;;  %v5128_v6 = vpop.eup %3952  ;;  %3974 = vpow2.f32 %v1669_v52 }
 0x256   : > { %v1616_v28 = vmax.f32 %v1600_v50, 0.0  ;;  %v1647_v62 = vsub.f32 %v5759_v53, %v1631_v43  ;;  %1779 = vperm.xlu1 %3851, %v5120_v61   ;;  %v1695_v59 = vsub.f32 %v1615_v23, %v1631_v43  ;;  %v5131_v46 = vpop.eup %3954 }
 0x257   : > { %v1532_v0 = vpop.xlane.xlu0 %1531  ;;  %v5136_v23 = vpop.eup %3956 }
 0x258   : > { %v1569_v10 = vmul.f32 %v3945_v32, %v1532_v0  ;;  %v1632_v41 = vmax.f32 %v5760_v9, %v1616_v28  ;;  %v1671_v55 = vmul.f32 1.442695, %v1647_v62  ;;  %v1719_v43 = vmul.f32 1.442695, %v1695_v59  ;;  %v5140_v17 = vpop.eup %3958 }
 0x259   : > { %1880 = vperm.xlu0 %3850, %v5128_v6  }
 0x25a   : > { %v1585_v4 = vadd.f32 %v1569_v10, %v5008_v29  ;;  %1784 = vperm.xlu1 %3851, %v5131_v46   ;;  %v1696_v24 = vsub.f32 %v1616_v28, %v1632_v41  ;;  %v1648_v20 = vsub.f32 %v5760_v9, %v1632_v41  ;;  %3976 = vpow2.f32 %v1671_v55  ;;  %v5146_v28 = vpop.eup %3960  ;;  %v5763_v55 = vld [vmem:[#allocation32_spill] sm:$0xff] }
 0x25b   : > { %v1534_v16 = vpop.xlane.xlu1 %1533  ;;  %3978 = vpow2.f32 %v1719_v43  ;;  %v5149_v9 = vpop.eup %3962 }
 0x25c   : > { %v1601_v53 = vadd.f32 %v5024_v63, %v1585_v4  ;;  %v1570_v32 = vmul.f32 %v3951_v57, %v1534_v16  ;;  %v1721_v10 = vmul.f32 1.442695, %v1696_v24  ;;  %v1673_v57 = vmul.f32 1.442695, %v1648_v20  ;;  %v3965_v52 = vpop.eup %3964  ;;  %v5762_v4 = vld [vmem:[#allocation25_spill] sm:$0xff] }
 0x25d   : > { %1885 = vperm.xlu0 %3850, %v5136_v23   ;;  %3980 = vrcp.f32 %v5763_v55 }
 0x25e   : > { %v1617_v29 = vmax.f32 %v1601_v53, 0.0  ;;  %v1586_v50 = vadd.f32 %v1570_v32, %v5015_v51  ;;  %1789 = vperm.xlu1 %3851, %v5140_v17   ;;  %v3967_v53 = vpop.eup %3966  ;;  %3982 = vpow2.f32 %v1721_v10  ;;  %v5764_v10 = vld [vmem:[#allocation33_spill] sm:$0xff] }
 0x25f   : > { %v5155_v24 = vpop.eup %3968  ;;  %3984 = vpow2.f32 %v1673_v57 }
 0x260   : > { %v1633_v0 = vmax.f32 %v5761_v1, %v1617_v29  ;;  %v1602_v62 = vadd.f32 %v5024_v63, %v1586_v50  ;;  %3986 = vrcp.f32 %v5764_v10 }
 0x261   : > { %1890 = vperm.xlu0 %3850, %v5146_v28  }
 0x262   : > { %v1649_v13 = vsub.f32 %v5761_v1, %v1633_v0  ;;  %v1697_v59 = vsub.f32 %v1617_v29, %v1633_v0  ;;  %v1618_v51 = vmax.f32 %v1602_v62, 0.0  ;;  %1794 = vperm.xlu1 %3851, %v5149_v9   ;;  %v5158_v1 = vpop.eup %3970 }
 0x263   : > { %v1536_v41 = vpop.xlane.xlu0 %1535 }
 0x264   : > { %v1634_v16 = vmax.f32 %v5762_v4, %v1618_v51  ;;  %v1723_v32 = vmul.f32 1.442695, %v1697_v59  ;;  %v1571_v43 = vmul.f32 %v3965_v52, %v1536_v41  ;;  %v1675_v20 = vmul.f32 1.442695, %v1649_v13  ;;  %v5165_v13 = vpop.eup %3972 }
 0x265   : > { %1895 = vperm.xlu0 %3850, %v5155_v24   ;;  %v5168_v52 = vpop.eup %3974 }
 0x266   : > { %v1650_v29 = vsub.f32 %v5762_v4, %v1634_v16  ;;  %v1698_v50 = vsub.f32 %v1618_v51, %v1634_v16  ;;  %v1587_v0 = vadd.f32 %v1571_v43, %v5013_v44  ;;  %1799 = vperm.xlu1 %3851, %v5158_v1   ;;  %3988 = vpow2.f32 %v1723_v32 }
 0x267   : > { %v1538_v62 = vpop.xlane.xlu1 %1537  ;;  %3990 = vpow2.f32 %v1675_v20  ;;  %v5173_v16 = vpop.eup %3976 }
 0x268   : > { %v1572_v42 = vmul.f32 %v3967_v53, %v1538_v62  ;;  %v1725_v59 = vmul.f32 1.442695, %v1698_v50  ;;  %v1603_v57 = vadd.f32 %v5024_v63, %v1587_v0  ;;  %v1677_v51 = vmul.f32 1.442695, %v1650_v29  ;;  %v5765_v53 = vld [vmem:[#allocation27_spill] sm:$0xff]  ;;  %v5176_v43 = vpop.eup %3978  ;;  %v5766_v50 = vld [vmem:[#allocation29_spill] sm:$0xff] }
 0x269   : > { %1900 = vperm.xlu0 %3850, %v5165_v13  }
 0x26a   : > { %v1588_v41 = vadd.f32 %v1572_v42, %v5018_v2  ;;  %v1619_v44 = vmax.f32 %v1603_v57, 0.0  ;;  %1804 = vperm.xlu1 %3851, %v5168_v52   ;;  %3992 = vpow2.f32 %v1725_v59  ;;  %v3981_v62 = vpop.eup %3980 }
 0x26b   : > { %3994 = vpow2.f32 %v1677_v51  ;;  %v5182_v59 = vpop.eup %3982 }
 0x26c   : > { %v1604_v4 = vadd.f32 %v5024_v63, %v1588_v41  ;;  %v1635_v32 = vmax.f32 %v5765_v53, %v1619_v44  ;;  %v5185_v51 = vpop.eup %3984 }
 0x26d   : > { %1905 = vperm.xlu0 %3850, %v5176_v43  }
 0x26e   : > { %v1620_v20 = vmax.f32 %v1604_v4, 0.0  ;;  %v1651_v42 = vsub.f32 %v5765_v53, %v1635_v32  ;;  %v1699_v2 = vsub.f32 %v1619_v44, %v1635_v32  ;;  %1809 = vperm.xlu1 %3851, %v5173_v16  }
 0x26f   : > { %v1540_v29 = vpop.xlane.xlu0 %1539 }
 0x270   : > { %v1636_v0 = vmax.f32 %v5766_v50, %v1620_v20  ;;  %v1679_v57 = vmul.f32 1.442695, %v1651_v42  ;;  %v1727_v41 = vmul.f32 1.442695, %v1699_v2  ;;  %v1573_v4 = vmul.f32 %v3981_v62, %v1540_v29  ;;  %v3987_v42 = vpop.eup %3986 }
 0x271   : > { %1910 = vperm.xlu0 %3850, %v5182_v59  }
 0x272   : > { %v1652_v18 = vsub.f32 %v5766_v50, %v1636_v0  ;;  %v1700_v39 = vsub.f32 %v1620_v20, %v1636_v0  ;;  %3996 = vpow2.f32 %v1679_v57  ;;  %1814 = vperm.xlu1 %3851, %v5185_v51  }
 0x273   : > { %v1542_v44 = vpop.xlane.xlu1 %1541  ;;  %v1492_v53 = vpop.xlane.xlu0 %1491  ;;  %3998 = vpow2.f32 %v1727_v41 }
 0x274   : > { %v1681_v32 = vmul.f32 1.442695, %v1652_v18  ;;  %v1729_v38 = vmul.f32 1.442695, %v1700_v39  ;;  %v1589_v2 = vadd.f32 %v1573_v4, %v1492_v53  ;;  %v5189_v48 = vpop.eup %3988  ;;  %v1574_v50 = vmul.f32 %v3987_v42, %v1542_v44  ;;  %v5767_v4 = vld [vmem:[#allocation30_spill] sm:$0xff]  ;;  %v5768_v42 = vld [vmem:[#allocation31_spill] sm:$0xff] }
 0x275   : > { %v5191_v20 = vpop.eup %3990  ;;  %1915 = vperm.xlu0 %3850, %v5189_v48  }
 0x276   : > { %4000 = vpow2.f32 %v1681_v32  ;;  %v1605_v29 = vadd.f32 %v5024_v63, %v1589_v2  ;;  %1819 = vperm.xlu1 %3851, %v5191_v20  }
 0x277   : > { %4002 = vpow2.f32 %v1729_v38  ;;  %v1494_v0 = vpop.xlane.xlu1 %1493  ;;  %v5196_v62 = vpop.eup %3992 }
 0x278   : > { %v1590_v18 = vadd.f32 %v1574_v50, %v1494_v0  ;;  %v1621_v39 = vmax.f32 %v1605_v29, 0.0  ;;  %v5199_v41 = vpop.eup %3994 }
 0x279   : > { %1920 = vperm.xlu0 %3850, %v5196_v62  }
 0x27a   : > { %v1606_v57 = vadd.f32 %v5024_v63, %v1590_v18  ;;  %v1637_v44 = vmax.f32 %v5767_v4, %v1621_v39  ;;  %1824 = vperm.xlu1 %3851, %v5199_v41  }
 0x27c   : > { %v1622_v38 = vmax.f32 %v1606_v57, 0.0  ;;  %v1653_v53 = vsub.f32 %v5767_v4, %v1637_v44  ;;  %v1701_v32 = vsub.f32 %v1621_v39, %v1637_v44  ;;  %v1736_v57 = vmul.f32 %v5110_v54, %v4694_v15 }
 0x27d   : > { %v1738_v15 = vmul.f32 %v5131_v46, %v4710_v8  ;;  %v1739_v54 = vmul.f32 %v5140_v17, %v4720_v34  ;;  %v1742_v34 = vmul.f32 %v5168_v52, %v4742_v56  ;;  %v1744_v46 = vmul.f32 %v5185_v51, %v5754_v33 }
 0x27e   : > { %v1638_v2 = vmax.f32 %v5768_v42, %v1622_v38  ;;  %v1683_v50 = vmul.f32 1.442695, %v1653_v53  ;;  %v1731_v29 = vmul.f32 1.442695, %v1701_v32  ;;  %v1752_v44 = vadd.f32 %v5107_v36, %v1736_v57 }
 0x27f   : > { %v3997_v0 = vpop.eup %3996  ;;  %v1740_v36 = vmul.f32 %v5149_v9, %v4726_v31  ;;  %v1745_v56 = vmul.f32 %v5191_v20, %v4768_v25  ;;  %v1760_v9 = vadd.f32 %v5182_v59, %v1744_v46 }
 0x280   : > { %v1654_v7 = vsub.f32 %v5768_v42, %v1638_v2  ;;  %v1702_v63 = vsub.f32 %v1622_v38, %v1638_v2  ;;  %v5207_v18 = vpop.eup %3998  ;;  %4004 = vpow2.f32 %v1683_v50  ;;  %1829 = vperm.xlu1 %3851, %v3997_v0   ;;  %v1737_v38 = vmul.f32 %v5120_v61, %v4704_v27 }
 0x281   : > { %4006 = vpow2.f32 %v1731_v29  ;;  %1925 = vperm.xlu0 %3850, %v5207_v18   ;;  %v1755_v27 = vadd.f32 %v5136_v23, %v1739_v54  ;;  %v1743_v61 = vmul.f32 %v5173_v16, %v5752_v37  ;;  %v3433_v37 = vld [vmem:[#allocation3] ss:$0 sm:$0xff]  ;;  %v1761_v33 = vadd.f32 %v5189_v48, %v1745_v56  ;;  %v5770_v54 = vld [vmem:[#allocation36_spill] sm:$0xff] }
 0x282   : > { %v1685_v22 = vmul.f32 1.442695, %v1654_v7  ;;  %v1733_v49 = vmul.f32 1.442695, %v1702_v63  ;;  %v1753_v7 = vadd.f32 %v5117_v40, %v1737_v38  ;;  %v1756_v40 = vadd.f32 %v5146_v28, %v1740_v36 }
 0x283   : > { %v4001_v39 = vpop.eup %4000  ;;  %v1759_v17 = vadd.f32 %v5176_v43, %v1743_v61  ;;  %v5772_v61 = vld [vmem:[#allocation38_spill] sm:$0xff] }
 0x284   : > { %v4003_v4 = vpop.eup %4002  ;;  %4008 = vpow2.f32 %v1685_v22  ;;  %1834 = vperm.xlu1 %3851, %v4001_v39   ;;  %v1754_v22 = vadd.f32 %v5128_v6, %v1738_v15  ;;  %v1748_v52 = vmul.f32 %v4001_v39, %v4784_v45 }
 0x285   : > { %4010 = vpow2.f32 %v1733_v49  ;;  %1930 = vperm.xlu0 %3850, %v4003_v4   ;;  %v1741_v49 = vmul.f32 %v5158_v1, %v4736_v60  ;;  %v1758_v60 = vadd.f32 %v5165_v13, %v1742_v34  ;;  %v1747_v1 = vmul.f32 %v3997_v0, %v4782_v58  ;;  %v3467_v0 = vld [vmem:[#allocation4] ss:$0 sm:$0xff] }
 0x286   : > { %4012 = vrcp.f32 %v5101_v26  ;;  %v1764_v48 = vadd.f32 %v4003_v4, %v1748_v52  ;;  %v5769_v4 = vld [vmem:[#allocation34_spill] sm:$0xff]  ;;  %v5775_v52 = vld [vmem:[#allocation39_spill] sm:$0xff] }
 0x287   : > { %4014 = vrcp.f32 %v1752_v44  ;;  %v1757_v31 = vadd.f32 %v5155_v24, %v1741_v49  ;;  %v1746_v24 = vmul.f32 %v5199_v41, %v4774_v19  ;;  %v1763_v43 = vadd.f32 %v5207_v18, %v1747_v1 }
 0x288   : > { %4016 = vrcp.f32 %v1753_v7 }
 0x289   : > { %4018 = vrcp.f32 %v1754_v22  ;;  %v1762_v25 = vadd.f32 %v5196_v62, %v1746_v24  ;;  %v5774_v24 = vld [vmem:[#allocation40_spill] sm:$0xff] }
 0x28a   : > { %4020 = vrcp.f32 %v1755_v27 }
 0x28b   : > { %4022 = vrcp.f32 %v1756_v40 }
 0x28c   : > { %4024 = vrcp.f32 %v1757_v31 }
 0x28d   : > { %v4005_v53 = vpop.eup %4004  ;;  %4026 = vrcp.f32 %v1758_v60 }
 0x28e   : > { %v4007_v26 = vpop.eup %4006  ;;  %1839 = vperm.xlu1 %3851, %v4005_v53   ;;  %4028 = vrcp.f32 %v1759_v17  ;;  %v1749_v59 = vmul.f32 %v4005_v53, %v5763_v55  ;;  %v5773_v17 = vld [vmem:[#allocation37_spill] sm:$0xff] }
 0x28f   : > { %1935 = vperm.xlu0 %3850, %v4007_v26   ;;  %4030 = vrcp.f32 %v1760_v9 }
 0x290   : > { %4032 = vrcp.f32 %v1761_v33  ;;  %v1765_v20 = vadd.f32 %v4007_v26, %v1749_v59  ;;  %v5771_v26 = vld [vmem:[#allocation35_spill] sm:$0xff] }
 0x291   : > { %v4009_v8 = vpop.eup %4008  ;;  %4034 = vrcp.f32 %v1762_v25 }
 0x292   : > { %v4011_v6 = vpop.eup %4010  ;;  %1844 = vperm.xlu1 %3851, %v4009_v8   ;;  %v1750_v58 = vmul.f32 %v4009_v8, %v5764_v10  ;;  %4036 = vrcp.f32 %v1763_v43 }
 0x293   : > { %1940 = vperm.xlu0 %3850, %v4011_v6   ;;  %v4013_v23 = vpop.eup %4012  ;;  %4038 = vrcp.f32 %v1764_v48  ;;  %v5776_v48 = vld [vmem:[#allocation42_spill] sm:$0xff] }
 0x294   : > { %v4015_v28 = vpop.eup %4014  ;;  %v1766_v45 = vadd.f32 %v4011_v6, %v1750_v58  ;;  %4040 = vrcp.f32 %v1765_v20 }
 0x295   : > { %v4017_v13 = vpop.eup %4016 }
 0x296   : > { %2155 = vperm.xlu1 %3851, %v4013_v23   ;;  %v4019_v16 = vpop.eup %4018  ;;  %4042 = vrcp.f32 %v1766_v45  ;;  %v5777_v45 = vld [vmem:[#allocation41_spill] sm:$0xff] }
 0x297   : > { %2160 = vperm.xlu0 %3850, %v4015_v28   ;;  %v4021_v19 = vpop.eup %4020 }
 0x298   : > { %v4023_v51 = vpop.eup %4022 }
 0x299   : > { %v4025_v41 = vpop.eup %4024 }
 0x29a   : > { %2271 = vperm.xlu1 %3851, %v3433_v37   ;;  %v4027_v62 = vpop.eup %4026 }
 0x29b   : > { %2165 = vperm.xlu0 %3850, %v4017_v13   ;;  %v4029_v32 = vpop.eup %4028 }
 0x29c   : > { %v4031_v55 = vpop.eup %4030 }
 0x29d   : > { %v4033_v42 = vpop.eup %4032 }
 0x29e   : > { %2170 = vperm.xlu1 %3851, %v4019_v16   ;;  %v4035_v2 = vpop.eup %4034 }
 0x29f   : > { %2175 = vperm.xlu0 %3850, %v4021_v19   ;;  %v4037_v10 = vpop.eup %4036 }
 0x2a0   : > { %v4039_v50 = vpop.eup %4038 }
 0x2a1   : > { %v4041_v29 = vpop.eup %4040 }
 0x2a2   : > { %2180 = vperm.xlu1 %3851, %v4023_v51  }
 0x2a3   : > { %2185 = vperm.xlu0 %3850, %v4025_v41   ;;  %v4043_v63 = vpop.eup %4042 }
 0x2a6   : > { %2190 = vperm.xlu1 %3851, %v4027_v62  }
 0x2a7   : > { %2195 = vperm.xlu0 %3850, %v4029_v32  }
 0x2aa   : > { %2200 = vperm.xlu1 %3851, %v4031_v55  }
 0x2ab   : > { %2205 = vperm.xlu0 %3850, %v4033_v42  }
 0x2ae   : > { %2210 = vperm.xlu1 %3851, %v4035_v2   ;;  %v5778_v2 = vld [vmem:[#allocation44_spill] sm:$0xff] }
 0x2af   : > { %2215 = vperm.xlu0 %3850, %v4037_v10  }
 0x2b2   : > { %2220 = vperm.xlu1 %3851, %v4039_v50   ;;  %v5779_v50 = vld [vmem:[#allocation48_spill] sm:$0xff] }
 0x2b3   : > { %2225 = vperm.xlu0 %3850, %v4041_v29  }
 0x2b6   : > { %2230 = vperm.xlu1 %3851, %v4043_v63  }
 0x2b7   : > { %2846 = vperm.xlu0 %3850, %v3467_v0  }
 0x2c8   : > { %v1770_v18 = vpop.permute.xlu0 %1769 }
 0x2c9   : > { %v1866_v57 = vpop.permute.xlu1 %1865  ;;  %v1847_v39 = vmul.f32 %v1770_v18, %v4892_v3  ;;  %v5780_v18 = vld [vmem:[#allocation43_spill] sm:$0xff] }
 0x2ca   : > { %v1943_v44 = vmul.f32 %v1866_v57, %v5769_v4 }
 0x2cc   : > { %v1871_v38 = vpop.permute.xlu0 %1870  ;;  %v1959_v15 = vadd.f32 %v1943_v44, %v1847_v39  ;;  %v5781_v39 = vld [vmem:[#allocation49_spill] sm:$0xff] }
 0x2cd   : > { %v1775_v7 = vpop.permute.xlu1 %1774  ;;  %v1944_v22 = vmul.f32 %v1871_v38, %v5770_v54  ;;  %v5783_v54 = vld [vmem:[#allocation50_spill] sm:$0xff] }
 0x2ce   : > { %v1848_v36 = vmul.f32 %v1775_v7, %v4887_v5  ;;  %3647 = vmatprep.mubr.f32.mxu0 %v1959_v15  ;;  %v5782_v15 = vld [vmem:[#allocation46_spill] sm:$0xff] }
 0x2d0   : > { %v1960_v53 = vadd.f32 %v1944_v22, %v1848_v36  ;;  %v1876_v27 = vpop.permute.xlu0 %1875 }
 0x2d1   : > { %v1780_v49 = vpop.permute.xlu1 %1779  ;;  %v1945_v8 = vmul.f32 %v1876_v27, %v5771_v26  ;;  %v5784_v27 = vld [vmem:[#allocation51_spill] sm:$0xff] }
 0x2d2   : > { %v1849_v40 = vmul.f32 %v1780_v49, %v4901_v30  ;;  %3648 = vmatmul.mubr.f32.vlgmr.msra.gmra.mxu0 %v1960_v53 }
 0x2d4   : > { %v1961_v34 = vadd.f32 %v1945_v8, %v1849_v40  ;;  %v1881_v3 = vpop.permute.xlu0 %1880  ;;  %v5785_v8 = vld [vmem:[#allocation45_spill] sm:$0xff] }
 0x2d5   : > { %v1785_v31 = vpop.permute.xlu1 %1784  ;;  %v1946_v6 = vmul.f32 %v1881_v3, %v5772_v61 }
 0x2d6   : > { %v1850_v60 = vmul.f32 %v1785_v31, %v4909_v47  ;;  %3650 = vmatprep.mubr.f32.mxu0 %v1961_v34  ;;  %v5786_v31 = vld [vmem:[#allocation52_spill] sm:$0xff] }
 0x2d8   : > { %v1962_v46 = vadd.f32 %v1946_v6, %v1850_v60  ;;  %v1886_v23 = vpop.permute.xlu0 %1885  ;;  %v5787_v60 = vld [vmem:[#allocation47_spill] sm:$0xff] }
 0x2d9   : > { %v1790_v5 = vpop.permute.xlu1 %1789  ;;  %v1947_v56 = vmul.f32 %v1886_v23, %v5773_v17  ;;  %v5788_v17 = vld [vmem:[#allocation53_spill] sm:$0xff] }
 0x2da   : > { %v1851_v28 = vmul.f32 %v1790_v5, %v4915_v35  ;;  %3651 = vmatmul.mubr.f32.gmra.mxu0 %v1962_v46 }
 0x2dc   : > { %v1963_v37 = vadd.f32 %v1947_v56, %v1851_v28  ;;  %v1891_v9 = vpop.permute.xlu0 %1890 }
 0x2dd   : > { %v1795_v30 = vpop.permute.xlu1 %1794  ;;  %v1948_v33 = vmul.f32 %v1891_v9, %v5774_v24 }
 0x2de   : > { %v1852_v1 = vmul.f32 %v1795_v30, %v4921_v11  ;;  %3653 = vmatprep.mubr.f32.mxu0 %v1963_v37  ;;  %v5789_v37 = vld [vmem:[#allocation54_spill] sm:$0xff] }
 0x2e0   : > { %v1964_v13 = vadd.f32 %v1948_v33, %v1852_v1  ;;  %v1896_v25 = vpop.permute.xlu0 %1895  ;;  %v5790_v33 = vld [vmem:[#allocation55_spill] sm:$0xff] }
 0x2e1   : > { %v1800_v47 = vpop.permute.xlu1 %1799  ;;  %v1949_v16 = vmul.f32 %v1896_v25, %v5775_v52  ;;  %v5791_v25 = vld [vmem:[#allocation56_spill] sm:$0xff] }
 0x2e2   : > { %v1853_v43 = vmul.f32 %v1800_v47, %v4927_v21  ;;  %3654 = vmatmul.mubr.f32.gmra.mxu0 %v1964_v13 }
 0x2e4   : > { %v1965_v59 = vadd.f32 %v1949_v16, %v1853_v43  ;;  %v1901_v19 = vpop.permute.xlu0 %1900  ;;  %v2357_v16 = vld [vmem:[%s5605_s11 + $0x18] sm:$0xff]  ;;  %v2356_v43 = vld [vmem:[%s5605_s11 + $0x10] sm:$0xff] }
 0x2e5   : > { %v1805_v35 = vpop.permute.xlu1 %1804  ;;  %v1950_v58 = vmul.f32 %v1901_v19, %v5776_v48  ;;  %3671 = vmatprep.subr.mxu1 %v2357_v16  ;;  %v2354_v19 = vld [vmem:[%s5605_s11] sm:$0xff] }
 0x2e6   : > { %v1854_v51 = vmul.f32 %v1805_v35, %v4933_v14  ;;  %3656 = vmatprep.mubr.f32.mxu0 %v1965_v59  ;;  %3672 = vmatpush3.msra.mxu1 %v2357_v16  ;;  %v2355_v59 = vld [vmem:[%s5605_s11 + $0x8] sm:$0xff] }
 0x2e7   : > { %3673 = vmatprep.subr.mxu1 %v2356_v43  ;;  %v2622_v35 = vld [vmem:[%s5607_s14 + $0x8] sm:$0xff] }
 0x2e8   : > { %v1966_v20 = vadd.f32 %v1950_v58, %v1854_v51  ;;  %v1906_v41 = vpop.permute.xlu0 %1905  ;;  %3674 = vmatpush3.msra.mxu1 %v2356_v43 }
 0x2e9   : > { %v1810_v11 = vpop.permute.xlu1 %1809  ;;  %v1951_v62 = vmul.f32 %v1906_v41, %v5777_v45  ;;  %3675 = vmatprep.subr.mxu1 %v2355_v59 }
 0x2ea   : > { %v1855_v32 = vmul.f32 %v1810_v11, %v4939_v12  ;;  %3657 = vmatmul.mubr.f32.gmra.mxu0 %v1966_v20  ;;  %3676 = vmatpush3.msra.mxu1 %v2355_v59 }
 0x2eb   : > { %3677 = vmatprep.subr.mxu1 %v2354_v19 }
 0x2ec   : > { %v1967_v55 = vadd.f32 %v1951_v62, %v1855_v32  ;;  %v1911_v42 = vpop.permute.xlu0 %1910  ;;  %3678 = vmatpush3.msra.mxu1 %v2354_v19 }
 0x2ed   : > { %v1815_v21 = vpop.permute.xlu1 %1814  ;;  %v1952_v10 = vmul.f32 %v1911_v42, %v5778_v2  ;;  %3703 = vmatprep.subr.mxu1 %v2622_v35 }
 0x2ee   : > { %v1856_v29 = vmul.f32 %v1815_v21, %v5779_v50  ;;  %3659 = vmatprep.mubr.f32.mxu0 %v1967_v55 }
 0x2f0   : > { %v1968_v0 = vadd.f32 %v1952_v10, %v1856_v29  ;;  %v1916_v63 = vpop.permute.xlu0 %1915 }
 0x2f1   : > { %v1820_v14 = vpop.permute.xlu1 %1819  ;;  %v1953_v57 = vmul.f32 %v1916_v63, %v5780_v18 }
 0x2f2   : > { %v1857_v4 = vmul.f32 %v1820_v14, %v5781_v39  ;;  %3660 = vmatmul.mubr.f32.gmra.mxu0 %v1968_v0 }
 0x2f4   : > { %v1969_v44 = vadd.f32 %v1953_v57, %v1857_v4  ;;  %v1921_v38 = vpop.permute.xlu0 %1920 }
 0x2f5   : > { %v1825_v12 = vpop.permute.xlu1 %1824  ;;  %v1954_v7 = vmul.f32 %v1921_v38, %v5782_v15  ;;  %v2621_v38 = vld [vmem:[%s5607_s14] sm:$0xff] }
 0x2f6   : > { %v1858_v22 = vmul.f32 %v1825_v12, %v5783_v54  ;;  %3662 = vmatprep.mubr.f32.mxu0 %v1969_v44 }
 0x2f8   : > { %v1970_v36 = vadd.f32 %v1954_v7, %v1858_v22 }
 0x2fa   : > { %3663 = vmatmul.mubr.f32.gmra.mxu0 %v1970_v36 }
 0x2fb   : > { %v1830_v53 = vpop.permute.xlu1 %1829 }
 0x2fc   : > { %v1859_v49 = vmul.f32 %v1830_v53, %v5784_v27  ;;  %v1926_v26 = vpop.permute.xlu0 %1925 }
 0x2fd   : > { %v1955_v40 = vmul.f32 %v1926_v26, %v5785_v8 }
 0x2ff   : > { %v1971_v34 = vadd.f32 %v1955_v40, %v1859_v49  ;;  %v1835_v3 = vpop.permute.xlu1 %1834 }
 0x300   : > { %v1860_v61 = vmul.f32 %v1835_v3, %v5786_v31  ;;  %v1931_v6 = vpop.permute.xlu0 %1930 }
 0x301   : > { %v1956_v46 = vmul.f32 %v1931_v6, %v5787_v60  ;;  %3665 = vmatprep.mubr.f32.mxu0 %v1971_v34 }
 0x303   : > { %v1972_v23 = vadd.f32 %v1956_v46, %v1860_v61 }
 0x305   : > { %3666 = vmatmul.mubr.f32.gmra.mxu0 %v1972_v23 }
 0x309   : > { %v1840_v5 = vpop.permute.xlu1 %1839 }
 0x30a   : > { %v1861_v56 = vmul.f32 %v1840_v5, %v5788_v17  ;;  %v1936_v28 = vpop.permute.xlu0 %1935 }
 0x30b   : > { %v1957_v9 = vmul.f32 %v1936_v28, %v5789_v37 }
 0x30d   : > { %v1973_v30 = vadd.f32 %v1957_v9, %v1861_v56  ;;  %v1845_v24 = vpop.permute.xlu1 %1844 }
 0x30e   : > { %v1862_v1 = vmul.f32 %v1845_v24, %v5790_v33  ;;  %v1941_v13 = vpop.permute.xlu0 %1940 }
 0x30f   : > { %v1958_v47 = vmul.f32 %v1941_v13, %v5791_v25  ;;  %3668 = vmatprep.mubr.f32.mxu0 %v1973_v30 }
 0x311   : > { %v1974_v52 = vadd.f32 %v1958_v47, %v1862_v1  ;;  %v2156_v48 = vpop.permute.xlu1 %2155 }
 0x312   : > { %v2161_v58 = vpop.permute.xlu0 %2160 }
 0x313   : > { %3669 = vmatmul.mubr.f32.gmra.mxu0 %v1974_v52 }
 0x315   : > { %v5296_v41 = vpop.permute.xlu1 %2271 }
 0x316   : > { %v2166_v14 = vpop.permute.xlu0 %2165 }
 0x319   : > { %v2171_v2 = vpop.permute.xlu1 %2170 }
 0x31a   : > { %v2176_v8 = vpop.permute.xlu0 %2175 }
 0x31d   : > { %v2181_v22 = vpop.permute.xlu1 %2180 }
 0x31e   : > { %v2186_v30 = vpop.permute.xlu0 %2185 }
 0x321   : > { %v2191_v5 = vpop.permute.xlu1 %2190 }
 0x325   : > { %v2201_v59 = vpop.permute.xlu1 %2200 }
 0x392   : > { %v3649_v51 = vpop.f32.mrf.mxu0 }
 0x393   : > { %v2234_v20 = vmul.f32 %v3649_v51, %v2161_v58 }
 0x394   : > { %v2074_v11 = vpop.f32.mrf.mxu0 }
 0x395   : > { %vm2250_vm0 = vcmp.ge.f32.partialorder %v2234_v20, 0.0  ;;  %v2275_v45 = vmul.f32 %v5296_v41, %v2234_v20  ;;  %v2233_v62 = vmul.f32 %v2156_v48, %v2074_v11  ;;  %v2323_v0 = vmul.f32 0.5, %v2234_v20 }
 0x397   : > { %v2291_v32 = vsel %vm2250_vm0, %v2234_v20, %v2275_v45  ;;  %vm2249_vm1 = vcmp.ge.f32.partialorder %v2233_v62, 0.0  ;;  %v2274_v55 = vmul.f32 %v5296_v41, %v2233_v62  ;;  %v2322_v29 = vmul.f32 0.5, %v2233_v62  ;;  %v2196_v20 = vpop.permute.xlu0 %2195 }
 0x398   : > { %v2307_v42 = vmul.f32 0.5, %v2291_v32 }
 0x399   : > { %v2290_v21 = vsel %vm2249_vm1, %v2233_v62, %v2274_v55  ;;  %vm2630_vm1 = vcmask 130048  }
 0x39a   : > { %v3652_v10 = vpop.f32.mrf.mxu0  ;;  %v2306_v50 = vmul.f32 0.5, %v2290_v21  ;;  %v2339_v44 = vadd.f32 %v2323_v0, %v2307_v42 }
 0x39b   : > { %v2236_v63 = vmul.f32 %v3652_v10, %v2171_v2 }
 0x39c   : > { %v2084_v18 = vpop.f32.mrf.mxu0  ;;  %v2338_v57 = vadd.f32 %v2322_v29, %v2306_v50  ;;  %v2211_v50 = vpop.permute.xlu1 %2210 }
 0x39d   : > { %vm2252_vm3 = vcmp.ge.f32.partialorder %v2236_v63, 0.0  ;;  %v2277_v39 = vmul.f32 %v5296_v41, %v2236_v63  ;;  %v2235_v4 = vmul.f32 %v2166_v14, %v2084_v18  ;;  %v2325_v49 = vmul.f32 0.5, %v2236_v63 }
 0x39e   : > { %3679 = vmatprep.mubr.msk.f32.mxu1 %vm2358_vm2, %v2338_v57  ;;  %v2206_v57 = vpop.permute.xlu0 %2205 }
 0x39f   : > { %v2293_v12 = vsel %vm2252_vm3, %v2236_v63, %v2277_v39  ;;  %vm2251_vm4 = vcmp.ge.f32.partialorder %v2235_v4, 0.0  ;;  %v2276_v15 = vmul.f32 %v5296_v41, %v2235_v4  ;;  %3680 = vmatmul.mubr.msk.f32.vlgmr.msra.gmra.mxu1 %vm2358_vm2, %v2339_v44  ;;  %v2324_v53 = vmul.f32 0.5, %v2235_v4 }
 0x3a0   : > { %3704 = vmatpush3.msra.mxu1 %v2622_v35  ;;  %v2309_v7 = vmul.f32 0.5, %v2293_v12 }
 0x3a1   : > { %v2292_v54 = vsel %vm2251_vm4, %v2235_v4, %v2276_v15  ;;  %3705 = vmatprep.subr.mxu1 %v2621_v38 }
 0x3a2   : > { %v2308_v36 = vmul.f32 0.5, %v2292_v54  ;;  %v3655_v27 = vpop.f32.mrf.mxu0  ;;  %3706 = vmatpush3.msra.mxu1 %v2621_v38  ;;  %v2341_v61 = vadd.f32 %v2325_v49, %v2309_v7  ;;  %v2221_v49 = vpop.permute.xlu1 %2220 }
 0x3a3   : > { %v2238_v26 = vmul.f32 %v3655_v27, %v2181_v22 }
 0x3a4   : > { %v2094_v40 = vpop.f32.mrf.mxu0  ;;  %v2340_v34 = vadd.f32 %v2324_v53, %v2308_v36 }
 0x3a5   : > { %vm2254_vm5 = vcmp.ge.f32.partialorder %v2238_v26, 0.0  ;;  %v2279_v3 = vmul.f32 %v5296_v41, %v2238_v26  ;;  %v2237_v31 = vmul.f32 %v2176_v8, %v2094_v40  ;;  %v2327_v37 = vmul.f32 0.5, %v2238_v26 }
 0x3a6   : > { %3682 = vmatprep.mubr.msk.f32.mxu1 %vm2358_vm2, %v2340_v34 }
 0x3a7   : > { %v2295_v6 = vsel %vm2254_vm5, %v2238_v26, %v2279_v3  ;;  %vm2253_vm6 = vcmp.ge.f32.partialorder %v2237_v31, 0.0  ;;  %v2278_v60 = vmul.f32 %v5296_v41, %v2237_v31  ;;  %3683 = vmatmul.mubr.msk.f32.gmra.mxu1 %vm2358_vm2, %v2341_v61  ;;  %v2326_v56 = vmul.f32 0.5, %v2237_v31  ;;  %v2216_v3 = vpop.permute.xlu0 %2215 }
 0x3a8   : > { %v2311_v46 = vmul.f32 0.5, %v2295_v6 }
 0x3a9   : > { %v2294_v23 = vsel %vm2253_vm6, %v2237_v31, %v2278_v60 }
 0x3aa   : > { %v2310_v17 = vmul.f32 0.5, %v2294_v23  ;;  %v3658_v28 = vpop.f32.mrf.mxu0  ;;  %v2343_v25 = vadd.f32 %v2327_v37, %v2311_v46 }
 0x3ab   : > { %v2240_v9 = vmul.f32 %v3658_v28, %v2191_v5 }
 0x3ac   : > { %v2104_v24 = vpop.f32.mrf.mxu0  ;;  %v2342_v33 = vadd.f32 %v2326_v56, %v2310_v17 }
 0x3ad   : > { %vm2256_vm7 = vcmp.ge.f32.partialorder %v2240_v9, 0.0  ;;  %v2281_v1 = vmul.f32 %v5296_v41, %v2240_v9  ;;  %v2239_v13 = vmul.f32 %v2186_v30, %v2104_v24  ;;  %v2329_v58 = vmul.f32 0.5, %v2240_v9  ;;  %v2231_v30 = vpop.permute.xlu1 %2230 }
 0x3ae   : > { %3685 = vmatprep.mubr.msk.f32.mxu1 %vm2358_vm2, %v2342_v33 }
 0x3af   : > { %v2297_v47 = vsel %vm2256_vm7, %v2240_v9, %v2281_v1  ;;  %vm2255_vm8 = vcmp.ge.f32.partialorder %v2239_v13, 0.0  ;;  %v2280_v52 = vmul.f32 %v5296_v41, %v2239_v13  ;;  %3686 = vmatmul.mubr.msk.f32.gmra.mxu1 %vm2358_vm2, %v2343_v25  ;;  %v2328_v35 = vmul.f32 0.5, %v2239_v13  ;;  %v2226_v1 = vpop.permute.xlu0 %2225 }
 0x3b0   : > { %v2313_v16 = vmul.f32 0.5, %v2297_v47 }
 0x3b1   : > { %v2296_v43 = vsel %vm2255_vm8, %v2239_v13, %v2280_v52 }
 0x3b2   : > { %v2312_v19 = vmul.f32 0.5, %v2296_v43  ;;  %v3661_v48 = vpop.f32.mrf.mxu0  ;;  %v2345_v55 = vadd.f32 %v2329_v58, %v2313_v16 }
 0x3b3   : > { %v2242_v51 = vmul.f32 %v3661_v48, %v2201_v59 }
 0x3b4   : > { %v2114_v11 = vpop.f32.mrf.mxu0  ;;  %v2344_v45 = vadd.f32 %v2328_v35, %v2312_v19 }
 0x3b5   : > { %vm2258_vm9 = vcmp.ge.f32.partialorder %v2242_v51, 0.0  ;;  %v2283_v62 = vmul.f32 %v5296_v41, %v2242_v51  ;;  %v2241_v32 = vmul.f32 %v2196_v20, %v2114_v11  ;;  %v2331_v14 = vmul.f32 0.5, %v2242_v51  ;;  %v2605_v20 = vld [vmem:[%s5335_s18] sm:$0xff]  ;;  %v2606_v11 = vld [vmem:[%s5335_s18 + $0x8] sm:$0xff] }
 0x3b6   : > { %3688 = vmatprep.mubr.msk.f32.mxu1 %vm2358_vm2, %v2344_v45  ;;  %v2607_v45 = vld [vmem:[%s5335_s18 + $0x10] sm:$0xff] }
 0x3b7   : > { %v2299_v42 = vsel %vm2258_vm9, %v2242_v51, %v2283_v62  ;;  %vm2257_vm10 = vcmp.ge.f32.partialorder %v2241_v32, 0.0  ;;  %v2282_v21 = vmul.f32 %v5296_v41, %v2241_v32  ;;  %3689 = vmatmul.mubr.msk.f32.gmra.mxu1 %vm2358_vm2, %v2345_v55  ;;  %v2330_v0 = vmul.f32 0.5, %v2241_v32  ;;  %v5346_v62 = vld [vmem:[%s5606_s12 + $0x18] sm:$0xff]  ;;  %v2609_v55 = vld [vmem:[%s5335_s18 + $0x20] sm:$0xff] }
 0x3b8   : > { %v2315_v2 = vmul.f32 0.5, %v2299_v42  ;;  %3795 = vmatprep.subr.mxu1 %v5346_v62  ;;  %v5358_v42 = vld [vmem:[%s5606_s12 + $0x10] sm:$0xff] }
 0x3b9   : > { %v2298_v10 = vsel %vm2257_vm10, %v2241_v32, %v2282_v21  ;;  %v2608_v32 = vld [vmem:[%s5335_s18 + $0x18] sm:$0xff]  ;;  %v2610_v21 = vld [vmem:[%s5335_s18 + $0x28] sm:$0xff] }
 0x3ba   : > { %v2314_v29 = vmul.f32 0.5, %v2298_v10  ;;  %v3664_v63 = vpop.f32.mrf.mxu0  ;;  %v2347_v12 = vadd.f32 %v2331_v14, %v2315_v2  ;;  %v2611_v2 = vld [vmem:[%s5335_s18 + $0x30] sm:$0xff]  ;;  %v5368_v10 = vld [vmem:[%s5606_s12 + $0x8] sm:$0xff] }
 0x3bb   : > { %v2244_v18 = vmul.f32 %v3664_v63, %v2211_v50  ;;  %v5374_v50 = vld [vmem:[%s5606_s12] sm:$0xff]  ;;  %v2614_v63 = vld [vmem:[%s5335_s18 + $0x48] sm:$0xff]  ;;  %v2615_v14 = vld [vmem:[%s5335_s18 + $0x50] sm:$0xff] }
 0x3bc   : > { %v2124_v39 = vpop.f32.mrf.mxu0  ;;  %v2346_v4 = vadd.f32 %v2330_v0, %v2314_v29  ;;  %v2612_v29 = vld [vmem:[%s5335_s18 + $0x38] sm:$0xff]  ;;  %v2613_v0 = vld [vmem:[%s5335_s18 + $0x40] sm:$0xff] }
 0x3bd   : > { %vm2260_vm11 = vcmp.ge.f32.partialorder %v2244_v18, 0.0  ;;  %v2285_v44 = vmul.f32 %v5296_v41, %v2244_v18  ;;  %v2243_v38 = vmul.f32 %v2206_v57, %v2124_v39  ;;  %v2333_v27 = vmul.f32 0.5, %v2244_v18  ;;  %v2617_v57 = vld [vmem:[%s5335_s18 + $0x60] sm:$0xff]  ;;  %v2618_v39 = vld [vmem:[%s5335_s18 + $0x68] sm:$0xff] }
 0x3be   : > { %3691 = vmatprep.mubr.msk.f32.mxu1 %vm2358_vm2, %v2346_v4  ;;  %v2619_v4 = vld [vmem:[%s5335_s18 + $0x70] sm:$0xff] }
 0x3bf   : > { %v2301_v15 = vsel %vm2260_vm11, %v2244_v18, %v2285_v44  ;;  %vm2259_vm12 = vcmp.ge.f32.partialorder %v2243_v38, 0.0  ;;  %v2284_v7 = vmul.f32 %v5296_v41, %v2243_v38  ;;  %3692 = vmatmul.mubr.msk.f32.gmra.mxu1 %vm2358_vm2, %v2347_v12  ;;  %v2332_v53 = vmul.f32 0.5, %v2243_v38  ;;  %v2616_v18 = vld [vmem:[%s5335_s18 + $0x58] sm:$0xff]  ;;  %v2883_v12 = vld [vmem:[%s5609_s16 + $0x10] sm:$0xff] }
 0x3c0   : > { %v2317_v54 = vmul.f32 0.5, %v2301_v15  ;;  %v2620_v44 = vld [vmem:[%s5335_s18 + $0x78] sm:$0xff]  ;;  %v2882_v15 = vld [vmem:[%s5609_s16 + $0x8] sm:$0xff] }
 0x3c1   : > { %v2300_v22 = vsel %vm2259_vm12, %v2243_v38, %v2284_v7  ;;  %v2884_v38 = vld [vmem:[%s5609_s16 + $0x18] sm:$0xff]  ;;  %v2881_v7 = vld [vmem:[%s5609_s16] sm:$0xff] }
 0x3c2   : > { %v2316_v36 = vmul.f32 0.5, %v2300_v22  ;;  %v2349_v34 = vadd.f32 %v2333_v27, %v2317_v54  ;;  %3731 = vmatprep.subr.mxu0 %v2884_v38 }
 0x3c3   : > { %3732 = vmatpush3.msra.mxu0 %v2884_v38 }
 0x3c4   : > { %v2348_v8 = vadd.f32 %v2332_v53, %v2316_v36  ;;  %3733 = vmatprep.subr.mxu0 %v2883_v12 }
 0x3c5   : > { %v3667_v26 = vpop.f32.mrf.mxu0  ;;  %3734 = vmatpush3.msra.mxu0 %v2883_v12 }
 0x3c6   : > { %v2246_v40 = vmul.f32 %v3667_v26, %v2221_v49  ;;  %3694 = vmatprep.mubr.msk.f32.mxu1 %vm2358_vm2, %v2348_v8  ;;  %3735 = vmatprep.subr.mxu0 %v2882_v15 }
 0x3c7   : > { %v2134_v31 = vpop.f32.mrf.mxu0  ;;  %3695 = vmatmul.mubr.msk.f32.gmra.mxu1 %vm2358_vm2, %v2349_v34  ;;  %3736 = vmatpush3.msra.mxu0 %v2882_v15 }
 0x3c8   : > { %vm2262_vm13 = vcmp.ge.f32.partialorder %v2246_v40, 0.0  ;;  %v2287_v61 = vmul.f32 %v5296_v41, %v2246_v40  ;;  %v2245_v6 = vmul.f32 %v2216_v3, %v2134_v31  ;;  %v2335_v28 = vmul.f32 0.5, %v2246_v40  ;;  %3737 = vmatprep.subr.mxu0 %v2881_v7 }
 0x3c9   : > { %3738 = vmatpush3.msra.mxu0 %v2881_v7 }
 0x3ca   : > { %v2303_v60 = vsel %vm2262_vm13, %v2246_v40, %v2287_v61  ;;  %vm2261_vm14 = vcmp.ge.f32.partialorder %v2245_v6, 0.0  ;;  %v2286_v46 = vmul.f32 %v5296_v41, %v2245_v6  ;;  %v2334_v56 = vmul.f32 0.5, %v2245_v6  ;;  %3763 = vmatprep.subr.mxu0 %v5346_v62 }
 0x3cb   : > { %v2319_v23 = vmul.f32 0.5, %v2303_v60 }
 0x3cc   : > { %v2302_v5 = vsel %vm2261_vm14, %v2245_v6, %v2286_v46 }
 0x3cd   : > { %v2318_v17 = vmul.f32 0.5, %v2302_v5  ;;  %v2351_v9 = vadd.f32 %v2335_v28, %v2319_v23 }
 0x3cf   : > { %v2350_v37 = vadd.f32 %v2334_v56, %v2318_v17 }
 0x3d1   : > { %3697 = vmatprep.mubr.msk.f32.mxu1 %vm2358_vm2, %v2350_v37 }
 0x3d2   : > { %3698 = vmatmul.mubr.msk.f32.gmra.mxu1 %vm2358_vm2, %v2351_v9 }
 0x3d3   : > { %v3670_v24 = vpop.f32.mrf.mxu0 }
 0x3d4   : > { %v2248_v33 = vmul.f32 %v3670_v24, %v2231_v30 }
 0x3d5   : > { %v2144_v13 = vpop.f32.mrf.mxu0 }
 0x3d6   : > { %vm2264_vm15 = vcmp.ge.f32.partialorder %v2248_v33, 0.0  ;;  %v2289_v25 = vmul.f32 %v5296_v41, %v2248_v33  ;;  %v2247_v47 = vmul.f32 %v2226_v1, %v2144_v13  ;;  %v2337_v48 = vmul.f32 0.5, %v2248_v33 }
 0x3d8   : > { %v2305_v52 = vsel %vm2264_vm15, %v2248_v33, %v2289_v25  ;;  %vm2263_vm0 = vcmp.ge.f32.partialorder %v2247_v47, 0.0  ;;  %v2288_v16 = vmul.f32 %v5296_v41, %v2247_v47  ;;  %v2336_v35 = vmul.f32 0.5, %v2247_v47 }
 0x3d9   : > { %v2321_v43 = vmul.f32 0.5, %v2305_v52 }
 0x3da   : > { %v2304_v59 = vsel %vm2263_vm0, %v2247_v47, %v2288_v16 }
 0x3db   : > { %v2320_v19 = vmul.f32 0.5, %v2304_v59  ;;  %v2353_v51 = vadd.f32 %v2337_v48, %v2321_v43 }
 0x3dd   : > { %v2352_v58 = vadd.f32 %v2336_v35, %v2320_v19 }
 0x3df   : > { %3700 = vmatprep.mubr.msk.f32.mxu1 %vm2358_vm2, %v2352_v58 }
 0x3e0   : > { %3701 = vmatmul.mubr.msk.f32.gmra.mxu1 %vm2358_vm2, %v2353_v51 }
 0x3e1   : > { %3707 = vmatprep.mubr.msk.f32.mxu1 %vm2630_vm1, %v2605_v20 }
 0x3e4   : > { %3708 = vmatmul.mubr.msk.f32.vlgmr.msra.gmra.mxu1 %vm2630_vm1, %v2606_v11 }
 0x3e5   : > { %3710 = vmatprep.mubr.msk.f32.mxu1 %vm2630_vm1, %v2607_v45  ;;  %3799 = vmatpush3.msra.mxu1 %v5346_v62  ;;  %v5444_v45 = vld [vmem:[%s5608_s15] ss:$0 sm:$0xff] }
 0x3e6   : > { %3796 = vmatprep.subr.mxu1 %v5358_v42 }
 0x3e7   : > { %3800 = vmatpush3.msra.mxu1 %v5358_v42 }
 0x3e8   : > { %3711 = vmatmul.mubr.msk.f32.gmra.mxu1 %vm2630_vm1, %v2608_v32  ;;  %3797 = vmatprep.subr.mxu1 %v5368_v10 }
 0x3e9   : > { %3713 = vmatprep.mubr.msk.f32.mxu1 %vm2630_vm1, %v2609_v55  ;;  %3801 = vmatpush3.msra.mxu1 %v5368_v10 }
 0x3ea   : > { %3798 = vmatprep.subr.mxu1 %v5374_v50 }
 0x3eb   : > { %3802 = vmatpush3.msra.mxu1 %v5374_v50 }
 0x3ec   : > { %3714 = vmatmul.mubr.msk.f32.gmra.mxu1 %vm2630_vm1, %v2610_v21 }
 0x3ed   : > { %3716 = vmatprep.mubr.msk.f32.mxu1 %vm2630_vm1, %v2611_v2 }
 0x3f0   : > { %3717 = vmatmul.mubr.msk.f32.gmra.mxu1 %vm2630_vm1, %v2612_v29 }
 0x3f1   : > { %3719 = vmatprep.mubr.msk.f32.mxu1 %vm2630_vm1, %v2613_v0 }
 0x3f4   : > { %3720 = vmatmul.mubr.msk.f32.gmra.mxu1 %vm2630_vm1, %v2614_v63  ;;  %v5449_v63 = vpop.permute.xlu0 %2846 }
 0x3f5   : > { %3722 = vmatprep.mubr.msk.f32.mxu1 %vm2630_vm1, %v2615_v14 }
 0x3f8   : > { %3723 = vmatmul.mubr.msk.f32.gmra.mxu1 %vm2630_vm1, %v2616_v18 }
 0x3f9   : > { %3725 = vmatprep.mubr.msk.f32.mxu1 %vm2630_vm1, %v2617_v57 }
 0x3fc   : > { %3726 = vmatmul.mubr.msk.f32.gmra.mxu1 %vm2630_vm1, %v2618_v39 }
 0x3fd   : > { %3728 = vmatprep.mubr.msk.f32.mxu1 %vm2630_vm1, %v2619_v4 }
 0x400   : > { %3729 = vmatmul.mubr.msk.f32.gmra.mxu1 %vm2630_vm1, %v2620_v44 }
 0x45f   : > { %v5412_v54 = vpop.f32.mrf.mxu1 }
 0x461   : > { %v5414_v22 = vpop.f32.mrf.mxu1 }
 0x467   : > { %v3684_v36 = vpop.f32.mrf.mxu1 }
 0x468   : > { %v2571_v53 = vmul.f32 %v3684_v36, %v5296_v41  ;;  %vm2555_vm3 = vcmp.ge.f32.partialorder %v3684_v36, 0.0 }
 0x469   : > { %v2483_v27 = vpop.f32.mrf.mxu1 }
 0x46a   : > { %vm2554_vm4 = vcmp.ge.f32.partialorder %v2483_v27, 0.0  ;;  %v2570_v49 = vmul.f32 %v2483_v27, %v5296_v41  ;;  %v2587_v8 = vsel %vm2555_vm3, %v3684_v36, %v2571_v53 }
 0x46c   : > { %v2586_v26 = vsel %vm2554_vm4, %v2483_v27, %v2570_v49 }
 0x46d   : > { %3774 = vmatprep.mubr.msk.f32.mxu1 %vm2358_vm2, %v2586_v26 }
 0x46e   : > { %3775 = vmatmul.mubr.msk.f32.vlgmr.msra.gmra.mxu1 %vm2358_vm2, %v2587_v8 }
 0x46f   : > { %v3687_v40 = vpop.f32.mrf.mxu1 }
 0x470   : > { %v2573_v34 = vmul.f32 %v3687_v40, %v5296_v41  ;;  %vm2557_vm5 = vcmp.ge.f32.partialorder %v3687_v40, 0.0 }
 0x471   : > { %v2493_v3 = vpop.f32.mrf.mxu1 }
 0x472   : > { %vm2556_vm6 = vcmp.ge.f32.partialorder %v2493_v3, 0.0  ;;  %v2572_v31 = vmul.f32 %v2493_v3, %v5296_v41  ;;  %v2589_v6 = vsel %vm2557_vm5, %v3687_v40, %v2573_v34 }
 0x474   : > { %v2588_v61 = vsel %vm2556_vm6, %v2493_v3, %v2572_v31 }
 0x475   : > { %3777 = vmatprep.mubr.msk.f32.mxu1 %vm2358_vm2, %v2588_v61 }
 0x476   : > { %3778 = vmatmul.mubr.msk.f32.gmra.mxu1 %vm2358_vm2, %v2589_v6 }
 0x477   : > { %v3690_v60 = vpop.f32.mrf.mxu1 }
 0x478   : > { %v2575_v46 = vmul.f32 %v3690_v60, %v5296_v41  ;;  %vm2559_vm7 = vcmp.ge.f32.partialorder %v3690_v60, 0.0 }
 0x479   : > { %v2503_v23 = vpop.f32.mrf.mxu1 }
 0x47a   : > { %vm2558_vm8 = vcmp.ge.f32.partialorder %v2503_v23, 0.0  ;;  %v2574_v5 = vmul.f32 %v2503_v23, %v5296_v41  ;;  %v2591_v56 = vsel %vm2559_vm7, %v3690_v60, %v2575_v46 }
 0x47c   : > { %v2590_v17 = vsel %vm2558_vm8, %v2503_v23, %v2574_v5 }
 0x47d   : > { %3780 = vmatprep.mubr.msk.f32.mxu1 %vm2358_vm2, %v2590_v17 }
 0x47e   : > { %3781 = vmatmul.mubr.msk.f32.gmra.mxu1 %vm2358_vm2, %v2591_v56 }
 0x47f   : > { %v3693_v28 = vpop.f32.mrf.mxu1 }
 0x480   : > { %v2577_v37 = vmul.f32 %v3693_v28, %v5296_v41  ;;  %vm2561_vm9 = vcmp.ge.f32.partialorder %v3693_v28, 0.0 }
 0x481   : > { %v2513_v9 = vpop.f32.mrf.mxu1 }
 0x482   : > { %vm2560_vm10 = vcmp.ge.f32.partialorder %v2513_v9, 0.0  ;;  %v2576_v30 = vmul.f32 %v2513_v9, %v5296_v41  ;;  %v2593_v33 = vsel %vm2561_vm9, %v3693_v28, %v2577_v37 }
 0x484   : > { %v2592_v24 = vsel %vm2560_vm10, %v2513_v9, %v2576_v30 }
 0x485   : > { %3783 = vmatprep.mubr.msk.f32.mxu1 %vm2358_vm2, %v2592_v24 }
 0x486   : > { %3784 = vmatmul.mubr.msk.f32.gmra.mxu1 %vm2358_vm2, %v2593_v33 }
 0x487   : > { %v3696_v1 = vpop.f32.mrf.mxu1 }
 0x488   : > { %v2579_v13 = vmul.f32 %v3696_v1, %v5296_v41  ;;  %vm2563_vm11 = vcmp.ge.f32.partialorder %v3696_v1, 0.0 }
 0x489   : > { %v2523_v25 = vpop.f32.mrf.mxu1 }
 0x48a   : > { %vm2562_vm12 = vcmp.ge.f32.partialorder %v2523_v25, 0.0  ;;  %v2578_v47 = vmul.f32 %v2523_v25, %v5296_v41  ;;  %v2595_v16 = vsel %vm2563_vm11, %v3696_v1, %v2579_v13 }
 0x48c   : > { %v2594_v52 = vsel %vm2562_vm12, %v2523_v25, %v2578_v47 }
 0x48d   : > { %3786 = vmatprep.mubr.msk.f32.mxu1 %vm2358_vm2, %v2594_v52 }
 0x48e   : > { %3787 = vmatmul.mubr.msk.f32.gmra.mxu1 %vm2358_vm2, %v2595_v16 }
 0x492   : > { %v3699_v43 = vpop.f32.mrf.mxu1 }
 0x493   : > { %v2581_v59 = vmul.f32 %v3699_v43, %v5296_v41  ;;  %vm2565_vm13 = vcmp.ge.f32.partialorder %v3699_v43, 0.0 }
 0x494   : > { %v2533_v19 = vpop.f32.mrf.mxu1 }
 0x495   : > { %vm2564_vm14 = vcmp.ge.f32.partialorder %v2533_v19, 0.0  ;;  %v2580_v35 = vmul.f32 %v2533_v19, %v5296_v41  ;;  %v2597_v58 = vsel %vm2565_vm13, %v3699_v43, %v2581_v59 }
 0x497   : > { %v2596_v48 = vsel %vm2564_vm14, %v2533_v19, %v2580_v35 }
 0x498   : > { %3789 = vmatprep.mubr.msk.f32.mxu1 %vm2358_vm2, %v2596_v48 }
 0x499   : > { %3790 = vmatmul.mubr.msk.f32.gmra.mxu1 %vm2358_vm2, %v2597_v58 }
 0x4a0   : > { %v3702_v51 = vpop.f32.mrf.mxu1 }
 0x4a1   : > { %v2583_v20 = vmul.f32 %v3702_v51, %v5296_v41  ;;  %vm2567_vm15 = vcmp.ge.f32.partialorder %v3702_v51, 0.0 }
 0x4a2   : > { %v2543_v11 = vpop.f32.mrf.mxu1 }
 0x4a3   : > { %vm2566_vm0 = vcmp.ge.f32.partialorder %v2543_v11, 0.0  ;;  %v2582_v32 = vmul.f32 %v2543_v11, %v5296_v41  ;;  %v2599_v0 = vsel %vm2567_vm15, %v3702_v51, %v2583_v20 }
 0x4a4   : > { %v3709_v55 = vpop.f32.mrf.mxu1 }
 0x4a5   : > { %v2751_v21 = vadd.f32 %v3709_v55, %v5444_v45  ;;  %v2598_v2 = vsel %vm2566_vm0, %v2543_v11, %v2582_v32 }
 0x4a6   : > { %v2745_v29 = vpop.f32.mrf.mxu1  ;;  %3792 = vmatprep.mubr.msk.f32.mxu1 %vm2358_vm2, %v2598_v2 }
 0x4a7   : > { %v2746_v14 = vadd.f32 %v5444_v45, %v2745_v29  ;;  %3793 = vmatmul.mubr.msk.f32.gmra.mxu1 %vm2358_vm2, %v2599_v0  ;;  %v2850_v18 = vmul.f32 %v5449_v63, %v2751_v21  ;;  %vm2825_vm3 = vcmp.ge.f32.partialorder %v2751_v21, 0.0  ;;  %v2568_v0 = vmul.f32 %v5414_v22, %v5296_v41 }
 0x4a8   : > { %v3712_v57 = vpop.f32.mrf.mxu1 }
 0x4a9   : > { %vm2824_vm4 = vcmp.ge.f32.partialorder %v2746_v14, 0.0  ;;  %v2849_v39 = vmul.f32 %v5449_v63, %v2746_v14  ;;  %v2761_v4 = vadd.f32 %v3712_v57, %v5444_v45  ;;  %v2866_v15 = vsel %vm2825_vm3, %v2751_v21, %v2850_v18 }
 0x4aa   : > { %v2755_v44 = vpop.f32.mrf.mxu1 }
 0x4ab   : > { %v2756_v38 = vadd.f32 %v5444_v45, %v2755_v44  ;;  %v2865_v12 = vsel %vm2824_vm4, %v2746_v14, %v2849_v39  ;;  %v2852_v7 = vmul.f32 %v5449_v63, %v2761_v4  ;;  %vm2827_vm5 = vcmp.ge.f32.partialorder %v2761_v4, 0.0 }
 0x4ac   : > { %v3715_v36 = vpop.f32.mrf.mxu1  ;;  %3739 = vmatprep.mubr.msk.f32.mxu0 %vm2358_vm2, %v2865_v12 }
 0x4ad   : > { %vm2826_vm6 = vcmp.ge.f32.partialorder %v2756_v38, 0.0  ;;  %v2851_v53 = vmul.f32 %v5449_v63, %v2756_v38  ;;  %v2771_v27 = vadd.f32 %v3715_v36, %v5444_v45  ;;  %3740 = vmatmul.mubr.msk.f32.vlgmr.msra.gmra.mxu0 %vm2358_vm2, %v2866_v15  ;;  %v2868_v3 = vsel %vm2827_vm5, %v2761_v4, %v2852_v7  ;;  %v5523_v36 = vld [vmem:[%s5610_s17] ss:$0 sm:$0xff] }
 0x4ae   : > { %3764 = vmatpush3.msra.mxu0 %v5346_v62  ;;  %v2765_v49 = vpop.f32.mrf.mxu1  ;;  %vm2552_vm5 = vcmp.ge.f32.partialorder %v5414_v22, 0.0 }
 0x4af   : > { %v2766_v26 = vadd.f32 %v5444_v45, %v2765_v49  ;;  %v2867_v8 = vsel %vm2826_vm6, %v2756_v38, %v2851_v53  ;;  %3765 = vmatprep.subr.mxu0 %v5358_v42  ;;  %v2854_v40 = vmul.f32 %v5449_v63, %v2771_v27  ;;  %vm2829_vm7 = vcmp.ge.f32.partialorder %v2771_v27, 0.0 }
 0x4b0   : > { %v3718_v34 = vpop.f32.mrf.mxu1  ;;  %3742 = vmatprep.mubr.msk.f32.mxu0 %vm2358_vm2, %v2867_v8  ;;  %3766 = vmatpush3.msra.mxu0 %v5358_v42  ;;  %vm2553_vm6 = vcmp.ge.f32.partialorder %v5412_v54, 0.0  ;;  %v2584_v39 = vsel %vm2552_vm5, %v5414_v22, %v2568_v0 }
 0x4b1   : > { %vm2828_vm8 = vcmp.ge.f32.partialorder %v2766_v26, 0.0  ;;  %v2853_v31 = vmul.f32 %v5449_v63, %v2766_v26  ;;  %v2781_v62 = vadd.f32 %v3718_v34, %v5444_v45  ;;  %3743 = vmatmul.mubr.msk.f32.gmra.mxu0 %vm2358_vm2, %v2868_v3  ;;  %3767 = vmatprep.subr.mxu0 %v5368_v10  ;;  %v2870_v23 = vsel %vm2829_vm7, %v2771_v27, %v2854_v40 }
 0x4b2   : > { %v2775_v61 = vpop.f32.mrf.mxu1  ;;  %3768 = vmatpush3.msra.mxu0 %v5368_v10 }
 0x4b3   : > { %v2776_v6 = vadd.f32 %v5444_v45, %v2775_v61  ;;  %v2869_v60 = vsel %vm2828_vm8, %v2766_v26, %v2853_v31  ;;  %3769 = vmatprep.subr.mxu0 %v5374_v50  ;;  %v2856_v42 = vmul.f32 %v5449_v63, %v2781_v62  ;;  %vm2831_vm9 = vcmp.ge.f32.partialorder %v2781_v62, 0.0 }
 0x4b4   : > { %v3721_v46 = vpop.f32.mrf.mxu1  ;;  %3745 = vmatprep.mubr.msk.f32.mxu0 %vm2358_vm2, %v2869_v60  ;;  %3770 = vmatpush3.msra.mxu0 %v5374_v50 }
 0x4b5   : > { %vm2830_vm10 = vcmp.ge.f32.partialorder %v2776_v6, 0.0  ;;  %v2855_v5 = vmul.f32 %v5449_v63, %v2776_v6  ;;  %v2791_v17 = vadd.f32 %v3721_v46, %v5444_v45  ;;  %3746 = vmatmul.mubr.msk.f32.gmra.mxu0 %vm2358_vm2, %v2870_v23  ;;  %v2872_v30 = vsel %vm2831_vm9, %v2781_v62, %v2856_v42 }
 0x4b6   : > { %v2785_v10 = vpop.f32.mrf.mxu1 }
 0x4b7   : > { %v2786_v56 = vadd.f32 %v5444_v45, %v2785_v10  ;;  %v2871_v28 = vsel %vm2830_vm10, %v2776_v6, %v2855_v5  ;;  %v2858_v37 = vmul.f32 %v5449_v63, %v2791_v17  ;;  %vm2833_vm11 = vcmp.ge.f32.partialorder %v2791_v17, 0.0 }
 0x4b8   : > { %v3724_v9 = vpop.f32.mrf.mxu1  ;;  %3748 = vmatprep.mubr.msk.f32.mxu0 %vm2358_vm2, %v2871_v28 }
 0x4b9   : > { %vm2832_vm12 = vcmp.ge.f32.partialorder %v2786_v56, 0.0  ;;  %v2857_v50 = vmul.f32 %v5449_v63, %v2786_v56  ;;  %v2801_v24 = vadd.f32 %v3724_v9, %v5444_v45  ;;  %3749 = vmatmul.mubr.msk.f32.gmra.mxu0 %vm2358_vm2, %v2872_v30  ;;  %v2874_v52 = vsel %vm2833_vm11, %v2791_v17, %v2858_v37 }
 0x4ba   : > { %v2795_v33 = vpop.f32.mrf.mxu1 }
 0x4bb   : > { %v2796_v1 = vadd.f32 %v5444_v45, %v2795_v33  ;;  %v2873_v13 = vsel %vm2832_vm12, %v2786_v56, %v2857_v50  ;;  %v2860_v25 = vmul.f32 %v5449_v63, %v2801_v24  ;;  %vm2835_vm13 = vcmp.ge.f32.partialorder %v2801_v24, 0.0 }
 0x4bc   : > { %v3727_v47 = vpop.f32.mrf.mxu1  ;;  %3751 = vmatprep.mubr.msk.f32.mxu0 %vm2358_vm2, %v2873_v13 }
 0x4bd   : > { %vm2834_vm14 = vcmp.ge.f32.partialorder %v2796_v1, 0.0  ;;  %v2859_v16 = vmul.f32 %v5449_v63, %v2796_v1  ;;  %v2811_v43 = vadd.f32 %v3727_v47, %v5444_v45  ;;  %3752 = vmatmul.mubr.msk.f32.gmra.mxu0 %vm2358_vm2, %v2874_v52  ;;  %v2876_v51 = vsel %vm2835_vm13, %v2801_v24, %v2860_v25 }
 0x4be   : > { %v2805_v59 = vpop.f32.mrf.mxu1 }
 0x4bf   : > { %v2806_v19 = vadd.f32 %v5444_v45, %v2805_v59  ;;  %v2875_v35 = vsel %vm2834_vm14, %v2796_v1, %v2859_v16  ;;  %v2862_v48 = vmul.f32 %v5449_v63, %v2811_v43  ;;  %vm2837_vm15 = vcmp.ge.f32.partialorder %v2811_v43, 0.0 }
 0x4c0   : > { %v3730_v58 = vpop.f32.mrf.mxu1  ;;  %3754 = vmatprep.mubr.msk.f32.mxu0 %vm2358_vm2, %v2875_v35 }
 0x4c1   : > { %vm2836_vm0 = vcmp.ge.f32.partialorder %v2806_v19, 0.0  ;;  %v2861_v20 = vmul.f32 %v5449_v63, %v2806_v19  ;;  %v2821_v11 = vadd.f32 %v3730_v58, %v5444_v45  ;;  %3755 = vmatmul.mubr.msk.f32.gmra.mxu0 %vm2358_vm2, %v2876_v51  ;;  %v2878_v29 = vsel %vm2837_vm15, %v2811_v43, %v2862_v48 }
 0x4c2   : > { %v2815_v32 = vpop.f32.mrf.mxu1 }
 0x4c3   : > { %v2816_v55 = vadd.f32 %v5444_v45, %v2815_v32  ;;  %v2877_v21 = vsel %vm2836_vm0, %v2806_v19, %v2861_v20  ;;  %v2864_v2 = vmul.f32 %v5449_v63, %v2821_v11  ;;  %vm2839_vm3 = vcmp.ge.f32.partialorder %v2821_v11, 0.0 }
 0x4c4   : > { %3757 = vmatprep.mubr.msk.f32.mxu0 %vm2358_vm2, %v2877_v21  ;;  %v2569_v45 = vmul.f32 %v5412_v54, %v5296_v41 }
 0x4c5   : > { %vm2838_vm4 = vcmp.ge.f32.partialorder %v2816_v55, 0.0  ;;  %v2863_v14 = vmul.f32 %v5449_v63, %v2816_v55  ;;  %3758 = vmatmul.mubr.msk.f32.gmra.mxu0 %vm2358_vm2, %v2878_v29  ;;  %v2880_v57 = vsel %vm2839_vm3, %v2821_v11, %v2864_v2 }
 0x4c6   : > { %v2585_v63 = vsel %vm2553_vm6, %v5412_v54, %v2569_v45 }
 0x4c7   : > { %v2879_v18 = vsel %vm2838_vm4, %v2816_v55, %v2863_v14 }
 0x4c8   : > { %3760 = vmatprep.mubr.msk.f32.mxu0 %vm2358_vm2, %v2879_v18 }
 0x4c9   : > { %3761 = vmatmul.mubr.msk.f32.gmra.mxu0 %vm2358_vm2, %v2880_v57 }
 0x4ca   : > { %3771 = vmatprep.mubr.msk.f32.mxu0 %vm2358_vm2, %v2584_v39 }
 0x4cd   : > { %3772 = vmatmul.mubr.msk.f32.vlgmr.msra.gmra.mxu0 %vm2358_vm2, %v2585_v63 }
 0x52e   : > { %v3776_v4 = vpop.f32.mrf.mxu1 }
 0x530   : > { %v3209_v44 = vpop.f32.mrf.mxu1 }
 0x536   : > { %v3779_v38 = vpop.f32.mrf.mxu1 }
 0x538   : > { %v3219_v12 = vpop.f32.mrf.mxu1 }
 0x53e   : > { %v3782_v7 = vpop.f32.mrf.mxu1 }
 0x540   : > { %v3229_v26 = vpop.f32.mrf.mxu1 }
 0x546   : > { %v3785_v3 = vpop.f32.mrf.mxu1 }
 0x548   : > { %v3239_v46 = vpop.f32.mrf.mxu1 }
 0x54e   : > { %v3788_v10 = vpop.f32.mrf.mxu1 }
 0x550   : > { %v3249_v24 = vpop.f32.mrf.mxu1 }
 0x559   : > { %v3791_v25 = vpop.f32.mrf.mxu1 }
 0x55b   : > { %v3259_v35 = vpop.f32.mrf.mxu1 }
 0x567   : > { %v3794_v20 = vpop.f32.mrf.mxu1 }
 0x569   : > { %v3269_v14 = vpop.f32.mrf.mxu1 }
 0x56d   : > { %v5516_v41 = vpop.f32.mrf.mxu0 }
 0x56e   : > { %v3012_v2 = vadd.f32 %v5516_v41, %v5523_v36 }
 0x56f   : > { %v5518_v15 = vpop.f32.mrf.mxu0 }
 0x570   : > { %v3007_v45 = vadd.f32 %v5523_v36, %v5518_v15 }
 0x571   : > { %v3744_v22 = vpop.f32.mrf.mxu0 }
 0x572   : > { %v3022_v53 = vadd.f32 %v3744_v22, %v5523_v36 }
 0x573   : > { %v3016_v54 = vpop.f32.mrf.mxu0 }
 0x574   : > { %v3215_v27 = vadd.f32 %v3776_v4, %v3022_v53  ;;  %v3017_v49 = vadd.f32 %v5523_v36, %v3016_v54 }
 0x575   : > { %v3747_v8 = vpop.f32.mrf.mxu0 }
 0x576   : > { %3281 = vst.msk [vmem:[%s5530_s0 + $0x18] sm:$0xff] %vm2630_vm1, %v3215_v27  ;;  %v3210_v40 = vadd.f32 %v3209_v44, %v3017_v49  ;;  %v3032_v34 = vadd.f32 %v3747_v8, %v5523_v36 }
 0x577   : > { %v3026_v31 = vpop.f32.mrf.mxu0 }
 0x578   : > { %3280 = vst.msk [vmem:[%s5530_s0 + $0x10] sm:$0xff] %vm2630_vm1, %v3210_v40  ;;  %v3225_v62 = vadd.f32 %v3779_v38, %v3032_v34  ;;  %v3027_v61 = vadd.f32 %v5523_v36, %v3026_v31 }
 0x579   : > { %v3750_v6 = vpop.f32.mrf.mxu0 }
 0x57a   : > { %3283 = vst.msk [vmem:[%s5530_s0 + $0x28] sm:$0xff] %vm2630_vm1, %v3225_v62  ;;  %v3220_v60 = vadd.f32 %v3219_v12, %v3027_v61  ;;  %v3042_v42 = vadd.f32 %v3750_v6, %v5523_v36 }
 0x57b   : > { %v3036_v23 = vpop.f32.mrf.mxu0 }
 0x57c   : > { %3282 = vst.msk [vmem:[%s5530_s0 + $0x20] sm:$0xff] %vm2630_vm1, %v3220_v60  ;;  %v3235_v5 = vadd.f32 %v3782_v7, %v3042_v42  ;;  %v3037_v17 = vadd.f32 %v5523_v36, %v3036_v23 }
 0x57d   : > { %v3753_v56 = vpop.f32.mrf.mxu0 }
 0x57e   : > { %3285 = vst.msk [vmem:[%s5530_s0 + $0x38] sm:$0xff] %vm2630_vm1, %v3235_v5  ;;  %v3230_v28 = vadd.f32 %v3229_v26, %v3037_v17  ;;  %v3052_v37 = vadd.f32 %v3753_v56, %v5523_v36 }
 0x57f   : > { %v3046_v9 = vpop.f32.mrf.mxu0 }
 0x580   : > { %3284 = vst.msk [vmem:[%s5530_s0 + $0x30] sm:$0xff] %vm2630_vm1, %v3230_v28  ;;  %v3245_v30 = vadd.f32 %v3785_v3, %v3052_v37  ;;  %v3047_v50 = vadd.f32 %v5523_v36, %v3046_v9 }
 0x581   : > { %v3756_v33 = vpop.f32.mrf.mxu0 }
 0x582   : > { %3287 = vst.msk [vmem:[%s5530_s0 + $0x48] sm:$0xff] %vm2630_vm1, %v3245_v30  ;;  %v3240_v1 = vadd.f32 %v3239_v46, %v3047_v50  ;;  %v3062_v13 = vadd.f32 %v3756_v33, %v5523_v36 }
 0x583   : > { %v3056_v47 = vpop.f32.mrf.mxu0 }
 0x584   : > { %3286 = vst.msk [vmem:[%s5530_s0 + $0x40] sm:$0xff] %vm2630_vm1, %v3240_v1  ;;  %v3255_v52 = vadd.f32 %v3788_v10, %v3062_v13  ;;  %v3057_v16 = vadd.f32 %v5523_v36, %v3056_v47 }
 0x585   : > { %v3759_v43 = vpop.f32.mrf.mxu0 }
 0x586   : > { %3289 = vst.msk [vmem:[%s5530_s0 + $0x58] sm:$0xff] %vm2630_vm1, %v3255_v52  ;;  %v3250_v59 = vadd.f32 %v3249_v24, %v3057_v16  ;;  %v3072_v19 = vadd.f32 %v3759_v43, %v5523_v36 }
 0x587   : > { %v3066_v48 = vpop.f32.mrf.mxu0 }
 0x588   : > { %3288 = vst.msk [vmem:[%s5530_s0 + $0x50] sm:$0xff] %vm2630_vm1, %v3250_v59  ;;  %v3265_v58 = vadd.f32 %v3791_v25, %v3072_v19  ;;  %v3067_v51 = vadd.f32 %v5523_v36, %v3066_v48 }
 0x589   : > { %v3762_v11 = vpop.f32.mrf.mxu0 }
 0x58a   : > { %3291 = vst.msk [vmem:[%s5530_s0 + $0x68] sm:$0xff] %vm2630_vm1, %v3265_v58  ;;  %v3260_v32 = vadd.f32 %v3259_v35, %v3067_v51  ;;  %v3082_v55 = vadd.f32 %v3762_v11, %v5523_v36 }
 0x58b   : > { %v3076_v21 = vpop.f32.mrf.mxu0 }
 0x58c   : > { %3290 = vst.msk [vmem:[%s5530_s0 + $0x60] sm:$0xff] %vm2630_vm1, %v3260_v32  ;;  %v3275_v29 = vadd.f32 %v3794_v20, %v3082_v55  ;;  %v3077_v0 = vadd.f32 %v5523_v36, %v3076_v21 }
 0x58d   : > { %v3773_v18 = vpop.f32.mrf.mxu0 }
 0x58e   : > { %3293 = vst.msk [vmem:[%s5530_s0 + $0x78] sm:$0xff] %vm2630_vm1, %v3275_v29  ;;  %v3270_v57 = vadd.f32 %v3269_v14, %v3077_v0  ;;  %v3205_v39 = vadd.f32 %v3773_v18, %v3012_v2 }
 0x58f   : > { %v3199_v63 = vpop.f32.mrf.mxu0 }
 0x590   : > { %3292 = vst.msk [vmem:[%s5530_s0 + $0x70] sm:$0xff] %vm2630_vm1, %v3270_v57  ;;  %3279 = vst.msk [vmem:[%s5530_s0 + $0x8] sm:$0xff] %vm2630_vm1, %v3205_v39  ;;  %v3200_v4 = vadd.f32 %v3199_v63, %v3007_v45 }
 0x592   : > { %3278 = vst.msk [vmem:[%s5530_s0] sm:$0xff] %vm2630_vm1, %v3200_v4 }
 0x593 PF: > { %s5793_s24 = sld [smem:[#allocation12_spill]]  ;;  %s5796_s2 = smov %s4133_s23 }
 0x594   : > { %s5794_s29 = sld [smem:[#allocation11_spill]] }
 0x595   : > { %s5795_s9 = sld [smem:[#allocation13_spill]] }
 0x599   : > { %p38_p11 = scmp.ge.s32.totalorder %s5793_s24, 5  }
 0x59a   : > { %s5797_s23 = smov %s5794_s29 }
 0x59b   :  { %40 = sbr.rel (!%p38_p11) target bundleno = 11 (0xb), region = 155 }
 0x5a0   :  { %3316 = vsyncpa [#allocation6], 1 }
 0x5a1   :  { %3318 = vsyncpa [#allocation6 + $0x1], 1 }
 0x5a2   :  { %3319 = vsyncpa [#allocation8], 1 }
 0x5a3   :  { %3321 = vsyncpa [#allocation8 + $0x1], 1 }

</bundles_post_ra>
